<compile_context>
chip_gen: v5e
topology: v5e:2x2
jax: 0.10.0
libtpu: 0.0.40
codegen_flags: <defaults>
</compile_context>

<pallas_src>
import jax
import jax.numpy as jnp
from jax import lax
from jax.experimental import pallas as pl
from jax.experimental.pallas import tpu as pltpu

_BN_EPS = 1e-5
_LANE = 128


def _round_up(x, m):
    return (x + m - 1) // m * m


def _vmem_budget_bytes():
    """~75% of physical VMEM (generation-aware); safe fallback = 64 MiB part."""
    cap = 64 * 1024 * 1024
    try:
        info = pltpu.get_tpu_info()
        cap = int(getattr(info, "vmem_capacity_bytes", cap))
    except Exception:
        pass
    return max((cap * 3) // 4, 16 * 1024 * 1024)


def _row_tile(h, row_bytes, max_bytes):
    """Largest divisor of h whose row-tile stays under `max_bytes`."""
    # TODO(synk): allow a ragged last tile (pl.when mask) so a prime H does not
    # degrade to tiny tiles; divisor search is fine for pow2-ish decoder shapes.
    best = 1
    for t in range(1, h + 1):
        if h % t == 0 and t * row_bytes <= max_bytes:
            best = t
    return best


# ----------------------------------------------------------------------------
# Kernel 1: fused max_unpool2d (k=2, s=2) + halo pad + 128-lane channel pad
# ----------------------------------------------------------------------------
def _make_unpool_pad_kernel(wout):
    def kernel(x_ref, idx_ref, o_ref):
        # x_ref/idx_ref: (1, tr, Wp, C)       f32 / int32 (2x-repeated, halo-padded)
        # o_ref:         (1, tr, Wp, Cp=128)  bf16 conv-ready activation tile
        _, tr, wp, c = x_ref.shape
        y0 = pl.program_id(1) * tr
        # unpadded output-plane coordinates of every element of this tile
        yy = lax.broadcasted_iota(jnp.int32, (tr, wp, c), 0) + (y0 - 1)
        xx = lax.broadcasted_iota(jnp.int32, (tr, wp, c), 1) - 1
        tgt = yy * wout + xx
        # halo / extra rows are zero in x_ref, so spurious index matches are harmless
        val = jnp.where(idx_ref[0] == tgt, x_ref[0], 0.0)
        # dense 128-lane zero fill (halo + padded channels), real channels on top
        o_ref[...] = jnp.zeros_like(o_ref)
        o_ref[0, :, :, pl.ds(0, c)] = val.astype(o_ref.dtype)
    return kernel


def _run_unpool_pad(x_pad, idx_pad, wout, cp, vmem_limit, tile_target):
    n, hp, wp, c = x_pad.shape
    tr = _row_tile(hp, wp * cp * 2, tile_target)
    return pl.pallas_call(
        _make_unpool_pad_kernel(wout),
        out_shape=jax.ShapeDtypeStruct((n, hp, wp, cp), jnp.bfloat16),
        grid=(n, hp // tr),
        in_specs=[
            pl.BlockSpec((1, tr, wp, c), lambda ni, ti: (ni, ti, 0, 0)),
            pl.BlockSpec((1, tr, wp, c), lambda ni, ti: (ni, ti, 0, 0)),
        ],
        out_specs=pl.BlockSpec((1, tr, wp, cp), lambda ni, ti: (ni, ti, 0, 0)),
        compiler_params=pltpu.CompilerParams(
            dimension_semantics=("parallel", "parallel"),
            vmem_limit_bytes=vmem_limit),
    )(x_pad, idx_pad)


# ----------------------------------------------------------------------------
# Kernel 2 (pass 1): Conv3x3(pad=1) + bias, kx folded into MXU K, bf16 z,
#                    f32 partial BatchNorm statistics
# ----------------------------------------------------------------------------
def _conv_kernel(a_ref, w_ref, b_ref, z_ref, s_ref):
    # a_ref: (1, H+2, W+2, Cpi) bf16   padded activation, resident per image
    # w_ref: (3, 3*Cpi, Cpo)    bf16   ky-major, kx folded into K
    # b_ref: (1, Cpo)           f32
    # z_ref: (1, th, W, Cpo)    bf16   conv + bias output tile
    # s_ref: (1, 1, 2, Cpo)     f32    per-tile (sum, sum of squares)
    _, th, wi, cpo = z_ref.shape
    cpi = a_ref.shape[-1]
    r0 = pl.multiple_of(pl.program_id(1) * th, th)

    acc = jnp.zeros((th * wi, cpo), jnp.float32)
    for ky in range(3):
        # im2col along kx: lane-concat of three 128-lane-aligned slices -> K=3*Cpi
        xk = jnp.concatenate(
            [a_ref[0, pl.ds(r0 + ky, th), pl.ds(kx, wi), :] for kx in range(3)],
            axis=-1)
        acc = acc + jnp.dot(xk.reshape(th * wi, 3 * cpi), w_ref[ky],
                            preferred_element_type=jnp.float32)
    acc = acc + b_ref[0]

    z_ref[0] = acc.reshape(th, wi, cpo).astype(z_ref.dtype)
    s0 = jnp.sum(acc, axis=0, keepdims=True)
    s1 = jnp.sum(acc * acc, axis=0, keepdims=True)
    s_ref[0, 0] = jnp.concatenate([s0, s1], axis=0)


def _run_conv(a_pad, w3, bias, th, vmem_limit):
    n, hp, wp, cpi = a_pad.shape
    hi, wi = hp - 2, wp - 2
    cpo = w3.shape[-1]
    return pl.pallas_call(
        _conv_kernel,
        out_shape=(jax.ShapeDtypeStruct((n, hi, wi, cpo), jnp.bfloat16),
                   jax.ShapeDtypeStruct((n, hi // th, 2, cpo), jnp.float32)),
        grid=(n, hi // th),
        in_specs=[
            # TODO(synk): for very large images, row-tile this input with a
            # (th+2)-row halo via manual DMA from a pl.ANY HBM ref instead of
            # keeping the whole padded image resident (O(image) VMEM on v7x).
            pl.BlockSpec((1, hp, wp, cpi), lambda ni, ti: (ni, 0, 0, 0)),
            pl.BlockSpec((3, 3 * cpi, cpo), lambda ni, ti: (0, 0, 0)),
            pl.BlockSpec((1, cpo), lambda ni, ti: (0, 0)),
        ],
        out_specs=(
            pl.BlockSpec((1, th, wi, cpo), lambda ni, ti: (ni, ti, 0, 0)),
            pl.BlockSpec((1, 1, 2, cpo), lambda ni, ti: (ni, ti, 0, 0)),
        ),
        compiler_params=pltpu.CompilerParams(
            dimension_semantics=("parallel", "parallel"),
            vmem_limit_bytes=vmem_limit),
    )(a_pad, w3, bias)


# ----------------------------------------------------------------------------
# Kernel 3 (pass 2): BatchNorm apply + ReLU, writes padded bf16 activation
# ----------------------------------------------------------------------------
def _bn_relu_pad_kernel(z_ref, scale_ref, shift_ref, o_ref):
    # z_ref:        (1, th, W, Cp)     bf16
    # scale/shift:  (1, Cp)            f32
    # o_ref:        (1, H+2, W+2, Cp)  bf16, resident per image (revisited)
    i = pl.program_id(1)
    nt = pl.num_programs(1)
    _, th, wi, cp = z_ref.shape
    hp, wp = o_ref.shape[1], o_ref.shape[2]

    y = jnp.maximum(z_ref[0].astype(jnp.float32) * scale_ref[0] + shift_ref[0], 0.0)
    zcol = jnp.zeros((th, 1, cp), jnp.float32)
    tile = jnp.concatenate([zcol, y, zcol], axis=1)          # (th, W+2, Cp)
    # full-width store at column 0: no sublane-misaligned (column-offset) stores
    o_ref[0, pl.ds(1 + i * th, th), :, :] = tile.astype(o_ref.dtype)

    # zero only the halo rows (O(perimeter)), not the whole image
    @pl.when(i == 0)
    def _():
        o_ref[0, pl.ds(0, 1), :, :] = jnp.zeros((1, wp, cp), o_ref.dtype)

    @pl.when(i == nt - 1)
    def _():
        o_ref[0, pl.ds(hp - 1, 1), :, :] = jnp.zeros((1, wp, cp), o_ref.dtype)


def _run_bn_relu_pad(z, scale, shift, th, vmem_limit):
    n, hi, wi, cp = z.shape
    return pl.pallas_call(
        _bn_relu_pad_kernel,
        out_shape=jax.ShapeDtypeStruct((n, hi + 2, wi + 2, cp), jnp.bfloat16),
        grid=(n, hi // th),
        in_specs=[
            pl.BlockSpec((1, th, wi, cp), lambda ni, ti: (ni, ti, 0, 0)),
            pl.BlockSpec((1, cp), lambda ni, ti: (0, 0)),
            pl.BlockSpec((1, cp), lambda ni, ti: (0, 0)),
        ],
        out_specs=pl.BlockSpec((1, hi + 2, wi + 2, cp), lambda ni, ti: (ni, 0, 0, 0)),
        compiler_params=pltpu.CompilerParams(
            dimension_semantics=("parallel", "arbitrary"),
            vmem_limit_bytes=vmem_limit),
    )(z, scale, shift)


# ----------------------------------------------------------------------------
# Decoder module: params + forward
# ----------------------------------------------------------------------------
def init_decoder_params(key, into, outo, how_many_layers):
    # Faithful replication of the original construction: the loop OVERWRITES
    # the list, so at most one (into->into) block precedes the (into->outo) one.
    layer_dims = []
    for _ in range(how_many_layers - 1):
        layer_dims = [(into, into)]
    layer_dims += [(into, outo)]

    params = []
    for ci, co in layer_dims:
        key, kw, kb = jax.random.split(key, 3)
        w = jax.random.normal(kw, (3, 3, ci, co), jnp.float32) / jnp.sqrt(9.0 * ci)
        b = 0.1 * jax.random.normal(kb, (co,), jnp.float32)
        gamma = jnp.ones((co,), jnp.float32)
        beta = jnp.zeros((co,), jnp.float32)
        params.append((w, b, gamma, beta))
    return params


def decoder_forward(params, x_nchw, indxs_nchw, size):
    """x/indxs: NCHW (PyTorch layout); size=(N, C, Hout, Wout). Returns NCHW f32."""
    x = jnp.transpose(x_nchw, (0, 2, 3, 1)).astype(jnp.float32)
    idx = jnp.transpose(indxs_nchw, (0, 2, 3, 1)).astype(jnp.int32)
    n, h, w, c = x.shape
    hout, wout = int(size[2]), int(size[3])

    budget = _vmem_budget_bytes()
    vmem_limit = budget
    tile_target = min(8 * 1024 * 1024, budget // 8)

    # Cheap XLA prep at the original C channels: nearest 2x repeat of values and
    # indices, plus the 1-px conv halo (and any extra output_size rows/cols).
    # The expensive parts -- the unpool select, the C->128 lane pad and the bf16
    # cast -- are fused into the Pallas kernel.
    x_up = jnp.repeat(jnp.repeat(x, 2, axis=1), 2, axis=2)
    idx_up = jnp.repeat(jnp.repeat(idx, 2, axis=1), 2, axis=2)
    eh, ew = hout - 2 * h, wout - 2 * w
    x_pad = jnp.pad(x_up, ((0, 0), (1, 1 + eh), (1, 1 + ew), (0, 0)))
    idx_pad = jnp.pad(idx_up, ((0, 0), (1, 1 + eh), (1, 1 + ew), (0, 0)))

    cp_in = _round_up(c, _LANE)
    a = _run_unpool_pad(x_pad, idx_pad, wout, cp_in, vmem_limit, tile_target)

    for (wgt, bias, gamma, beta) in params:
        ci, co = wgt.shape[2], wgt.shape[3]
        cpi, cpo = _round_up(ci, _LANE), _round_up(co, _LANE)

        # weights: (3,3,ci,co) -> pad -> (3, 3*Cpi, Cpo), kx folded into K
        w3 = jnp.pad(wgt, ((0, 0), (0, 0), (0, cpi - ci), (0, cpo - co)))
        w3 = w3.reshape(3, 3 * cpi, cpo).astype(jnp.bfloat16)
        b_p = jnp.pad(bias, (0, cpo - co)).reshape(1, cpo).astype(jnp.float32)
        g_p = jnp.pad(gamma, (0, cpo - co))     # padded channels: gamma=0 -> output 0
        be_p = jnp.pad(beta, (0, cpo - co))

        hi, wi = a.shape[1] - 2, a.shape[2] - 2
        th = _row_tile(hi, wi * cpo * 4, tile_target)

        z, stats = _run_conv(a, w3, b_p, th, vmem_limit)

        # finalize BatchNorm statistics (training mode, biased variance).
        # TODO(synk): single-pass E[x^2]-E[x]^2 in f32; use a shifted/two-pass
        # variance if |mean| >> std regimes ever show up.
        cnt = float(n * hi * wi)
        sums = jnp.sum(stats, axis=(0, 1))                   # (2, Cpo)
        mean = sums[0] / cnt
        var = jnp.maximum(sums[1] / cnt - mean * mean, 0.0)
        inv = lax.rsqrt(var + _BN_EPS)
        scale = (g_p * inv).reshape(1, cpo).astype(jnp.float32)
        shift = (be_p - mean * g_p * inv).reshape(1, cpo).astype(jnp.float32)

        a = _run_bn_relu_pad(z, scale, shift, th, vmem_limit)  # (N, hi+2, wi+2, Cpo)

    co_final = params[-1][0].shape[3]
    out = a[:, 1:-1, 1:-1, :co_final].astype(jnp.float32)
    return jnp.transpose(out, (0, 3, 1, 2))


decoder_forward_jit = jax.jit(decoder_forward, static_argnums=(3,))


# ----------------------------------------------------------------------------
# Pure-JAX reference (correctness check only)
# ----------------------------------------------------------------------------
def _reference_forward(params, x_nchw, indxs_nchw, size):
    n, c, h, w = x_nchw.shape
    hout, wout = int(size[2]), int(size[3])
    flat = jnp.zeros((n, c, hout * wout), jnp.float32)
    n_i = jnp.arange(n)[:, None, None]
    c_i = jnp.arange(c)[None, :, None]
    flat = flat.at[n_i, c_i, indxs_nchw.reshape(n, c, h * w)].set(
        x_nchw.reshape(n, c, h * w).astype(jnp.float32))
    y = flat.reshape(n, c, hout, wout)
    for wgt, bias, gamma, beta in params:
        co = wgt.shape[-1]
        w_oihw = jnp.transpose(wgt, (3, 2, 0, 1))
        y = lax.conv_general_dilated(y, w_oihw, (1, 1), ((1, 1), (1, 1)),
                                     dimension_numbers=("NCHW", "OIHW", "NCHW"))
        y = y + bias.reshape(1, co, 1, 1)
        mean = jnp.mean(y, axis=(0, 2, 3), keepdims=True)
        var = jnp.mean((y - mean) ** 2, axis=(0, 2, 3), keepdims=True)
        y = (y - mean) * lax.rsqrt(var + _BN_EPS) * gamma.reshape(1, co, 1, 1) \
            + beta.reshape(1, co, 1, 1)
        y = jnp.maximum(y, 0.0)
    return y


if __name__ == "__main__":
    key = jax.random.PRNGKey(0)
    into, outo, how_many_layers = 4, 8, 2
    n, h, w = 2, 8, 8                       # decoder input (already max-pooled)
    size = (n, into, 2 * h, 2 * w)          # unpool target size

    key, kx, kdy, kdx, kp = jax.random.split(key, 5)
    x = jax.random.normal(kx, (n, into, h, w), jnp.float32)

    # max_pool2d(k=2, s=2, return_indices=True)-style indices: each value
    # scatters somewhere inside its own 2x2 window of the unpooled plane.
    dy = jax.random.randint(kdy, (n, into, h, w), 0, 2)
    dx = jax.random.randint(kdx, (n, into, h, w), 0, 2)
    hh = jnp.arange(h)[None, None, :, None]
    ww = jnp.arange(w)[None, None, None, :]
    indxs = ((2 * hh + dy) * (2 * w) + (2 * ww + dx)).astype(jnp.int32)

    params = init_decoder_params(kp, into, outo, how_many_layers)

    out = decoder_forward_jit(params, x, indxs, size)
    out = jax.block_until_ready(out)

    ref = _reference_forward(params, x, indxs, size)
    assert out.shape == (n, outo, 2 * h, 2 * w)
    # bf16 MXU inputs / bf16 activation + z storage -> relaxed tolerances.
    assert bool(jnp.allclose(out, ref, atol=6e-2, rtol=6e-2)), \
        float(jnp.max(jnp.abs(out - ref)))
    print("KERNEL_OK")
</pallas_src>

<mosaic_0001>
module attributes {stable_mosaic.version = 11 : i64} {
  func.func @kernel(%arg0: i32, %arg1: i32, %arg2: memref<1x18x18x4xf32, #tpu.memory_space<vmem>>, %arg3: memref<1x18x18x4xi32, #tpu.memory_space<vmem>>, %arg4: memref<1x18x18x128xbf16, #tpu.memory_space<vmem>>) attributes {dimension_semantics = [#tpu.dimension_semantics<parallel>, #tpu.dimension_semantics<parallel>], iteration_bounds = array<i64: 2, 1>, scalar_prefetch = 0 : i64, scratch_operands = 0 : i64, tpu.core_type = #tpu.core_type<tc>, window_params = [{transform_indices = @transform_0, window_bounds = array<i64: 1, 18, 18, 4>}, {transform_indices = @transform_1, window_bounds = array<i64: 1, 18, 18, 4>}, {transform_indices = @transform_2, window_bounds = array<i64: 1, 18, 18, 128>}]} {
    %c18_i32 = arith.constant 18 : i32
    %0 = arith.muli %arg1, %c18_i32 : i32
    %1 = tpu.iota {dimensions = array<i32: 0>} : vector<18x18x4xi32>
    %c1_i32 = arith.constant 1 : i32
    %2 = arith.subi %0, %c1_i32 : i32
    %3 = vector.broadcast %2 : i32 to vector<18x18x4xi32>
    %4 = arith.addi %1, %3 : vector<18x18x4xi32>
    %5 = tpu.iota {dimensions = array<i32: 1>} : vector<18x18x4xi32>
    %c1_i32_0 = arith.constant 1 : i32
    %6 = vector.broadcast %c1_i32_0 : i32 to vector<18x18x4xi32>
    %7 = arith.subi %5, %6 : vector<18x18x4xi32>
    %c16_i32 = arith.constant 16 : i32
    %8 = vector.broadcast %c16_i32 : i32 to vector<18x18x4xi32>
    %9 = arith.muli %4, %8 : vector<18x18x4xi32>
    %10 = arith.addi %9, %7 : vector<18x18x4xi32>
    %c0 = arith.constant 0 : index
    %c0_1 = arith.constant 0 : index
    %c0_2 = arith.constant 0 : index
    %c0_3 = arith.constant 0 : index
    %11 = vector.load %arg3[%c0, %c0_1, %c0_2, %c0_3] : memref<1x18x18x4xi32, #tpu.memory_space<vmem>>, vector<1x18x18x4xi32>
    %12 = vector.shape_cast %11 : vector<1x18x18x4xi32> to vector<18x18x4xi32>
    %13 = arith.cmpi eq, %12, %10 : vector<18x18x4xi32>
    %c0_4 = arith.constant 0 : index
    %c0_5 = arith.constant 0 : index
    %c0_6 = arith.constant 0 : index
    %c0_7 = arith.constant 0 : index
    %14 = vector.load %arg2[%c0_4, %c0_5, %c0_6, %c0_7] : memref<1x18x18x4xf32, #tpu.memory_space<vmem>>, vector<1x18x18x4xf32>
    %15 = vector.shape_cast %14 : vector<1x18x18x4xf32> to vector<18x18x4xf32>
    %cst = arith.constant 0.000000e+00 : f32
    %16 = vector.broadcast %cst : f32 to vector<18x18x4xf32>
    %17 = arith.select %13, %15, %16 : vector<18x18x4xi1>, vector<18x18x4xf32>
    %cst_8 = arith.constant 0.000000e+00 : bf16
    %18 = vector.broadcast %cst_8 : bf16 to vector<1x18x18x128xbf16>
    %c0_9 = arith.constant 0 : index
    %c0_10 = arith.constant 0 : index
    %c0_11 = arith.constant 0 : index
    %c0_12 = arith.constant 0 : index
    %19 = vector.load %arg4[%c0_9, %c0_10, %c0_11, %c0_12] : memref<1x18x18x128xbf16, #tpu.memory_space<vmem>>, vector<1x18x18x128xbf16>
    tpu.vector_store %arg4[%c0_9, %c0_10, %c0_11, %c0_12], %18 {strides = array<i32>} : memref<1x18x18x128xbf16, #tpu.memory_space<vmem>>, vector<1x18x18x128xbf16>,
    %20 = arith.truncf %17 : vector<18x18x4xf32> to vector<18x18x4xbf16>
    %c0_13 = arith.constant 0 : index
    %c0_14 = arith.constant 0 : index
    %c0_15 = arith.constant 0 : index
    %c0_16 = arith.constant 0 : index
    %21 = vector.load %arg4[%c0_13, %c0_14, %c0_15, %c0_16] : memref<1x18x18x128xbf16, #tpu.memory_space<vmem>>, vector<1x18x18x4xbf16>
    %22 = vector.shape_cast %21 : vector<1x18x18x4xbf16> to vector<18x18x4xbf16>
    %23 = vector.shape_cast %20 : vector<18x18x4xbf16> to vector<1x18x18x4xbf16>
    tpu.vector_store %arg4[%c0_13, %c0_14, %c0_15, %c0_16], %23 {strides = array<i32>} : memref<1x18x18x128xbf16, #tpu.memory_space<vmem>>, vector<1x18x18x4xbf16>,
    return
  }
  func.func @transform_0(%arg0: i32, %arg1: i32) -> (i32, i32, i32, i32) {
    %c0_i32 = arith.constant 0 : i32
    %c0_i32_0 = arith.constant 0 : i32
    %c0_i32_1 = arith.constant 0 : i32
    return %arg0, %arg1, %c0_i32, %c0_i32_0 : i32, i32, i32, i32
  }
  func.func @transform_1(%arg0: i32, %arg1: i32) -> (i32, i32, i32, i32) {
    %c0_i32 = arith.constant 0 : i32
    %c0_i32_0 = arith.constant 0 : i32
    %c0_i32_1 = arith.constant 0 : i32
    return %arg0, %arg1, %c0_i32, %c0_i32_0 : i32, i32, i32, i32
  }
  func.func @transform_2(%arg0: i32, %arg1: i32) -> (i32, i32, i32, i32) {
    %c0_i32 = arith.constant 0 : i32
    %c0_i32_0 = arith.constant 0 : i32
    %c0_i32_1 = arith.constant 0 : i32
    return %arg0, %arg1, %c0_i32, %c0_i32_0 : i32, i32, i32, i32
  }
}

module attributes {stable_mosaic.version = 11 : i64} {
  func.func @_bn_relu_pad_kernel(%arg0: i32, %arg1: i32, %arg2: memref<1x16x16x128xbf16, #tpu.memory_space<vmem>>, %arg3: memref<1x128xf32, #tpu.memory_space<vmem>>, %arg4: memref<1x128xf32, #tpu.memory_space<vmem>>, %arg5: memref<1x18x18x128xbf16, #tpu.memory_space<vmem>>) attributes {dimension_semantics = [#tpu.dimension_semantics<parallel>, #tpu.dimension_semantics<arbitrary>], iteration_bounds = array<i64: 2, 1>, scalar_prefetch = 0 : i64, scratch_operands = 0 : i64, tpu.core_type = #tpu.core_type<tc>, window_params = [{transform_indices = @transform_0, window_bounds = array<i64: 1, 16, 16, 128>}, {pipeline_mode = #tpu.pipeline_mode<synchronous>, transform_indices = @transform_1, window_bounds = array<i64: 1, 128>}, {pipeline_mode = #tpu.pipeline_mode<synchronous>, transform_indices = @transform_2, window_bounds = array<i64: 1, 128>}, {transform_indices = @transform_3, window_bounds = array<i64: 1, 18, 18, 128>}]} {
    %c0 = arith.constant 0 : index
    %c0_0 = arith.constant 0 : index
    %c0_1 = arith.constant 0 : index
    %c0_2 = arith.constant 0 : index
    %0 = vector.load %arg2[%c0, %c0_0, %c0_1, %c0_2] : memref<1x16x16x128xbf16, #tpu.memory_space<vmem>>, vector<1x16x16x128xbf16>
    %1 = vector.shape_cast %0 : vector<1x16x16x128xbf16> to vector<16x16x128xbf16>
    %2 = arith.extf %1 : vector<16x16x128xbf16> to vector<16x16x128xf32>
    %c0_3 = arith.constant 0 : index
    %c0_4 = arith.constant 0 : index
    %3 = vector.load %arg3[%c0_3, %c0_4] : memref<1x128xf32, #tpu.memory_space<vmem>>, vector<1x128xf32>
    %4 = vector.shape_cast %3 : vector<1x128xf32> to vector<128xf32>
    %5 = vector.shape_cast %4 : vector<128xf32> to vector<1x1x128xf32>
    %6 = vector.broadcast %5 : vector<1x1x128xf32> to vector<16x16x128xf32>
    %7 = arith.mulf %2, %6 : vector<16x16x128xf32>
    %c0_5 = arith.constant 0 : index
    %c0_6 = arith.constant 0 : index
    %8 = vector.load %arg4[%c0_5, %c0_6] : memref<1x128xf32, #tpu.memory_space<vmem>>, vector<1x128xf32>
    %9 = vector.shape_cast %8 : vector<1x128xf32> to vector<128xf32>
    %10 = vector.shape_cast %9 : vector<128xf32> to vector<1x1x128xf32>
    %11 = vector.broadcast %10 : vector<1x1x128xf32> to vector<16x16x128xf32>
    %12 = arith.addf %7, %11 : vector<16x16x128xf32>
    %cst = arith.constant 0.000000e+00 : f32
    %13 = vector.broadcast %cst : f32 to vector<16x16x128xf32>
    %14 = arith.maximumf %12, %13 : vector<16x16x128xf32>
    %cst_7 = arith.constant 0.000000e+00 : f32
    %15 = vector.broadcast %cst_7 : f32 to vector<16x1x128xf32>
    %16 = tpu.concatenate %15, %14, %15 in 1 : vector<16x1x128xf32>, vector<16x16x128xf32>, vector<16x1x128xf32> -> vector<16x18x128xf32>
    %17 = arith.truncf %16 : vector<16x18x128xf32> to vector<16x18x128xbf16>
    %c16_i32 = arith.constant 16 : i32
    %18 = arith.muli %arg1, %c16_i32 : i32
    %c1_i32 = arith.constant 1 : i32
    %19 = arith.addi %c1_i32, %18 : i32
    %c0_8 = arith.constant 0 : index
    %20 = arith.index_cast %19 : i32 to index
    %c0_9 = arith.constant 0 : index
    %c0_10 = arith.constant 0 : index
    %21 = vector.load %arg5[%c0_8, %20, %c0_9, %c0_10] : memref<1x18x18x128xbf16, #tpu.memory_space<vmem>>, vector<1x16x18x128xbf16>
    %22 = vector.shape_cast %21 : vector<1x16x18x128xbf16> to vector<16x18x128xbf16>
    %23 = vector.shape_cast %17 : vector<16x18x128xbf16> to vector<1x16x18x128xbf16>
    tpu.vector_store %arg5[%c0_8, %20, %c0_9, %c0_10], %23 {strides = array<i32>} : memref<1x18x18x128xbf16, #tpu.memory_space<vmem>>, vector<1x16x18x128xbf16>,
    %c0_i32 = arith.constant 0 : i32
    %24 = arith.cmpi eq, %arg1, %c0_i32 : i32
    %25 = arith.extui %24 : i1 to i32
    %c0_i32_11 = arith.constant 0 : i32
    %26 = arith.cmpi ne, %25, %c0_i32_11 : i32
    scf.if %26 {
      %cst_14 = arith.constant 0.000000e+00 : bf16
      %30 = vector.broadcast %cst_14 : bf16 to vector<1x18x128xbf16>
      %c0_15 = arith.constant 0 : index
      %c0_16 = arith.constant 0 : index
      %c0_17 = arith.constant 0 : index
      %c0_18 = arith.constant 0 : index
      %31 = vector.load %arg5[%c0_15, %c0_16, %c0_17, %c0_18] : memref<1x18x18x128xbf16, #tpu.memory_space<vmem>>, vector<1x1x18x128xbf16>
      %32 = vector.shape_cast %31 : vector<1x1x18x128xbf16> to vector<1x18x128xbf16>
      %33 = vector.shape_cast %30 : vector<1x18x128xbf16> to vector<1x1x18x128xbf16>
      tpu.vector_store %arg5[%c0_15, %c0_16, %c0_17, %c0_18], %33 {strides = array<i32>} : memref<1x18x18x128xbf16, #tpu.memory_space<vmem>>, vector<1x1x18x128xbf16>,
    } else {
    }
    %c0_i32_12 = arith.constant 0 : i32
    %27 = arith.cmpi eq, %arg1, %c0_i32_12 : i32
    %28 = arith.extui %27 : i1 to i32
    %c0_i32_13 = arith.constant 0 : i32
    %29 = arith.cmpi ne, %28, %c0_i32_13 : i32
    scf.if %29 {
      %cst_14 = arith.constant 0.000000e+00 : bf16
      %30 = vector.broadcast %cst_14 : bf16 to vector<1x18x128xbf16>
      %c0_15 = arith.constant 0 : index
      %c17 = arith.constant 17 : index
      %c0_16 = arith.constant 0 : index
      %c0_17 = arith.constant 0 : index
      %31 = vector.load %arg5[%c0_15, %c17, %c0_16, %c0_17] : memref<1x18x18x128xbf16, #tpu.memory_space<vmem>>, vector<1x1x18x128xbf16>
      %32 = vector.shape_cast %31 : vector<1x1x18x128xbf16> to vector<1x18x128xbf16>
      %33 = vector.shape_cast %30 : vector<1x18x128xbf16> to vector<1x1x18x128xbf16>
      tpu.vector_store %arg5[%c0_15, %c17, %c0_16, %c0_17], %33 {strides = array<i32>} : memref<1x18x18x128xbf16, #tpu.memory_space<vmem>>, vector<1x1x18x128xbf16>,
    } else {
    }
    return
  }
  func.func @transform_0(%arg0: i32, %arg1: i32) -> (i32, i32, i32, i32) {
    %c0_i32 = arith.constant 0 : i32
    %c0_i32_0 = arith.constant 0 : i32
    %c0_i32_1 = arith.constant 0 : i32
    return %arg0, %arg1, %c0_i32, %c0_i32_0 : i32, i32, i32, i32
  }
  func.func @transform_1(%arg0: i32, %arg1: i32) -> (i32, i32) {
    %c0_i32 = arith.constant 0 : i32
    %c0_i32_0 = arith.constant 0 : i32
    %c0_i32_1 = arith.constant 0 : i32
    return %c0_i32, %c0_i32_0 : i32, i32
  }
  func.func @transform_2(%arg0: i32, %arg1: i32) -> (i32, i32) {
    %c0_i32 = arith.constant 0 : i32
    %c0_i32_0 = arith.constant 0 : i32
    %c0_i32_1 = arith.constant 0 : i32
    return %c0_i32, %c0_i32_0 : i32, i32
  }
  func.func @transform_3(%arg0: i32, %arg1: i32) -> (i32, i32, i32, i32) {
    %c0_i32 = arith.constant 0 : i32
    %c0_i32_0 = arith.constant 0 : i32
    %c0_i32_1 = arith.constant 0 : i32
    %c0_i32_2 = arith.constant 0 : i32
    return %arg0, %c0_i32, %c0_i32_0, %c0_i32_1 : i32, i32, i32, i32
  }
}

module attributes {stable_mosaic.version = 11 : i64} {
  func.func @_conv_kernel(%arg0: i32, %arg1: i32, %arg2: memref<1x18x18x128xbf16, #tpu.memory_space<vmem>>, %arg3: memref<3x384x128xbf16, #tpu.memory_space<vmem>>, %arg4: memref<1x128xf32, #tpu.memory_space<vmem>>, %arg5: memref<1x16x16x128xbf16, #tpu.memory_space<vmem>>, %arg6: memref<1x1x2x128xf32, #tpu.memory_space<vmem>>) attributes {dimension_semantics = [#tpu.dimension_semantics<parallel>, #tpu.dimension_semantics<parallel>], iteration_bounds = array<i64: 2, 1>, scalar_prefetch = 0 : i64, scratch_operands = 0 : i64, tpu.core_type = #tpu.core_type<tc>, window_params = [{transform_indices = @transform_0, window_bounds = array<i64: 1, 18, 18, 128>}, {pipeline_mode = #tpu.pipeline_mode<synchronous>, transform_indices = @transform_1, window_bounds = array<i64: 3, 384, 128>}, {pipeline_mode = #tpu.pipeline_mode<synchronous>, transform_indices = @transform_2, window_bounds = array<i64: 1, 128>}, {transform_indices = @transform_3, window_bounds = array<i64: 1, 16, 16, 128>}, {transform_indices = @transform_4, window_bounds = array<i64: 1, 1, 2, 128>}]} {
    %c16_i32 = arith.constant 16 : i32
    %0 = arith.muli %arg1, %c16_i32 : i32
    %1 = tpu.assume_multiple %0, 16 : i32
    %cst = arith.constant 0.000000e+00 : f32
    %2 = vector.broadcast %cst : f32 to vector<256x128xf32>
    %c0_i32 = arith.constant 0 : i32
    %3 = arith.addi %1, %c0_i32 : i32
    %c0 = arith.constant 0 : index
    %4 = arith.index_cast %3 : i32 to index
    %c0_0 = arith.constant 0 : index
    %c0_1 = arith.constant 0 : index
    %5 = vector.load %arg2[%c0, %4, %c0_0, %c0_1] : memref<1x18x18x128xbf16, #tpu.memory_space<vmem>>, vector<1x16x16x128xbf16>
    %6 = vector.shape_cast %5 : vector<1x16x16x128xbf16> to vector<16x16x128xbf16>
    %c0_i32_2 = arith.constant 0 : i32
    %7 = arith.addi %1, %c0_i32_2 : i32
    %c0_3 = arith.constant 0 : index
    %8 = arith.index_cast %7 : i32 to index
    %c1 = arith.constant 1 : index
    %c0_4 = arith.constant 0 : index
    %9 = vector.load %arg2[%c0_3, %8, %c1, %c0_4] : memref<1x18x18x128xbf16, #tpu.memory_space<vmem>>, vector<1x16x16x128xbf16>
    %10 = vector.shape_cast %9 : vector<1x16x16x128xbf16> to vector<16x16x128xbf16>
    %c0_i32_5 = arith.constant 0 : i32
    %11 = arith.addi %1, %c0_i32_5 : i32
    %c0_6 = arith.constant 0 : index
    %12 = arith.index_cast %11 : i32 to index
    %c2 = arith.constant 2 : index
    %c0_7 = arith.constant 0 : index
    %13 = vector.load %arg2[%c0_6, %12, %c2, %c0_7] : memref<1x18x18x128xbf16, #tpu.memory_space<vmem>>, vector<1x16x16x128xbf16>
    %14 = vector.shape_cast %13 : vector<1x16x16x128xbf16> to vector<16x16x128xbf16>
    %15 = tpu.concatenate %6, %10, %14 in 2 : vector<16x16x128xbf16>, vector<16x16x128xbf16>, vector<16x16x128xbf16> -> vector<16x16x384xbf16>
    %16 = vector.shape_cast %15 : vector<16x16x384xbf16> to vector<256x384xbf16>
    %c0_8 = arith.constant 0 : index
    %c0_9 = arith.constant 0 : index
    %c0_10 = arith.constant 0 : index
    %17 = vector.load %arg3[%c0_8, %c0_9, %c0_10] : memref<3x384x128xbf16, #tpu.memory_space<vmem>>, vector<1x384x128xbf16>
    %18 = vector.shape_cast %17 : vector<1x384x128xbf16> to vector<384x128xbf16>
    %cst_11 = arith.constant dense<0.000000e+00> : vector<256x128xf32>
    %19 = tpu.matmul %16, %18, %cst_11 {dimension_numbers = #tpu.dot_dimension_numbers<[1], [0], [0], [1], [0, 0, 1, 1], [], []>} : vector<256x384xbf16>, vector<384x128xbf16>, vector<256x128xf32> -> vector<256x128xf32>
    %20 = arith.addf %2, %19 : vector<256x128xf32>
    %c1_i32 = arith.constant 1 : i32
    %21 = arith.addi %1, %c1_i32 : i32
    %c0_12 = arith.constant 0 : index
    %22 = arith.index_cast %21 : i32 to index
    %c0_13 = arith.constant 0 : index
    %c0_14 = arith.constant 0 : index
    %23 = vector.load %arg2[%c0_12, %22, %c0_13, %c0_14] : memref<1x18x18x128xbf16, #tpu.memory_space<vmem>>, vector<1x16x16x128xbf16>
    %24 = vector.shape_cast %23 : vector<1x16x16x128xbf16> to vector<16x16x128xbf16>
    %c1_i32_15 = arith.constant 1 : i32
    %25 = arith.addi %1, %c1_i32_15 : i32
    %c0_16 = arith.constant 0 : index
    %26 = arith.index_cast %25 : i32 to index
    %c1_17 = arith.constant 1 : index
    %c0_18 = arith.constant 0 : index
    %27 = vector.load %arg2[%c0_16, %26, %c1_17, %c0_18] : memref<1x18x18x128xbf16, #tpu.memory_space<vmem>>, vector<1x16x16x128xbf16>
    %28 = vector.shape_cast %27 : vector<1x16x16x128xbf16> to vector<16x16x128xbf16>
    %c1_i32_19 = arith.constant 1 : i32
    %29 = arith.addi %1, %c1_i32_19 : i32
    %c0_20 = arith.constant 0 : index
    %30 = arith.index_cast %29 : i32 to index
    %c2_21 = arith.constant 2 : index
    %c0_22 = arith.constant 0 : index
    %31 = vector.load %arg2[%c0_20, %30, %c2_21, %c0_22] : memref<1x18x18x128xbf16, #tpu.memory_space<vmem>>, vector<1x16x16x128xbf16>
    %32 = vector.shape_cast %31 : vector<1x16x16x128xbf16> to vector<16x16x128xbf16>
    %33 = tpu.concatenate %24, %28, %32 in 2 : vector<16x16x128xbf16>, vector<16x16x128xbf16>, vector<16x16x128xbf16> -> vector<16x16x384xbf16>
    %34 = vector.shape_cast %33 : vector<16x16x384xbf16> to vector<256x384xbf16>
    %c1_23 = arith.constant 1 : index
    %c0_24 = arith.constant 0 : index
    %c0_25 = arith.constant 0 : index
    %35 = vector.load %arg3[%c1_23, %c0_24, %c0_25] : memref<3x384x128xbf16, #tpu.memory_space<vmem>>, vector<1x384x128xbf16>
    %36 = vector.shape_cast %35 : vector<1x384x128xbf16> to vector<384x128xbf16>
    %cst_26 = arith.constant dense<0.000000e+00> : vector<256x128xf32>
    %37 = tpu.matmul %34, %36, %cst_26 {dimension_numbers = #tpu.dot_dimension_numbers<[1], [0], [0], [1], [0, 0, 1, 1], [], []>} : vector<256x384xbf16>, vector<384x128xbf16>, vector<256x128xf32> -> vector<256x128xf32>
    %38 = arith.addf %20, %37 : vector<256x128xf32>
    %c2_i32 = arith.constant 2 : i32
    %39 = arith.addi %1, %c2_i32 : i32
    %c0_27 = arith.constant 0 : index
    %40 = arith.index_cast %39 : i32 to index
    %c0_28 = arith.constant 0 : index
    %c0_29 = arith.constant 0 : index
    %41 = vector.load %arg2[%c0_27, %40, %c0_28, %c0_29] : memref<1x18x18x128xbf16, #tpu.memory_space<vmem>>, vector<1x16x16x128xbf16>
    %42 = vector.shape_cast %41 : vector<1x16x16x128xbf16> to vector<16x16x128xbf16>
    %c2_i32_30 = arith.constant 2 : i32
    %43 = arith.addi %1, %c2_i32_30 : i32
    %c0_31 = arith.constant 0 : index
    %44 = arith.index_cast %43 : i32 to index
    %c1_32 = arith.constant 1 : index
    %c0_33 = arith.constant 0 : index
    %45 = vector.load %arg2[%c0_31, %44, %c1_32, %c0_33] : memref<1x18x18x128xbf16, #tpu.memory_space<vmem>>, vector<1x16x16x128xbf16>
    %46 = vector.shape_cast %45 : vector<1x16x16x128xbf16> to vector<16x16x128xbf16>
    %c2_i32_34 = arith.constant 2 : i32
    %47 = arith.addi %1, %c2_i32_34 : i32
    %c0_35 = arith.constant 0 : index
    %48 = arith.index_cast %47 : i32 to index
    %c2_36 = arith.constant 2 : index
    %c0_37 = arith.constant 0 : index
    %49 = vector.load %arg2[%c0_35, %48, %c2_36, %c0_37] : memref<1x18x18x128xbf16, #tpu.memory_space<vmem>>, vector<1x16x16x128xbf16>
    %50 = vector.shape_cast %49 : vector<1x16x16x128xbf16> to vector<16x16x128xbf16>
    %51 = tpu.concatenate %42, %46, %50 in 2 : vector<16x16x128xbf16>, vector<16x16x128xbf16>, vector<16x16x128xbf16> -> vector<16x16x384xbf16>
    %52 = vector.shape_cast %51 : vector<16x16x384xbf16> to vector<256x384xbf16>
    %c2_38 = arith.constant 2 : index
    %c0_39 = arith.constant 0 : index
    %c0_40 = arith.constant 0 : index
    %53 = vector.load %arg3[%c2_38, %c0_39, %c0_40] : memref<3x384x128xbf16, #tpu.memory_space<vmem>>, vector<1x384x128xbf16>
    %54 = vector.shape_cast %53 : vector<1x384x128xbf16> to vector<384x128xbf16>
    %cst_41 = arith.constant dense<0.000000e+00> : vector<256x128xf32>
    %55 = tpu.matmul %52, %54, %cst_41 {dimension_numbers = #tpu.dot_dimension_numbers<[1], [0], [0], [1], [0, 0, 1, 1], [], []>} : vector<256x384xbf16>, vector<384x128xbf16>, vector<256x128xf32> -> vector<256x128xf32>
    %56 = arith.addf %38, %55 : vector<256x128xf32>
    %c0_42 = arith.constant 0 : index
    %c0_43 = arith.constant 0 : index
    %57 = vector.load %arg4[%c0_42, %c0_43] : memref<1x128xf32, #tpu.memory_space<vmem>>, vector<1x128xf32>
    %58 = vector.shape_cast %57 : vector<1x128xf32> to vector<128xf32>
    %59 = vector.shape_cast %58 : vector<128xf32> to vector<1x128xf32>
    %60 = vector.broadcast %59 : vector<1x128xf32> to vector<256x128xf32>
    %61 = arith.addf %56, %60 : vector<256x128xf32>
    %62 = vector.shape_cast %61 : vector<256x128xf32> to vector<16x16x128xf32>
    %63 = arith.truncf %62 : vector<16x16x128xf32> to vector<16x16x128xbf16>
    %c0_44 = arith.constant 0 : index
    %c0_45 = arith.constant 0 : index
    %c0_46 = arith.constant 0 : index
    %c0_47 = arith.constant 0 : index
    %64 = vector.load %arg5[%c0_44, %c0_45, %c0_46, %c0_47] : memref<1x16x16x128xbf16, #tpu.memory_space<vmem>>, vector<1x16x16x128xbf16>
    %65 = vector.shape_cast %64 : vector<1x16x16x128xbf16> to vector<16x16x128xbf16>
    %66 = vector.shape_cast %63 : vector<16x16x128xbf16> to vector<1x16x16x128xbf16>
    tpu.vector_store %arg5[%c0_44, %c0_45, %c0_46, %c0_47], %66 {strides = array<i32>} : memref<1x16x16x128xbf16, #tpu.memory_space<vmem>>, vector<1x16x16x128xbf16>,
    %cst_48 = arith.constant dense<0.000000e+00> : vector<128xf32>
    %67 = vector.multi_reduction <add>, %61, %cst_48 [0] : vector<256x128xf32> to vector<128xf32>
    %68 = vector.shape_cast %67 : vector<128xf32> to vector<1x128xf32>
    %69 = arith.mulf %61, %61 : vector<256x128xf32>
    %cst_49 = arith.constant dense<0.000000e+00> : vector<128xf32>
    %70 = vector.multi_reduction <add>, %69, %cst_49 [0] : vector<256x128xf32> to vector<128xf32>
    %71 = vector.shape_cast %70 : vector<128xf32> to vector<1x128xf32>
    %72 = tpu.concatenate %68, %71 in 0 : vector<1x128xf32>, vector<1x128xf32> -> vector<2x128xf32>
    %c0_50 = arith.constant 0 : index
    %c0_51 = arith.constant 0 : index
    %c0_52 = arith.constant 0 : index
    %c0_53 = arith.constant 0 : index
    %73 = vector.load %arg6[%c0_50, %c0_51, %c0_52, %c0_53] : memref<1x1x2x128xf32, #tpu.memory_space<vmem>>, vector<1x1x2x128xf32>
    %74 = vector.shape_cast %73 : vector<1x1x2x128xf32> to vector<2x128xf32>
    %75 = vector.shape_cast %72 : vector<2x128xf32> to vector<1x1x2x128xf32>
    tpu.vector_store %arg6[%c0_50, %c0_51, %c0_52, %c0_53], %75 {strides = array<i32>} : memref<1x1x2x128xf32, #tpu.memory_space<vmem>>, vector<1x1x2x128xf32>,
    return
  }
  func.func @transform_0(%arg0: i32, %arg1: i32) -> (i32, i32, i32, i32) {
    %c0_i32 = arith.constant 0 : i32
    %c0_i32_0 = arith.constant 0 : i32
    %c0_i32_1 = arith.constant 0 : i32
    %c0_i32_2 = arith.constant 0 : i32
    return %arg0, %c0_i32, %c0_i32_0, %c0_i32_1 : i32, i32, i32, i32
  }
  func.func @transform_1(%arg0: i32, %arg1: i32) -> (i32, i32, i32) {
    %c0_i32 = arith.constant 0 : i32
    %c0_i32_0 = arith.constant 0 : i32
    %c0_i32_1 = arith.constant 0 : i32
    %c0_i32_2 = arith.constant 0 : i32
    return %c0_i32, %c0_i32_0, %c0_i32_1 : i32, i32, i32
  }
  func.func @transform_2(%arg0: i32, %arg1: i32) -> (i32, i32) {
    %c0_i32 = arith.constant 0 : i32
    %c0_i32_0 = arith.constant 0 : i32
    %c0_i32_1 = arith.constant 0 : i32
    return %c0_i32, %c0_i32_0 : i32, i32
  }
  func.func @transform_3(%arg0: i32, %arg1: i32) -> (i32, i32, i32, i32) {
    %c0_i32 = arith.constant 0 : i32
    %c0_i32_0 = arith.constant 0 : i32
    %c0_i32_1 = arith.constant 0 : i32
    return %arg0, %arg1, %c0_i32, %c0_i32_0 : i32, i32, i32, i32
  }
  func.func @transform_4(%arg0: i32, %arg1: i32) -> (i32, i32, i32, i32) {
    %c0_i32 = arith.constant 0 : i32
    %c0_i32_0 = arith.constant 0 : i32
    %c0_i32_1 = arith.constant 0 : i32
    return %arg0, %arg1, %c0_i32, %c0_i32_0 : i32, i32, i32, i32
  }
}

</mosaic_0001>

<bundles_post_ra>
// kernel: decoder_forward.7
= control target key start
LH: loop header
LB: loop body
LE: loop exit
PB: predicated region body
PF: predicated region fallthrough
CT: control target
= control target key end

     0   :  { %s982_s12 = smov 0   ;;  %s984_s13 = smov 0   ;;  %s1207_s0 = inlined_call_operand.vmem [shape: bf16[2,16,16,128], index: 0, kind: input, shape index: {}]   ;;  %s1208_s1 = inlined_call_operand.vmem [shape: f32[1,128], index: 1, kind: input, shape index: {}]   ;;  %s1209_s2 = inlined_call_operand.vmem [shape: f32[1,128], index: 2, kind: input, shape index: {}]   ;;  %s1210_s3 = inlined_call_operand.vmem [shape: bf16[2,18,18,128], index: 3, kind: output, shape index: {}]  }
   0x1   :  { %s986_s14 = smov 0  }
   0x2 LB: > { %s25_s15 = sadd.s32 1, %s955_s13  ;;  %p724_p0 = scmp.ge.s32.totalorder %s959_s14, 1  ;;  %s959_s14 = sphi %s986_s14, %s13_s14   ;;  %s955_s13 = sphi %s984_s13, %s1212_s13   ;;  %s951_s12 = sphi %s982_s12, %s1211_s12  }
   0x3   : > { %p27_p1 = scmp.ge.s32.totalorder %s25_s15, 2  ;;  %p157_p2 = scmp.lt.s32.totalorder %s959_s14, 3 }
   0x5   : > { %s1214_s15 = smov (%p27_p1, %s25_s15), 0  ;;  %p158_p3 = pnand %p724_p0, %p157_p2 }
   0x6   : > { %p187_p4 = scmp.lt.s32.totalorder (!%p158_p3), %s951_s12, 1 }
   0x7   : > { %161 = sbr.rel (%p158_p3) target bundleno = 89 (0x59), region = 32 }
   0xc   : > { %s1216_s12 = smov (!%p187_p4, %s951_s12), 1  ;;  %v1011_v0 = vld [vmem:[%s1208_s1] ss:$0 sm:$0xff]  ;;  %vm403_vm0 = vcmask 1040384  }
   0xd   : > { %s781_s16 = sshll.u32 %s1216_s12, 7  ;;  %v1019_v6 = vld [vmem:[%s1209_s2] ss:$0 sm:$0xff]  ;;  %s909_s24 = smul.u32 216, %s1216_s12 }
   0xe   : > { %s1006_s19 = scalar_lea.vmem %s1207_s0, %s781_s16 }
   0xf   : > { %v783_v1 = vld [vmem:[%s1006_s19] sm:$0xff]   ;;  %v886_v2 = vld [vmem:[%s1006_s19 + $0x8] sm:$0xff]   ;;  %v887_v3 = vld [vmem:[%s1006_s19 + $0x10] sm:$0xff]   ;;  %s1042_s27 = scalar_lea.vmem %s1210_s3, %s909_s24 }
  0x10   : > { %v784_v4 = vunpack.c.l.bf16 %v783_v1  ;;  %v785_v5 = vunpack.c.h.bf16 %v783_v1  ;;  %v788_v7 = vunpack.c.l.bf16 %v886_v2  ;;  %v789_v8 = vunpack.c.h.bf16 %v886_v2  ;;  %v888_v9 = vld [vmem:[%s1006_s19 + $0x18] sm:$0xff]   ;;  %v889_v58 = vld [vmem:[%s1006_s19 + $0x20] sm:$0xff]   ;;  %v890_v63 = vld [vmem:[%s1006_s19 + $0x28] sm:$0xff]  }
  0x11   : > { %v792_v10 = vunpack.c.l.bf16 %v887_v3  ;;  %v793_v11 = vunpack.c.h.bf16 %v887_v3  ;;  %v796_v12 = vunpack.c.l.bf16 %v888_v9  ;;  %v797_v13 = vunpack.c.h.bf16 %v888_v9  ;;  %v891_v1 = vld [vmem:[%s1006_s19 + $0x30] sm:$0xff]  }
  0x12   : > { %v271_v14 = vmul.f32 %v1011_v0, %v784_v4  ;;  %v272_v15 = vmul.f32 %v1011_v0, %v785_v5  ;;  %v273_v16 = vmul.f32 %v1011_v0, %v788_v7  ;;  %v274_v17 = vmul.f32 %v1011_v0, %v789_v8  ;;  %v892_v7 = vld [vmem:[%s1006_s19 + $0x38] sm:$0xff]  }
  0x13   : > { %v275_v18 = vmul.f32 %v1011_v0, %v792_v10  ;;  %v276_v19 = vmul.f32 %v1011_v0, %v793_v11  ;;  %v277_v20 = vmul.f32 %v1011_v0, %v796_v12  ;;  %v278_v21 = vmul.f32 %v1011_v0, %v797_v13 }
  0x14   : > { %v307_v22 = vadd.f32 %v1019_v6, %v271_v14  ;;  %v308_v23 = vadd.f32 %v1019_v6, %v272_v15  ;;  %v309_v24 = vadd.f32 %v1019_v6, %v273_v16  ;;  %v310_v25 = vadd.f32 %v1019_v6, %v274_v17 }
  0x15   : > { %v311_v26 = vadd.f32 %v1019_v6, %v275_v18  ;;  %v312_v27 = vadd.f32 %v1019_v6, %v276_v19  ;;  %v313_v28 = vadd.f32 %v1019_v6, %v277_v20  ;;  %v314_v29 = vadd.f32 %v1019_v6, %v278_v21 }
  0x16   : > { %v339_v30 = vmax.f32 %v307_v22, 0.0  ;;  %v340_v31 = vmax.f32 %v308_v23, 0.0  ;;  %v341_v32 = vmax.f32 %v309_v24, 0.0  ;;  %v342_v33 = vmax.f32 %v310_v25, 0.0 }
  0x17   : > { %v343_v34 = vmax.f32 %v311_v26, 0.0  ;;  %v344_v35 = vmax.f32 %v312_v27, 0.0  ;;  %v345_v36 = vmax.f32 %v313_v28, 0.0  ;;  %v346_v37 = vmax.f32 %v314_v29, 0.0 }
  0x18   : > { %v404_v38 = vrot.slane %v339_v30, 7  ;;  %v405_v39 = vrot.slane %v340_v31, 7  ;;  %v407_v40 = vrot.slane %v341_v32, 7  ;;  %v408_v41 = vrot.slane %v342_v33, 7 }
  0x19   : > { %v410_v42 = vrot.slane %v343_v34, 7  ;;  %v411_v43 = vrot.slane %v344_v35, 7  ;;  %v413_v44 = vrot.slane %v345_v36, 7  ;;  %v414_v45 = vrot.slane %v346_v37, 7 }
  0x1a   : > { %v500_v46 = vsel %vm403_vm0, 0.0, %v404_v38  ;;  %v406_v47 = vsel %vm403_vm0, %v404_v38, %v405_v39  ;;  %v516_v48 = vsel %vm403_vm0, %v405_v39, 0.0  ;;  %v409_v49 = vsel %vm403_vm0, %v407_v40, %v408_v41 }
  0x1b   : > { %v532_v50 = vpack.c.bf16 %v500_v46, %v500_v46  ;;  %v533_v51 = vpack.c.bf16 %v406_v47, %v406_v47  ;;  %v534_v52 = vpack.c.bf16 %v516_v48, %v516_v48  ;;  %v501_v53 = vsel %vm403_vm0, 0.0, %v407_v40 }
  0x1c   : > { %v849_v54 = vpack.c.bf16 %v409_v49, %v501_v53  ;;  %v517_v55 = vsel %vm403_vm0, %v408_v41, 0.0  ;;  %v502_v56 = vsel %vm403_vm0, 0.0, %v410_v42  ;;  %v412_v57 = vsel %vm403_vm0, %v410_v42, %v411_v43 }
  0x1d   : > { %728 = vst [vmem:[%s1042_s27 + $0xc] sm:$0xf] %v532_v50  ;;  %v537_v59 = vpack.c.bf16 %v517_v55, %v517_v55  ;;  %v538_v60 = vpack.c.bf16 %v502_v56, %v502_v56  ;;  %v539_v61 = vpack.c.bf16 %v412_v57, %v412_v57  ;;  %v518_v62 = vsel %vm403_vm0, %v411_v43, 0.0  ;;  %v893_v56 = vld [vmem:[%s1006_s19 + $0x40] sm:$0xff]  }
  0x1e   : > { %729 = vst [vmem:[%s1042_s27 + $0x10] sm:$0xf] %v533_v51  ;;  %v540_v2 = vpack.c.bf16 %v518_v62, %v518_v62  ;;  %v415_v3 = vsel %vm403_vm0, %v413_v44, %v414_v45  ;;  %v503_v4 = vsel %vm403_vm0, 0.0, %v413_v44  ;;  %v519_v5 = vsel %vm403_vm0, %v414_v45, 0.0 }
  0x1f   : > { %730 = vst [vmem:[%s1042_s27 + $0x14] sm:$0x1] %v534_v52  ;;  %v854_v8 = vpack.c.bf16 %v415_v3, %v503_v4  ;;  %v543_v9 = vpack.c.bf16 %v519_v5, %v519_v5  ;;  %v800_v10 = vunpack.c.l.bf16 %v889_v58  ;;  %v801_v11 = vunpack.c.h.bf16 %v889_v58  ;;  %v895_v3 = vld [vmem:[%s1006_s19 + $0x50] sm:$0xff]  }
  0x20   : > { %901 = vst [vmem:[%s1042_s27 + $0x18] sm:$0xff] %v849_v54   ;;  %v804_v12 = vunpack.c.l.bf16 %v890_v63  ;;  %v805_v13 = vunpack.c.h.bf16 %v890_v63  ;;  %v808_v14 = vunpack.c.l.bf16 %v891_v1  ;;  %v809_v15 = vunpack.c.h.bf16 %v891_v1 }
  0x21   : > { %733 = vst [vmem:[%s1042_s27 + $0x20] sm:$0x1] %v537_v59  ;;  %v279_v16 = vmul.f32 %v1011_v0, %v800_v10  ;;  %v280_v17 = vmul.f32 %v1011_v0, %v801_v11  ;;  %v812_v18 = vunpack.c.l.bf16 %v892_v7  ;;  %v813_v19 = vunpack.c.h.bf16 %v892_v7 }
  0x22   : > { %734 = vst [vmem:[%s1042_s27 + $0x24] sm:$0xf] %v538_v60  ;;  %v281_v20 = vmul.f32 %v1011_v0, %v804_v12  ;;  %v282_v21 = vmul.f32 %v1011_v0, %v805_v13  ;;  %v283_v22 = vmul.f32 %v1011_v0, %v808_v14  ;;  %v284_v23 = vmul.f32 %v1011_v0, %v809_v15 }
  0x23   : > { %735 = vst [vmem:[%s1042_s27 + $0x28] sm:$0xf] %v539_v61  ;;  %v315_v24 = vadd.f32 %v1019_v6, %v279_v16  ;;  %v316_v25 = vadd.f32 %v1019_v6, %v280_v17  ;;  %v285_v26 = vmul.f32 %v1011_v0, %v812_v18  ;;  %v286_v27 = vmul.f32 %v1011_v0, %v813_v19  ;;  %v894_v61 = vld [vmem:[%s1006_s19 + $0x48] sm:$0xff]   ;;  %v896_v17 = vld [vmem:[%s1006_s19 + $0x58] sm:$0xff]  }
  0x24   : > { %736 = vst [vmem:[%s1042_s27 + $0x2c] sm:$0x1] %v540_v2  ;;  %v317_v28 = vadd.f32 %v1019_v6, %v281_v20  ;;  %v318_v29 = vadd.f32 %v1019_v6, %v282_v21  ;;  %v319_v30 = vadd.f32 %v1019_v6, %v283_v22  ;;  %v320_v31 = vadd.f32 %v1019_v6, %v284_v23 }
  0x25   : > { %902 = vst [vmem:[%s1042_s27 + $0x30] sm:$0xff] %v854_v8   ;;  %v347_v32 = vmax.f32 %v315_v24, 0.0  ;;  %v348_v33 = vmax.f32 %v316_v25, 0.0  ;;  %v321_v34 = vadd.f32 %v1019_v6, %v285_v26  ;;  %v322_v35 = vadd.f32 %v1019_v6, %v286_v27 }
  0x26   : > { %739 = vst [vmem:[%s1042_s27 + $0x38] sm:$0x1] %v543_v9  ;;  %v349_v36 = vmax.f32 %v317_v28, 0.0  ;;  %v350_v37 = vmax.f32 %v318_v29, 0.0  ;;  %v351_v38 = vmax.f32 %v319_v30, 0.0  ;;  %v352_v39 = vmax.f32 %v320_v31, 0.0 }
  0x27   : > { %v416_v40 = vrot.slane %v347_v32, 7  ;;  %v417_v41 = vrot.slane %v348_v33, 7  ;;  %v353_v42 = vmax.f32 %v321_v34, 0.0  ;;  %v354_v43 = vmax.f32 %v322_v35, 0.0 }
  0x28   : > { %v419_v44 = vrot.slane %v349_v36, 7  ;;  %v420_v45 = vrot.slane %v350_v37, 7  ;;  %v422_v46 = vrot.slane %v351_v38, 7  ;;  %v423_v47 = vrot.slane %v352_v39, 7 }
  0x29   : > { %v504_v48 = vsel %vm403_vm0, 0.0, %v416_v40  ;;  %v418_v49 = vsel %vm403_vm0, %v416_v40, %v417_v41  ;;  %v520_v50 = vsel %vm403_vm0, %v417_v41, 0.0  ;;  %v425_v51 = vrot.slane %v353_v42, 7 }
  0x2a   : > { %v544_v52 = vpack.c.bf16 %v504_v48, %v504_v48  ;;  %v545_v53 = vpack.c.bf16 %v418_v49, %v418_v49  ;;  %v546_v54 = vpack.c.bf16 %v520_v50, %v520_v50  ;;  %v421_v55 = vsel %vm403_vm0, %v419_v44, %v420_v45 }
  0x2b   : > { %v505_v57 = vsel %vm403_vm0, 0.0, %v419_v44  ;;  %v521_v58 = vsel %vm403_vm0, %v420_v45, 0.0  ;;  %v506_v59 = vsel %vm403_vm0, 0.0, %v422_v46  ;;  %v424_v60 = vsel %vm403_vm0, %v422_v46, %v423_v47 }
  0x2c   : > { %740 = vst [vmem:[%s1042_s27 + $0x3c] sm:$0xf] %v544_v52  ;;  %v859_v62 = vpack.c.bf16 %v421_v55, %v505_v57  ;;  %v549_v63 = vpack.c.bf16 %v521_v58, %v521_v58  ;;  %v550_v1 = vpack.c.bf16 %v506_v59, %v506_v59  ;;  %v551_v2 = vpack.c.bf16 %v424_v60, %v424_v60  ;;  %v898_v59 = vld [vmem:[%s1006_s19 + $0x68] sm:$0xff]  }
  0x2d   : > { %741 = vst [vmem:[%s1042_s27 + $0x40] sm:$0xf] %v545_v53  ;;  %v522_v4 = vsel %vm403_vm0, %v423_v47, 0.0  ;;  %v426_v5 = vrot.slane %v354_v43, 7  ;;  %v507_v7 = vsel %vm403_vm0, 0.0, %v425_v51  ;;  %v816_v8 = vunpack.c.l.bf16 %v893_v56 }
  0x2e   : > { %742 = vst [vmem:[%s1042_s27 + $0x44] sm:$0x1] %v546_v54  ;;  %v552_v9 = vpack.c.bf16 %v522_v4, %v522_v4  ;;  %v817_v10 = vunpack.c.h.bf16 %v893_v56  ;;  %v820_v11 = vunpack.c.l.bf16 %v894_v61  ;;  %v821_v12 = vunpack.c.h.bf16 %v894_v61  ;;  %v897_v54 = vld [vmem:[%s1006_s19 + $0x60] sm:$0xff]  }
  0x2f   : > { %903 = vst [vmem:[%s1042_s27 + $0x48] sm:$0xff] %v859_v62   ;;  %v427_v13 = vsel %vm403_vm0, %v425_v51, %v426_v5  ;;  %v523_v14 = vsel %vm403_vm0, %v426_v5, 0.0  ;;  %v287_v15 = vmul.f32 %v1011_v0, %v816_v8  ;;  %v824_v16 = vunpack.c.l.bf16 %v895_v3 }
  0x30   : > { %745 = vst [vmem:[%s1042_s27 + $0x50] sm:$0x1] %v549_v63  ;;  %v864_v18 = vpack.c.bf16 %v427_v13, %v507_v7  ;;  %v555_v19 = vpack.c.bf16 %v523_v14, %v523_v14  ;;  %v288_v20 = vmul.f32 %v1011_v0, %v817_v10  ;;  %v289_v21 = vmul.f32 %v1011_v0, %v820_v11  ;;  %v899_v10 = vld [vmem:[%s1006_s19 + $0x70] sm:$0xff]  }
  0x31   : > { %746 = vst [vmem:[%s1042_s27 + $0x54] sm:$0xf] %v550_v1  ;;  %v323_v22 = vadd.f32 %v1019_v6, %v287_v15  ;;  %v290_v23 = vmul.f32 %v1011_v0, %v821_v12  ;;  %v825_v24 = vunpack.c.h.bf16 %v895_v3  ;;  %v291_v25 = vmul.f32 %v1011_v0, %v824_v16 }
  0x32   : > { %747 = vst [vmem:[%s1042_s27 + $0x58] sm:$0xf] %v551_v2  ;;  %v324_v26 = vadd.f32 %v1019_v6, %v288_v20  ;;  %v325_v27 = vadd.f32 %v1019_v6, %v289_v21  ;;  %v828_v28 = vunpack.c.l.bf16 %v896_v17  ;;  %v829_v29 = vunpack.c.h.bf16 %v896_v17 }
  0x33   : > { %748 = vst [vmem:[%s1042_s27 + $0x5c] sm:$0x1] %v552_v9  ;;  %v355_v30 = vmax.f32 %v323_v22, 0.0  ;;  %v326_v31 = vadd.f32 %v1019_v6, %v290_v23  ;;  %v327_v32 = vadd.f32 %v1019_v6, %v291_v25  ;;  %v292_v33 = vmul.f32 %v1011_v0, %v825_v24  ;;  %v900_v23 = vld [vmem:[%s1006_s19 + $0x78] sm:$0xff]  }
  0x34   : > { %904 = vst [vmem:[%s1042_s27 + $0x60] sm:$0xff] %v864_v18   ;;  %v356_v34 = vmax.f32 %v324_v26, 0.0  ;;  %v357_v35 = vmax.f32 %v325_v27, 0.0  ;;  %v293_v36 = vmul.f32 %v1011_v0, %v828_v28  ;;  %v294_v37 = vmul.f32 %v1011_v0, %v829_v29 }
  0x35   : > { %751 = vst [vmem:[%s1042_s27 + $0x68] sm:$0x1] %v555_v19  ;;  %v428_v38 = vrot.slane %v355_v30, 7  ;;  %v358_v39 = vmax.f32 %v326_v31, 0.0  ;;  %v359_v40 = vmax.f32 %v327_v32, 0.0  ;;  %v328_v41 = vadd.f32 %v1019_v6, %v292_v33 }
  0x36   : > { %v429_v42 = vrot.slane %v356_v34, 7  ;;  %v431_v43 = vrot.slane %v357_v35, 7  ;;  %v329_v44 = vadd.f32 %v1019_v6, %v293_v36  ;;  %v330_v45 = vadd.f32 %v1019_v6, %v294_v37 }
  0x37   : > { %v508_v46 = vsel %vm403_vm0, 0.0, %v428_v38  ;;  %v432_v47 = vrot.slane %v358_v39, 7  ;;  %v434_v48 = vrot.slane %v359_v40, 7  ;;  %v360_v49 = vmax.f32 %v328_v41, 0.0 }
  0x38   : > { %v556_v50 = vpack.c.bf16 %v508_v46, %v508_v46  ;;  %v430_v51 = vsel %vm403_vm0, %v428_v38, %v429_v42  ;;  %v524_v52 = vsel %vm403_vm0, %v429_v42, 0.0  ;;  %v509_v53 = vsel %vm403_vm0, 0.0, %v431_v43 }
  0x39   : > { %v557_v55 = vpack.c.bf16 %v430_v51, %v430_v51  ;;  %v558_v56 = vpack.c.bf16 %v524_v52, %v524_v52  ;;  %v433_v57 = vsel %vm403_vm0, %v431_v43, %v432_v47  ;;  %v525_v58 = vsel %vm403_vm0, %v432_v47, 0.0 }
  0x3a   : > { %752 = vst [vmem:[%s1042_s27 + $0x6c] sm:$0xf] %v556_v50  ;;  %v869_v60 = vpack.c.bf16 %v433_v57, %v509_v53  ;;  %v561_v61 = vpack.c.bf16 %v525_v58, %v525_v58  ;;  %v510_v62 = vsel %vm403_vm0, 0.0, %v434_v48  ;;  %v435_v63 = vrot.slane %v360_v49, 7 }
  0x3b   : > { %753 = vst [vmem:[%s1042_s27 + $0x70] sm:$0xf] %v557_v55  ;;  %v562_v1 = vpack.c.bf16 %v510_v62, %v510_v62  ;;  %v361_v2 = vmax.f32 %v329_v44, 0.0  ;;  %v362_v3 = vmax.f32 %v330_v45, 0.0  ;;  %v832_v4 = vunpack.c.l.bf16 %v897_v54 }
  0x3c   : > { %754 = vst [vmem:[%s1042_s27 + $0x74] sm:$0x1] %v558_v56  ;;  %v436_v5 = vsel %vm403_vm0, %v434_v48, %v435_v63  ;;  %v526_v7 = vsel %vm403_vm0, %v435_v63, 0.0  ;;  %v833_v8 = vunpack.c.h.bf16 %v897_v54  ;;  %v836_v9 = vunpack.c.l.bf16 %v898_v59 }
  0x3d   : > { %905 = vst [vmem:[%s1042_s27 + $0x78] sm:$0xff] %v869_v60   ;;  %v563_v11 = vpack.c.bf16 %v436_v5, %v436_v5  ;;  %v564_v12 = vpack.c.bf16 %v526_v7, %v526_v7  ;;  %v437_v13 = vrot.slane %v361_v2, 7  ;;  %v438_v14 = vrot.slane %v362_v3, 7 }
  0x3e   : > { %757 = vst [vmem:[%s1042_s27 + $0x80] sm:$0x1] %v561_v61  ;;  %v295_v15 = vmul.f32 %v1011_v0, %v832_v4  ;;  %v296_v16 = vmul.f32 %v1011_v0, %v833_v8  ;;  %v837_v17 = vunpack.c.h.bf16 %v898_v59  ;;  %v297_v18 = vmul.f32 %v1011_v0, %v836_v9 }
  0x3f   : > { %758 = vst [vmem:[%s1042_s27 + $0x84] sm:$0xf] %v562_v1  ;;  %v439_v19 = vsel %vm403_vm0, %v437_v13, %v438_v14  ;;  %v511_v20 = vsel %vm403_vm0, 0.0, %v437_v13  ;;  %v527_v21 = vsel %vm403_vm0, %v438_v14, 0.0  ;;  %v840_v22 = vunpack.c.l.bf16 %v899_v10 }
  0x40   : > { %759 = vst [vmem:[%s1042_s27 + $0x88] sm:$0xf] %v563_v11  ;;  %v874_v24 = vpack.c.bf16 %v439_v19, %v511_v20  ;;  %v567_v25 = vpack.c.bf16 %v527_v21, %v527_v21  ;;  %v331_v26 = vadd.f32 %v1019_v6, %v295_v15  ;;  %v332_v27 = vadd.f32 %v1019_v6, %v296_v16 }
  0x41   : > { %760 = vst [vmem:[%s1042_s27 + $0x8c] sm:$0x1] %v564_v12  ;;  %v298_v28 = vmul.f32 %v1011_v0, %v837_v17  ;;  %v333_v29 = vadd.f32 %v1019_v6, %v297_v18  ;;  %v841_v30 = vunpack.c.h.bf16 %v899_v10  ;;  %v299_v31 = vmul.f32 %v1011_v0, %v840_v22 }
  0x42   : > { %906 = vst [vmem:[%s1042_s27 + $0x90] sm:$0xff] %v874_v24   ;;  %v363_v32 = vmax.f32 %v331_v26, 0.0  ;;  %v364_v33 = vmax.f32 %v332_v27, 0.0  ;;  %v844_v34 = vunpack.c.l.bf16 %v900_v23  ;;  %v845_v35 = vunpack.c.h.bf16 %v900_v23 }
  0x43   : > { %763 = vst [vmem:[%s1042_s27 + $0x98] sm:$0x1] %v567_v25  ;;  %v334_v36 = vadd.f32 %v1019_v6, %v298_v28  ;;  %v365_v37 = vmax.f32 %v333_v29, 0.0  ;;  %v335_v38 = vadd.f32 %v1019_v6, %v299_v31  ;;  %v300_v39 = vmul.f32 %v1011_v0, %v841_v30 }
  0x44   : > { %v440_v40 = vrot.slane %v363_v32, 7  ;;  %v441_v41 = vrot.slane %v364_v33, 7  ;;  %v301_v42 = vmul.f32 %v1011_v0, %v844_v34  ;;  %v302_v43 = vmul.f32 %v1011_v0, %v845_v35 }
  0x45   : > { %v366_v44 = vmax.f32 %v334_v36, 0.0  ;;  %v443_v45 = vrot.slane %v365_v37, 7  ;;  %v367_v46 = vmax.f32 %v335_v38, 0.0  ;;  %v336_v47 = vadd.f32 %v1019_v6, %v300_v39 }
  0x46   : > { %v512_v48 = vsel %vm403_vm0, 0.0, %v440_v40  ;;  %v442_v49 = vsel %vm403_vm0, %v440_v40, %v441_v41  ;;  %v528_v50 = vsel %vm403_vm0, %v441_v41, 0.0  ;;  %v337_v51 = vadd.f32 %v1019_v6, %v301_v42 }
  0x47   : > { %v568_v52 = vpack.c.bf16 %v512_v48, %v512_v48  ;;  %v569_v53 = vpack.c.bf16 %v442_v49, %v442_v49  ;;  %v570_v54 = vpack.c.bf16 %v528_v50, %v528_v50  ;;  %v444_v0 = vrot.slane %v366_v44, 7 }
  0x48   : > { %v513_v55 = vsel %vm403_vm0, 0.0, %v443_v45  ;;  %v446_v56 = vrot.slane %v367_v46, 7  ;;  %v368_v57 = vmax.f32 %v336_v47, 0.0  ;;  %v338_v58 = vadd.f32 %v1019_v6, %v302_v43 }
  0x49   : > { %764 = vst [vmem:[%s1042_s27 + $0x9c] sm:$0xf] %v568_v52  ;;  %v445_v59 = vsel %vm403_vm0, %v443_v45, %v444_v0  ;;  %v529_v60 = vsel %vm403_vm0, %v444_v0, 0.0  ;;  %v369_v61 = vmax.f32 %v337_v51, 0.0  ;;  %v961_v16 = vmov 0  }
  0x4a   : > { %765 = vst [vmem:[%s1042_s27 + $0xa0] sm:$0xf] %v569_v53  ;;  %v879_v62 = vpack.c.bf16 %v445_v59, %v513_v55  ;;  %v573_v63 = vpack.c.bf16 %v529_v60, %v529_v60  ;;  %v514_v1 = vsel %vm403_vm0, 0.0, %v446_v56  ;;  %v447_v2 = vrot.slane %v368_v57, 7 }
  0x4b   : > { %766 = vst [vmem:[%s1042_s27 + $0xa4] sm:$0x1] %v570_v54  ;;  %v574_v3 = vpack.c.bf16 %v514_v1, %v514_v1  ;;  %v370_v4 = vmax.f32 %v338_v58, 0.0  ;;  %v449_v6 = vrot.slane %v369_v61, 7 }
  0x4c   : > { %907 = vst [vmem:[%s1042_s27 + $0xa8] sm:$0xff] %v879_v62   ;;  %v448_v5 = vsel %vm403_vm0, %v446_v56, %v447_v2  ;;  %v530_v7 = vsel %vm403_vm0, %v447_v2, 0.0 }
  0x4d   : > { %769 = vst [vmem:[%s1042_s27 + $0xb0] sm:$0x1] %v573_v63  ;;  %v575_v8 = vpack.c.bf16 %v448_v5, %v448_v5  ;;  %v576_v9 = vpack.c.bf16 %v530_v7, %v530_v7  ;;  %v450_v10 = vrot.slane %v370_v4, 7  ;;  %v515_v11 = vsel %vm403_vm0, 0.0, %v449_v6 }
  0x4e   : > { %770 = vst [vmem:[%s1042_s27 + $0xb4] sm:$0xf] %v574_v3 }
  0x4f   : > { %771 = vst [vmem:[%s1042_s27 + $0xb8] sm:$0xf] %v575_v8  ;;  %v451_v12 = vsel %vm403_vm0, %v449_v6, %v450_v10  ;;  %v531_v13 = vsel %vm403_vm0, %v450_v10, 0.0 }
  0x50   : > { %772 = vst [vmem:[%s1042_s27 + $0xbc] sm:$0x1] %v576_v9  ;;  %v884_v14 = vpack.c.bf16 %v451_v12, %v515_v11  ;;  %v579_v15 = vpack.c.bf16 %v531_v13, %v531_v13 }
  0x51   : > { %637 = vst [vmem:[%s1042_s27] sm:$0xf] %v961_v16 }
  0x52   : > { %908 = vst [vmem:[%s1042_s27 + $0xc0] sm:$0xff] %v884_v14  }
  0x53   : > { %775 = vst [vmem:[%s1042_s27 + $0xc8] sm:$0x1] %v579_v15 }
  0x54   : > { %638 = vst [vmem:[%s1042_s27 + $0x4] sm:$0xf] %v961_v16 }
  0x55   : > { %639 = vst [vmem:[%s1042_s27 + $0x8] sm:$0x1] %v961_v16 }
  0x56   : > { %776 = vst [vmem:[%s1042_s27 + $0xcc] sm:$0xf] %v961_v16 }
  0x57   : > { %777 = vst [vmem:[%s1042_s27 + $0xd0] sm:$0xf] %v961_v16 }
  0x58   : > { %778 = vst [vmem:[%s1042_s27 + $0xd4] sm:$0x1] %v961_v16 }
  0x59 PF: > { %s13_s14 = sadd.s32 1, %s959_s14   ;;  %s1211_s12 = smov %s955_s13 }
  0x5a   : > { %p10_p5 = scmp.ge.s32.totalorder %s13_s14, 4   ;;  %s1212_s13 = smov %s1214_s15 }
  0x5c   :  { %12 = sbr.rel (!%p10_p5) target bundleno = 2 (0x2), region = 68 }

// kernel: decoder_forward.5
= control target key start
LH: loop header
LB: loop body
LE: loop exit
PB: predicated region body
PF: predicated region fallthrough
CT: control target
= control target key end

     0   :  { %s904_s9 = smov 0   ;;  %s906_s10 = smov 0   ;;  %s1465_s0 = inlined_call_operand.vmem [shape: f32[2,18,18,4], index: 0, kind: input, shape index: {}]   ;;  %s1466_s1 = inlined_call_operand.vmem [shape: s32[2,18,18,4], index: 1, kind: input, shape index: {}]   ;;  %s1467_s2 = inlined_call_operand.vmem [shape: bf16[2,18,18,128], index: 2, kind: output, shape index: {}]  }
   0x1   :  { %s908_s11 = smov 0  }
   0x2 LB: > { %s24_s12 = sadd.s32 1, %s882_s10  ;;  %p828_p0 = scmp.ge.s32.totalorder %s886_s11, 1  ;;  %s886_s11 = sphi %s908_s11, %s12_s11   ;;  %s882_s10 = sphi %s906_s10, %s1469_s10   ;;  %s878_s9 = sphi %s904_s9, %s1468_s9  }
   0x3   : > { %p26_p1 = scmp.ge.s32.totalorder %s24_s12, 2  ;;  %p152_p2 = scmp.lt.s32.totalorder %s886_s11, 3 }
   0x5   : > { %s1471_s12 = smov (%p26_p1, %s24_s12), 0  ;;  %p153_p3 = pnand %p828_p0, %p152_p2 }
   0x6   : > { %p195_p4 = scmp.lt.s32.totalorder (!%p153_p3), %s878_s9, 1 }
   0x7   : > { %156 = sbr.rel (%p153_p3) target bundleno = 124 (0x7c), region = 28 }
   0xc   : > { %s1473_s9 = smov (!%p195_p4, %s878_s9), 1  ;;  %v888_v0 = vmov 0   ;;  %v248_v1 = vlaneseq  ;;  %vm651_vm7 = vcmask 27648   ;;  %vm654_vm8 = vcmask 24576  }
   0xd   : > { %s838_s13 = smul.u32 216, %s1473_s9 }
   0xe   : > { %v249_v2 = vshrl.u32 %v248_v1, 7  ;;  %s837_s17 = smul.u32 432, %s1473_s9 }
   0xf   : > { %s928_s16 = scalar_lea.vmem %s1467_s2, %s838_s13 }
  0x10   : > { %543 = vst [vmem:[%s928_s16] sm:$0xf] %v888_v0  ;;  %v250_v3 = vadd.s32 8, %v249_v2  ;;  %v251_v4 = vadd.s32 16, %v249_v2  ;;  %v997_v5 = vadd.s32 4294967295, %v249_v2  ;;  %s1010_s20 = scalar_lea.vmem %s1466_s1, %s837_s17  ;;  %s1023_s23 = scalar_lea.vmem %s1465_s0, %s837_s17 }
  0x11   : > { %544 = vst [vmem:[%s928_s16 + $0x4] sm:$0xf] %v888_v0  ;;  %v327_v10 = vld [vmem:[%s1010_s20] sm:$0xff]  ;;  %v328_v11 = vld [vmem:[%s1010_s20 + $0x8] sm:$0xff]  ;;  %v329_v13 = vld [vmem:[%s1010_s20 + $0x10] sm:$0x3] }
  0x12   : > { %545 = vst [vmem:[%s928_s16 + $0x8] sm:$0x1] %v888_v0  ;;  %v999_v6 = vadd.s32 4294967295, %v250_v3  ;;  %v1003_v7 = vadd.s32 4294967295, %v251_v4  ;;  %v273_v8 = vadd.s32 4294967280, %v997_v5  ;;  %v330_v14 = vld [vmem:[%s1010_s20 + $0x18] sm:$0xff] }
  0x13   : > { %546 = vst [vmem:[%s928_s16 + $0xc] sm:$0xf] %v888_v0  ;;  %v331_v15 = vld [vmem:[%s1010_s20 + $0x20] sm:$0xff]  ;;  %v332_v16 = vld [vmem:[%s1010_s20 + $0x28] sm:$0x3]  ;;  %v279_v17 = vadd.s32 16, %v997_v5  ;;  %vm384_vm3 = vcmp.eq.s32.totalorder %v330_v14, %v997_v5 }
  0x14   : > { %547 = vst [vmem:[%s928_s16 + $0x10] sm:$0xf] %v888_v0  ;;  %v274_v9 = vadd.s32 4294967280, %v999_v6  ;;  %v275_v12 = vadd.s32 4294967280, %v1003_v7  ;;  %vm381_vm0 = vcmp.eq.s32.totalorder %v327_v10, %v273_v8  ;;  %v435_v18 = vld [vmem:[%s1023_s23] sm:$0xff]  ;;  %v436_v19 = vld [vmem:[%s1023_s23 + $0x8] sm:$0xff]  ;;  %vm385_vm4 = vcmp.eq.s32.totalorder %v331_v15, %v999_v6 }
  0x15   : > { %548 = vst [vmem:[%s928_s16 + $0x14] sm:$0x1] %v888_v0  ;;  %v333_v20 = vld [vmem:[%s1010_s20 + $0x30] sm:$0xff]  ;;  %v438_v22 = vld [vmem:[%s1023_s23 + $0x18] sm:$0xff]  ;;  %v439_v23 = vld [vmem:[%s1023_s23 + $0x20] sm:$0xff]  ;;  %vm386_vm5 = vcmp.eq.s32.totalorder %v332_v16, %v1003_v7  ;;  %v1056_v25 = vsel %vm381_vm0, %v435_v18, 0.0 }
  0x16   : > { %549 = vst [vmem:[%s928_s16 + $0x18] sm:$0xf] %v888_v0  ;;  %vm382_vm1 = vcmp.eq.s32.totalorder %v328_v11, %v274_v9  ;;  %vm383_vm2 = vcmp.eq.s32.totalorder %v329_v13, %v275_v12  ;;  %v437_v21 = vld [vmem:[%s1023_s23 + $0x10] sm:$0x3]  ;;  %v440_v24 = vld [vmem:[%s1023_s23 + $0x28] sm:$0x3]  ;;  %vm387_vm6 = vcmp.eq.s32.totalorder %v333_v20, %v279_v17  ;;  %v597_v43 = vpack.c.bf16 %v1056_v25, %v1056_v25 }
  0x17   : > { %550 = vst [vmem:[%s928_s16 + $0x1c] sm:$0xf] %v888_v0  ;;  %v1058_v26 = vsel %vm382_vm1, %v436_v19, 0.0  ;;  %v441_v27 = vld [vmem:[%s1023_s23 + $0x30] sm:$0xff]  ;;  %v1064_v28 = vsel %vm383_vm2, %v437_v21, 0.0  ;;  %v1066_v29 = vsel %vm384_vm3, %v438_v22, 0.0 }
  0x18   : > { %551 = vst [vmem:[%s928_s16 + $0x20] sm:$0x1] %v888_v0  ;;  %v1068_v30 = vsel %vm385_vm4, %v439_v23, 0.0  ;;  %v1072_v31 = vsel %vm386_vm5, %v440_v24, 0.0  ;;  %v280_v32 = vadd.s32 16, %v999_v6  ;;  %v334_v33 = vld [vmem:[%s1010_s20 + $0x38] sm:$0xff]  ;;  %v598_v54 = vpack.c.bf16 %v1058_v26, %v1058_v26 }
  0x19   : > { %552 = vst [vmem:[%s928_s16 + $0x24] sm:$0xf] %v888_v0  ;;  %v281_v34 = vadd.s32 16, %v1003_v7  ;;  %v1079_v35 = vsel %vm387_vm6, %v441_v27, 0.0  ;;  %v335_v36 = vld [vmem:[%s1010_s20 + $0x40] sm:$0x3]  ;;  %v599_v55 = vpack.c.bf16 %v1064_v28, %v1064_v28  ;;  %v600_v56 = vpack.c.bf16 %v1066_v29, %v1066_v29 }
  0x1a   : > { %553 = vst [vmem:[%s928_s16 + $0x28] sm:$0xf] %v888_v0  ;;  %v282_v37 = vadd.s32 32, %v997_v5  ;;  %v442_v38 = vld [vmem:[%s1023_s23 + $0x38] sm:$0xff]  ;;  %v336_v39 = vld [vmem:[%s1010_s20 + $0x48] sm:$0xff]  ;;  %v283_v40 = vadd.s32 32, %v999_v6  ;;  %vm388_vm9 = vcmp.eq.s32.totalorder %v334_v33, %v280_v32  ;;  %v601_v63 = vpack.c.bf16 %v1068_v30, %v1068_v30 }
  0x1b   : > { %554 = vst [vmem:[%s928_s16 + $0x2c] sm:$0x1] %v888_v0  ;;  %v337_v41 = vld [vmem:[%s1010_s20 + $0x50] sm:$0xff]  ;;  %v339_v42 = vld [vmem:[%s1010_s20 + $0x60] sm:$0xff]  ;;  %v284_v44 = vadd.s32 32, %v1003_v7  ;;  %v285_v46 = vadd.s32 48, %v997_v5  ;;  %vm389_vm10 = vcmp.eq.s32.totalorder %v335_v36, %v281_v34  ;;  %v602_v4 = vpack.c.bf16 %v1072_v31, %v1072_v31 }
  0x1c   : > { %555 = vst [vmem:[%s928_s16 + $0x30] sm:$0xf] %v888_v0  ;;  %v338_v45 = vld [vmem:[%s1010_s20 + $0x58] sm:$0x3]  ;;  %v443_v47 = vld [vmem:[%s1023_s23 + $0x40] sm:$0x3]  ;;  %vm390_vm11 = vcmp.eq.s32.totalorder %v336_v39, %v282_v37  ;;  %vm391_vm12 = vcmp.eq.s32.totalorder %v337_v41, %v283_v40  ;;  %v603_v14 = vpack.c.bf16 %v1079_v35, %v1079_v35 }
  0x1d   : > { %556 = vst [vmem:[%s928_s16 + $0x34] sm:$0xf] %v888_v0  ;;  %v444_v48 = vld [vmem:[%s1023_s23 + $0x48] sm:$0xff]  ;;  %v445_v49 = vld [vmem:[%s1023_s23 + $0x50] sm:$0xff]  ;;  %v286_v50 = vadd.s32 48, %v999_v6  ;;  %v287_v52 = vadd.s32 48, %v1003_v7  ;;  %vm392_vm13 = vcmp.eq.s32.totalorder %v338_v45, %v284_v44  ;;  %vm393_vm14 = vcmp.eq.s32.totalorder %v339_v42, %v285_v46 }
  0x1e   : > { %557 = vst [vmem:[%s928_s16 + $0x38] sm:$0x1] %v888_v0  ;;  %v340_v51 = vld [vmem:[%s1010_s20 + $0x68] sm:$0xff]  ;;  %v288_v53 = vadd.s32 64, %v997_v5  ;;  %v341_v57 = vld [vmem:[%s1010_s20 + $0x70] sm:$0x3] }
  0x1f   : > { %558 = vst [vmem:[%s928_s16 + $0x3c] sm:$0xf] %v888_v0  ;;  %v342_v58 = vld [vmem:[%s1010_s20 + $0x78] sm:$0xff]  ;;  %v289_v59 = vadd.s32 64, %v999_v6  ;;  %v343_v61 = vld [vmem:[%s1010_s20 + $0x80] sm:$0xff]  ;;  %v290_v62 = vadd.s32 64, %v1003_v7  ;;  %vm394_vm15 = vcmp.eq.s32.totalorder %v340_v51, %v286_v50  ;;  %vm395_vm0 = vcmp.eq.s32.totalorder %v341_v57, %v287_v52 }
  0x20   : > { %559 = vst [vmem:[%s928_s16 + $0x40] sm:$0xf] %v888_v0  ;;  %v446_v60 = vld [vmem:[%s1023_s23 + $0x58] sm:$0x3]  ;;  %v496_v1 = vsel %vm388_vm9, %v442_v38, 0.0  ;;  %v447_v2 = vld [vmem:[%s1023_s23 + $0x60] sm:$0xff]  ;;  %vm396_vm1 = vcmp.eq.s32.totalorder %v342_v58, %v288_v53 }
  0x21   : > { %560 = vst [vmem:[%s928_s16 + $0x44] sm:$0x1] %v888_v0  ;;  %v344_v3 = vld [vmem:[%s1010_s20 + $0x88] sm:$0x3]  ;;  %v449_v9 = vld [vmem:[%s1023_s23 + $0x70] sm:$0x3]  ;;  %vm397_vm2 = vcmp.eq.s32.totalorder %v343_v61, %v289_v59  ;;  %v604_v22 = vpack.c.bf16 %v496_v1, %v496_v1 }
  0x22   : > { %561 = vst [vmem:[%s928_s16 + $0x48] sm:$0xf] %v888_v0  ;;  %v448_v8 = vld [vmem:[%s1023_s23 + $0x68] sm:$0xff]  ;;  %v450_v10 = vld [vmem:[%s1023_s23 + $0x78] sm:$0xff]  ;;  %v497_v11 = vsel %vm389_vm10, %v443_v47, 0.0  ;;  %v498_v12 = vsel %vm390_vm11, %v444_v48, 0.0  ;;  %vm398_vm3 = vcmp.eq.s32.totalorder %v344_v3, %v290_v62 }
  0x23   : > { %562 = vst [vmem:[%s928_s16 + $0x4c] sm:$0xf] %v888_v0  ;;  %v451_v13 = vld [vmem:[%s1023_s23 + $0x80] sm:$0xff]  ;;  %v1149_v15 = vsel %vm392_vm13, %v446_v60, 0.0  ;;  %v1152_v16 = vsel %vm393_vm14, %v447_v2, 0.0  ;;  %v1158_v18 = vsel %vm394_vm15, %v448_v8, 0.0  ;;  %v605_v27 = vpack.c.bf16 %v497_v11, %v497_v11 }
  0x24   : > { %563 = vst [vmem:[%s928_s16 + $0x50] sm:$0x1] %v888_v0  ;;  %v452_v17 = vld [vmem:[%s1023_s23 + $0x88] sm:$0x3]  ;;  %v1161_v19 = vsel %vm395_vm0, %v449_v9, 0.0  ;;  %v1164_v20 = vsel %vm396_vm1, %v450_v10, 0.0  ;;  %v606_v32 = vpack.c.bf16 %v498_v12, %v498_v12  ;;  %v608_v40 = vpack.c.bf16 %v1149_v15, %v1149_v15 }
  0x25   : > { %564 = vst [vmem:[%s928_s16 + $0x54] sm:$0xf] %v888_v0  ;;  %v291_v21 = vadd.s32 80, %v997_v5  ;;  %v1169_v23 = vsel %vm397_vm2, %v451_v13, 0.0  ;;  %v345_v24 = vld [vmem:[%s1010_s20 + $0x90] sm:$0xff]  ;;  %v292_v25 = vadd.s32 80, %v999_v6  ;;  %v610_v50 = vpack.c.bf16 %v1158_v18, %v1158_v18 }
  0x26   : > { %565 = vst [vmem:[%s928_s16 + $0x58] sm:$0xf] %v888_v0  ;;  %v293_v26 = vadd.s32 80, %v1003_v7  ;;  %v1176_v28 = vsel %vm398_vm3, %v452_v17, 0.0  ;;  %v453_v29 = vld [vmem:[%s1023_s23 + $0x90] sm:$0xff]  ;;  %v346_v30 = vld [vmem:[%s1010_s20 + $0x98] sm:$0xff] }
  0x27   : > { %566 = vst [vmem:[%s928_s16 + $0x5c] sm:$0x1] %v888_v0  ;;  %v347_v31 = vld [vmem:[%s1010_s20 + $0xa0] sm:$0x3]  ;;  %v454_v34 = vld [vmem:[%s1023_s23 + $0x98] sm:$0xff]  ;;  %v294_v36 = vadd.s32 96, %v997_v5  ;;  %vm399_vm4 = vcmp.eq.s32.totalorder %v345_v24, %v291_v21  ;;  %vm400_vm5 = vcmp.eq.s32.totalorder %v346_v30, %v292_v25  ;;  %v614_v11 = vpack.c.bf16 %v1176_v28, %v1176_v28 }
  0x28   : > { %567 = vst [vmem:[%s928_s16 + $0x60] sm:$0xf] %v888_v0  ;;  %v455_v35 = vld [vmem:[%s1023_s23 + $0xa0] sm:$0x3]  ;;  %v348_v37 = vld [vmem:[%s1010_s20 + $0xa8] sm:$0xff]  ;;  %v295_v38 = vadd.s32 96, %v999_v6  ;;  %vm401_vm6 = vcmp.eq.s32.totalorder %v347_v31, %v293_v26 }
  0x29   : > { %568 = vst [vmem:[%s928_s16 + $0x64] sm:$0xf] %v888_v0  ;;  %v349_v39 = vld [vmem:[%s1010_s20 + $0xb0] sm:$0xff]  ;;  %v296_v41 = vadd.s32 96, %v1003_v7  ;;  %v350_v42 = vld [vmem:[%s1010_s20 + $0xb8] sm:$0x3]  ;;  %vm402_vm9 = vcmp.eq.s32.totalorder %v348_v37, %v294_v36 }
  0x2a   : > { %569 = vst [vmem:[%s928_s16 + $0x68] sm:$0x1] %v888_v0  ;;  %v456_v44 = vld [vmem:[%s1023_s23 + $0xa8] sm:$0xff]  ;;  %v351_v45 = vld [vmem:[%s1010_s20 + $0xc0] sm:$0xff]  ;;  %v298_v46 = vadd.s32 112, %v999_v6  ;;  %v299_v48 = vadd.s32 112, %v1003_v7  ;;  %vm403_vm10 = vcmp.eq.s32.totalorder %v349_v39, %v295_v38 }
  0x2b   : > { %570 = vst [vmem:[%s928_s16 + $0x6c] sm:$0xf] %v888_v0  ;;  %v352_v47 = vld [vmem:[%s1010_s20 + $0xc8] sm:$0xff]  ;;  %v353_v51 = vld [vmem:[%s1010_s20 + $0xd0] sm:$0x3]  ;;  %v300_v52 = vadd.s32 128, %v997_v5  ;;  %vm404_vm11 = vcmp.eq.s32.totalorder %v350_v42, %v296_v41 }
  0x2c   : > { %571 = vst [vmem:[%s928_s16 + $0x70] sm:$0xf] %v888_v0  ;;  %v301_v53 = vadd.s32 128, %v999_v6  ;;  %v457_v57 = vld [vmem:[%s1023_s23 + $0xb0] sm:$0xff]  ;;  %v354_v58 = vld [vmem:[%s1010_s20 + $0xd8] sm:$0xff]  ;;  %v355_v59 = vld [vmem:[%s1010_s20 + $0xe0] sm:$0xff]  ;;  %vm406_vm13 = vcmp.eq.s32.totalorder %v352_v47, %v298_v46  ;;  %vm407_vm14 = vcmp.eq.s32.totalorder %v353_v51, %v299_v48 }
  0x2d   : > { %572 = vst [vmem:[%s928_s16 + $0x74] sm:$0x1] %v888_v0  ;;  %v508_v60 = vsel %vm400_vm5, %v454_v34, 0.0  ;;  %v509_v61 = vsel %vm401_vm6, %v455_v35, 0.0  ;;  %v458_v62 = vld [vmem:[%s1023_s23 + $0xb8] sm:$0x3]  ;;  %vm408_vm15 = vcmp.eq.s32.totalorder %v354_v58, %v300_v52 }
  0x2e   : > { %573 = vst [vmem:[%s928_s16 + $0x78] sm:$0xf] %v888_v0  ;;  %v459_v1 = vld [vmem:[%s1023_s23 + $0xc0] sm:$0xff]  ;;  %v460_v2 = vld [vmem:[%s1023_s23 + $0xc8] sm:$0xff]  ;;  %v461_v3 = vld [vmem:[%s1023_s23 + $0xd0] sm:$0x3]  ;;  %vm409_vm0 = vcmp.eq.s32.totalorder %v355_v59, %v301_v53 }
  0x2f   : > { %574 = vst [vmem:[%s928_s16 + $0x7c] sm:$0xf] %v888_v0  ;;  %v462_v8 = vld [vmem:[%s1023_s23 + $0xd8] sm:$0xff]  ;;  %v463_v9 = vld [vmem:[%s1023_s23 + $0xe0] sm:$0xff]  ;;  %v302_v10 = vadd.s32 128, %v1003_v7  ;;  %v512_v13 = vsel %vm404_vm11, %v458_v62, 0.0 }
  0x30   : > { %575 = vst [vmem:[%s928_s16 + $0x80] sm:$0x1] %v888_v0  ;;  %v1256_v17 = vsel %vm407_vm14, %v461_v3, 0.0  ;;  %v303_v18 = vadd.s32 144, %v997_v5  ;;  %v1265_v21 = vsel %vm409_vm0, %v463_v9, 0.0  ;;  %v357_v24 = vld [vmem:[%s1010_s20 + $0xf0] sm:$0xff]  ;;  %v620_v38 = vpack.c.bf16 %v512_v13, %v512_v13 }
  0x31   : > { %576 = vst [vmem:[%s928_s16 + $0x84] sm:$0xf] %v888_v0  ;;  %v304_v25 = vadd.s32 144, %v999_v6  ;;  %v358_v26 = vld [vmem:[%s1010_s20 + $0xf8] sm:$0xff]  ;;  %v359_v30 = vld [vmem:[%s1010_s20 + $0x100] sm:$0x3]  ;;  %v625_v59 = vpack.c.bf16 %v1265_v21, %v1265_v21 }
  0x32   : > { %577 = vst [vmem:[%s928_s16 + $0x88] sm:$0xf] %v888_v0  ;;  %v306_v31 = vadd.s32 160, %v997_v5  ;;  %v360_v34 = vld [vmem:[%s1010_s20 + $0x108] sm:$0xff]  ;;  %v361_v35 = vld [vmem:[%s1010_s20 + $0x110] sm:$0xff]  ;;  %v308_v36 = vadd.s32 160, %v1003_v7  ;;  %vm411_vm2 = vcmp.eq.s32.totalorder %v357_v24, %v303_v18 }
  0x33   : > { %578 = vst [vmem:[%s928_s16 + $0x8c] sm:$0x1] %v888_v0  ;;  %v309_v37 = vadd.s32 176, %v997_v5  ;;  %v363_v41 = vld [vmem:[%s1010_s20 + $0x120] sm:$0xff]  ;;  %vm412_vm3 = vcmp.eq.s32.totalorder %v358_v26, %v304_v25  ;;  %v468_v47 = vld [vmem:[%s1023_s23 + $0x108] sm:$0xff]  ;;  %v469_v48 = vld [vmem:[%s1023_s23 + $0x110] sm:$0xff] }
  0x34   : > { %579 = vst [vmem:[%s928_s16 + $0x90] sm:$0xf] %v888_v0  ;;  %v467_v46 = vld [vmem:[%s1023_s23 + $0x100] sm:$0x3]  ;;  %vm414_vm5 = vcmp.eq.s32.totalorder %v360_v34, %v306_v31  ;;  %v364_v53 = vld [vmem:[%s1010_s20 + $0x128] sm:$0xff]  ;;  %v312_v58 = vadd.s32 192, %v997_v5 }
  0x35   : > { %580 = vst [vmem:[%s928_s16 + $0x94] sm:$0xf] %v888_v0  ;;  %v471_v52 = vld [vmem:[%s1023_s23 + $0x120] sm:$0xff]  ;;  %v317_v21 = vadd.s32 208, %v1003_v7  ;;  %v370_v25 = vld [vmem:[%s1010_s20 + $0x158] sm:$0xff]  ;;  %v477_v31 = vld [vmem:[%s1023_s23 + $0x150] sm:$0xff] }
  0x36   : > { %581 = vst [vmem:[%s928_s16 + $0x98] sm:$0x1] %v888_v0  ;;  %v367_v13 = vld [vmem:[%s1010_s20 + $0x140] sm:$0xff]  ;;  %v319_v34 = vadd.s32 224, %v999_v6 }
  0x37   : > { %582 = vst [vmem:[%s928_s16 + $0x9c] sm:$0xf] %v888_v0  ;;  %v475_v18 = vld [vmem:[%s1023_s23 + $0x140] sm:$0xff] }
  0x38   : > { %583 = vst [vmem:[%s928_s16 + $0xa0] sm:$0xf] %v888_v0  ;;  %v371_v26 = vld [vmem:[%s1010_s20 + $0x160] sm:$0x3] }
  0x39   : > { %584 = vst [vmem:[%s928_s16 + $0xa4] sm:$0x1] %v888_v0 }
  0x3a   : > { %585 = vst [vmem:[%s928_s16 + $0xa8] sm:$0xf] %v888_v0 }
  0x3b   : > { %586 = vst [vmem:[%s928_s16 + $0xac] sm:$0xf] %v888_v0 }
  0x3c   : > { %587 = vst [vmem:[%s928_s16 + $0xb0] sm:$0x1] %v888_v0 }
  0x3d   : > { %588 = vst [vmem:[%s928_s16 + $0xb4] sm:$0xf] %v888_v0 }
  0x3e   : > { %589 = vst [vmem:[%s928_s16 + $0xb8] sm:$0xf] %v888_v0 }
  0x3f   : > { %590 = vst [vmem:[%s928_s16 + $0xbc] sm:$0x1] %v888_v0 }
  0x40   : > { %591 = vst [vmem:[%s928_s16 + $0xc0] sm:$0xf] %v888_v0 }
  0x41   : > { %592 = vst [vmem:[%s928_s16 + $0xc4] sm:$0xf] %v888_v0 }
  0x42   : > { %593 = vst [vmem:[%s928_s16 + $0xc8] sm:$0x1] %v888_v0 }
  0x43   : > { %594 = vst [vmem:[%s928_s16 + $0xcc] sm:$0xf] %v888_v0 }
  0x44   : > { %595 = vst [vmem:[%s928_s16 + $0xd0] sm:$0xf] %v888_v0 }
  0x45   : > { %596 = vst [vmem:[%s928_s16 + $0xd4] sm:$0x1] %v888_v0  ;;  %v1141_v0 = vsel %vm391_vm12, %v445_v49, 0.0  ;;  %v609_v49 = vpack.c.bf16 %v1152_v16, %v1152_v16  ;;  %v1253_v16 = vsel %vm406_vm13, %v460_v2, 0.0 }
  0x46   : > { %652 = vst.msk [vmem:[%s928_s16] sm:$0xf] %vm651_vm7, %v597_v43  ;;  %v607_v33 = vpack.c.bf16 %v1141_v0, %v1141_v0  ;;  %v297_v43 = vadd.s32 112, %v997_v5  ;;  %v511_v0 = vsel %vm403_vm10, %v457_v57, 0.0  ;;  %vm417_vm10 = vcmp.eq.s32.totalorder %v363_v41, %v309_v37  ;;  %v365_v57 = vld [vmem:[%s1010_s20 + $0x130] sm:$0x3] }
  0x47   : > { %653 = vst.msk [vmem:[%s928_s16 + $0x4] sm:$0xf] %vm651_vm7, %v598_v54  ;;  %v611_v54 = vpack.c.bf16 %v1161_v19, %v1161_v19  ;;  %v616_v19 = vpack.c.bf16 %v508_v60, %v508_v60  ;;  %v1336_v3 = vsel %vm417_vm10, %v471_v52, 0.0  ;;  %v373_v37 = vld [vmem:[%s1010_s20 + $0x170] sm:$0xff]  ;;  %v322_v52 = vadd.s32 240, %v999_v6 }
  0x48   : > { %655 = vst.msk [vmem:[%s928_s16 + $0x8] sm:$0x1] %vm654_vm8, %v599_v55  ;;  %v612_v55 = vpack.c.bf16 %v1164_v20, %v1164_v20  ;;  %vm405_vm12 = vcmp.eq.s32.totalorder %v351_v45, %v297_v43  ;;  %v1262_v20 = vsel %vm408_vm15, %v462_v8, 0.0  ;;  %v622_v43 = vpack.c.bf16 %v1253_v16, %v1253_v16  ;;  %v466_v45 = vld [vmem:[%s1023_s23 + $0xf8] sm:$0xff] }
  0x49   : > { %656 = vst.msk [vmem:[%s928_s16 + $0xc] sm:$0xf] %vm651_vm7, %v600_v56  ;;  %v507_v56 = vsel %vm399_vm4, %v453_v29, 0.0  ;;  %v513_v15 = vsel %vm405_vm12, %v459_v1, 0.0  ;;  %v465_v29 = vld [vmem:[%s1023_s23 + $0xf0] sm:$0xff]  ;;  %v474_v8 = vld [vmem:[%s1023_s23 + $0x138] sm:$0xff] }
  0x4a   : > { %657 = vst.msk [vmem:[%s928_s16 + $0x10] sm:$0xf] %vm651_vm7, %v601_v63  ;;  %v613_v63 = vpack.c.bf16 %v1169_v23, %v1169_v23  ;;  %v615_v12 = vpack.c.bf16 %v507_v56, %v507_v56  ;;  %v617_v23 = vpack.c.bf16 %v509_v61, %v509_v61  ;;  %v621_v42 = vpack.c.bf16 %v513_v15, %v513_v15 }
  0x4b   : > { %658 = vst.msk [vmem:[%s928_s16 + $0x14] sm:$0x1] %vm654_vm8, %v602_v4  ;;  %v510_v4 = vsel %vm402_vm9, %v456_v44, 0.0  ;;  %v623_v44 = vpack.c.bf16 %v1256_v17, %v1256_v17  ;;  %v519_v51 = vsel %vm411_vm2, %v465_v29, 0.0  ;;  %v520_v56 = vsel %vm412_vm3, %v466_v45, 0.0 }
  0x4c   : > { %659 = vst.msk [vmem:[%s928_s16 + $0x18] sm:$0xf] %vm651_vm7, %v603_v14  ;;  %v356_v14 = vld [vmem:[%s1010_s20 + $0xe8] sm:$0x3]  ;;  %v618_v28 = vpack.c.bf16 %v510_v4, %v510_v4  ;;  %v522_v61 = vsel %vm414_vm5, %v468_v47, 0.0  ;;  %v627_v9 = vpack.c.bf16 %v519_v51, %v519_v51  ;;  %v315_v15 = vadd.s32 208, %v997_v5 }
  0x4d   : > { %660 = vst.msk [vmem:[%s928_s16 + $0x1c] sm:$0xf] %vm651_vm7, %v604_v22  ;;  %v464_v22 = vld [vmem:[%s1023_s23 + $0xe8] sm:$0x3]  ;;  %vm410_vm1 = vcmp.eq.s32.totalorder %v356_v14, %v302_v10  ;;  %v473_v10 = vld [vmem:[%s1023_s23 + $0x130] sm:$0x3]  ;;  %vm425_vm2 = vcmp.eq.s32.totalorder %v371_v26, %v317_v21 }
  0x4e   : > { %661 = vst.msk [vmem:[%s928_s16 + $0x20] sm:$0x1] %vm654_vm8, %v605_v27  ;;  %v305_v27 = vadd.s32 144, %v1003_v7  ;;  %v1289_v39 = vsel %vm410_vm1, %v464_v22, 0.0  ;;  %v472_v4 = vld [vmem:[%s1023_s23 + $0x128] sm:$0xff]  ;;  %v630_v22 = vpack.c.bf16 %v522_v61, %v522_v61  ;;  %v318_v29 = vadd.s32 224, %v997_v5 }
  0x4f   : > { %662 = vst.msk [vmem:[%s928_s16 + $0x24] sm:$0xf] %vm651_vm7, %v606_v32  ;;  %v307_v32 = vadd.s32 160, %v999_v6  ;;  %v626_v1 = vpack.c.bf16 %v1289_v39, %v1289_v39  ;;  %v368_v14 = vld [vmem:[%s1010_s20 + $0x148] sm:$0x3]  ;;  %v481_v47 = vld [vmem:[%s1023_s23 + $0x170] sm:$0xff] }
  0x50   : > { %663 = vst.msk [vmem:[%s928_s16 + $0x28] sm:$0xf] %vm651_vm7, %v607_v33  ;;  %v619_v33 = vpack.c.bf16 %v511_v0, %v511_v0  ;;  %vm413_vm4 = vcmp.eq.s32.totalorder %v359_v30, %v305_v27  ;;  %v628_v0 = vpack.c.bf16 %v520_v56, %v520_v56  ;;  %v375_v51 = vld [vmem:[%s1010_s20 + $0x180] sm:$0xff]  ;;  %v323_v56 = vadd.s32 240, %v1003_v7 }
  0x51   : > { %664 = vst.msk [vmem:[%s928_s16 + $0x2c] sm:$0x1] %vm654_vm8, %v608_v40  ;;  %v362_v40 = vld [vmem:[%s1010_s20 + $0x118] sm:$0x3]  ;;  %vm415_vm6 = vcmp.eq.s32.totalorder %v361_v35, %v307_v32  ;;  %v521_v60 = vsel %vm413_vm4, %v467_v46, 0.0  ;;  %v633_v35 = vpack.c.bf16 %v1336_v3, %v1336_v3  ;;  %v480_v46 = vld [vmem:[%s1023_s23 + $0x168] sm:$0xff]  ;;  %vm427_vm4 = vcmp.eq.s32.totalorder %v373_v37, %v319_v34 }
  0x52   : > { %665 = vst.msk [vmem:[%s928_s16 + $0x30] sm:$0xf] %vm651_vm7, %v609_v49  ;;  %v470_v49 = vld [vmem:[%s1023_s23 + $0x118] sm:$0x3]  ;;  %vm416_vm9 = vcmp.eq.s32.totalorder %v362_v40, %v308_v36  ;;  %v523_v62 = vsel %vm415_vm6, %v469_v48, 0.0  ;;  %v629_v16 = vpack.c.bf16 %v521_v60, %v521_v60  ;;  %v321_v48 = vadd.s32 240, %v997_v5 }
  0x53   : > { %666 = vst.msk [vmem:[%s928_s16 + $0x34] sm:$0xf] %vm651_vm7, %v610_v50  ;;  %v310_v50 = vadd.s32 176, %v999_v6  ;;  %v1333_v2 = vsel %vm416_vm9, %v470_v49, 0.0  ;;  %v478_v32 = vld [vmem:[%s1023_s23 + $0x158] sm:$0xff]  ;;  %v324_v60 = vadd.s32 256, %v997_v5 }
  0x54   : > { %667 = vst.msk [vmem:[%s928_s16 + $0x38] sm:$0x1] %vm654_vm8, %v611_v54  ;;  %v311_v54 = vadd.s32 176, %v1003_v7  ;;  %v632_v30 = vpack.c.bf16 %v1333_v2, %v1333_v2  ;;  %v479_v36 = vld [vmem:[%s1023_s23 + $0x160] sm:$0x3]  ;;  %vm429_vm6 = vcmp.eq.s32.totalorder %v375_v51, %v321_v48  ;;  %v325_v2 = vadd.s32 256, %v999_v6 }
  0x55   : > { %668 = vst.msk [vmem:[%s928_s16 + $0x3c] sm:$0xf] %vm651_vm7, %v612_v55  ;;  %v624_v55 = vpack.c.bf16 %v1262_v20, %v1262_v20  ;;  %vm418_vm11 = vcmp.eq.s32.totalorder %v364_v53, %v310_v50  ;;  %v316_v20 = vadd.s32 208, %v999_v6  ;;  %v533_v50 = vsel %vm425_vm2, %v479_v36, 0.0 }
  0x56   : > { %669 = vst.msk [vmem:[%s928_s16 + $0x40] sm:$0xf] %vm651_vm7, %v613_v63  ;;  %v366_v63 = vld [vmem:[%s1010_s20 + $0x138] sm:$0xff]  ;;  %vm419_vm12 = vcmp.eq.s32.totalorder %v365_v57, %v311_v54  ;;  %v526_v17 = vsel %vm418_vm11, %v472_v4, 0.0  ;;  %v484_v4 = vld [vmem:[%s1023_s23 + $0x188] sm:$0xff] }
  0x57   : > { %670 = vst.msk [vmem:[%s928_s16 + $0x44] sm:$0x1] %vm654_vm8, %v614_v11  ;;  %v313_v11 = vadd.s32 192, %v999_v6  ;;  %vm420_vm13 = vcmp.eq.s32.totalorder %v366_v63, %v312_v58  ;;  %v527_v24 = vsel %vm419_vm12, %v473_v10, 0.0  ;;  %vm424_vm1 = vcmp.eq.s32.totalorder %v370_v25, %v316_v20  ;;  %v482_v54 = vld [vmem:[%s1023_s23 + $0x178] sm:$0x3] }
  0x58   : > { %671 = vst.msk [vmem:[%s928_s16 + $0x48] sm:$0xf] %vm651_vm7, %v615_v12  ;;  %v314_v12 = vadd.s32 192, %v1003_v7  ;;  %v528_v27 = vsel %vm420_vm13, %v474_v8, 0.0  ;;  %v634_v39 = vpack.c.bf16 %v526_v17, %v526_v17  ;;  %v635_v40 = vpack.c.bf16 %v527_v24, %v527_v24  ;;  %v483_v63 = vld [vmem:[%s1023_s23 + $0x180] sm:$0xff] }
  0x59   : > { %672 = vst.msk [vmem:[%s928_s16 + $0x4c] sm:$0xf] %vm651_vm7, %v616_v19  ;;  %v369_v19 = vld [vmem:[%s1010_s20 + $0x150] sm:$0xff]  ;;  %vm421_vm14 = vcmp.eq.s32.totalorder %v367_v13, %v313_v11  ;;  %v532_v49 = vsel %vm424_vm1, %v478_v32, 0.0  ;;  %v379_v8 = vld [vmem:[%s1010_s20 + $0x1a0] sm:$0xff]  ;;  %v641_v10 = vpack.c.bf16 %v533_v50, %v533_v50  ;;  %v486_v13 = vld [vmem:[%s1023_s23 + $0x198] sm:$0xff] }
  0x5a   : > { %673 = vst.msk [vmem:[%s928_s16 + $0x50] sm:$0x1] %vm654_vm8, %v617_v23  ;;  %v631_v23 = vpack.c.bf16 %v523_v62, %v523_v62  ;;  %vm422_vm15 = vcmp.eq.s32.totalorder %v368_v14, %v314_v12  ;;  %vm423_vm0 = vcmp.eq.s32.totalorder %v369_v19, %v315_v15  ;;  %v529_v41 = vsel %vm421_vm14, %v475_v18, 0.0  ;;  %v485_v11 = vld [vmem:[%s1023_s23 + $0x190] sm:$0x3]  ;;  %v487_v15 = vld [vmem:[%s1023_s23 + $0x1a0] sm:$0xff] }
  0x5b   : > { %674 = vst.msk [vmem:[%s928_s16 + $0x54] sm:$0xf] %vm651_vm7, %v618_v28  ;;  %v476_v28 = vld [vmem:[%s1023_s23 + $0x148] sm:$0x3]  ;;  %v531_v45 = vsel %vm423_vm0, %v477_v31, 0.0  ;;  %v637_v53 = vpack.c.bf16 %v529_v41, %v529_v41  ;;  %v535_v62 = vsel %vm427_vm4, %v481_v47, 0.0  ;;  %v640_v3 = vpack.c.bf16 %v532_v49, %v532_v49 }
  0x5c   : > { %675 = vst.msk [vmem:[%s928_s16 + $0x58] sm:$0xf] %vm651_vm7, %v619_v33  ;;  %v372_v33 = vld [vmem:[%s1010_s20 + $0x168] sm:$0xff]  ;;  %v639_v61 = vpack.c.bf16 %v531_v45, %v531_v45  ;;  %vm433_vm12 = vcmp.eq.s32.totalorder %v379_v8, %v325_v2 }
  0x5d   : > { %676 = vst.msk [vmem:[%s928_s16 + $0x5c] sm:$0x1] %vm654_vm8, %v620_v38  ;;  %v320_v38 = vadd.s32 224, %v1003_v7  ;;  %vm426_vm3 = vcmp.eq.s32.totalorder %v372_v33, %v318_v29  ;;  %v380_v6 = vld [vmem:[%s1010_s20 + $0x1a8] sm:$0x3] }
  0x5e   : > { %677 = vst.msk [vmem:[%s928_s16 + $0x60] sm:$0xf] %vm651_vm7, %v621_v42  ;;  %v530_v42 = vsel %vm422_vm15, %v476_v28, 0.0  ;;  %v534_v58 = vsel %vm426_vm3, %v480_v46, 0.0  ;;  %v488_v18 = vld [vmem:[%s1023_s23 + $0x1a8] sm:$0x3] }
  0x5f   : > { %678 = vst.msk [vmem:[%s928_s16 + $0x64] sm:$0xf] %vm651_vm7, %v622_v43  ;;  %v374_v43 = vld [vmem:[%s1010_s20 + $0x178] sm:$0x3]  ;;  %v638_v57 = vpack.c.bf16 %v530_v42, %v530_v42  ;;  %v642_v12 = vpack.c.bf16 %v534_v58, %v534_v58 }
  0x60   : > { %679 = vst.msk [vmem:[%s928_s16 + $0x68] sm:$0x1] %vm654_vm8, %v623_v44  ;;  %v636_v44 = vpack.c.bf16 %v528_v27, %v528_v27  ;;  %vm428_vm5 = vcmp.eq.s32.totalorder %v374_v43, %v320_v38 }
  0x61   : > { %680 = vst.msk [vmem:[%s928_s16 + $0x6c] sm:$0xf] %vm651_vm7, %v624_v55  ;;  %v376_v55 = vld [vmem:[%s1010_s20 + $0x188] sm:$0xff]  ;;  %v536_v5 = vsel %vm428_vm5, %v482_v54, 0.0 }
  0x62   : > { %681 = vst.msk [vmem:[%s928_s16 + $0x70] sm:$0xf] %vm651_vm7, %v625_v59  ;;  %v377_v59 = vld [vmem:[%s1010_s20 + $0x190] sm:$0x3]  ;;  %vm430_vm9 = vcmp.eq.s32.totalorder %v376_v55, %v322_v52 }
  0x63   : > { %682 = vst.msk [vmem:[%s928_s16 + $0x74] sm:$0x1] %vm654_vm8, %v626_v1  ;;  %v378_v1 = vld [vmem:[%s1010_s20 + $0x198] sm:$0xff]  ;;  %vm431_vm10 = vcmp.eq.s32.totalorder %v377_v59, %v323_v56  ;;  %v538_v14 = vsel %vm430_vm9, %v484_v4, 0.0 }
  0x64   : > { %683 = vst.msk [vmem:[%s928_s16 + $0x78] sm:$0xf] %vm651_vm7, %v627_v9  ;;  %v326_v9 = vadd.s32 256, %v1003_v7  ;;  %vm432_vm11 = vcmp.eq.s32.totalorder %v378_v1, %v324_v60  ;;  %v643_v7 = vpack.c.bf16 %v535_v62, %v535_v62  ;;  %v539_v17 = vsel %vm431_vm10, %v485_v11, 0.0 }
  0x65   : > { %684 = vst.msk [vmem:[%s928_s16 + $0x7c] sm:$0xf] %vm651_vm7, %v628_v0  ;;  %v537_v0 = vsel %vm429_vm6, %v483_v63, 0.0  ;;  %v540_v20 = vsel %vm432_vm11, %v486_v13, 0.0  ;;  %v646_v21 = vpack.c.bf16 %v538_v14, %v538_v14 }
  0x66   : > { %685 = vst.msk [vmem:[%s928_s16 + $0x80] sm:$0x1] %vm654_vm8, %v629_v16  ;;  %v644_v16 = vpack.c.bf16 %v536_v5, %v536_v5  ;;  %vm434_vm13 = vcmp.eq.s32.totalorder %v380_v6, %v326_v9  ;;  %v645_v19 = vpack.c.bf16 %v537_v0, %v537_v0  ;;  %v648_v25 = vpack.c.bf16 %v540_v20, %v540_v20 }
  0x67   : > { %686 = vst.msk [vmem:[%s928_s16 + $0x84] sm:$0xf] %vm651_vm7, %v630_v22  ;;  %v541_v22 = vsel %vm433_vm12, %v487_v15, 0.0  ;;  %v542_v24 = vsel %vm434_vm13, %v488_v18, 0.0 }
  0x68   : > { %687 = vst.msk [vmem:[%s928_s16 + $0x88] sm:$0xf] %vm651_vm7, %v631_v23  ;;  %v647_v23 = vpack.c.bf16 %v539_v17, %v539_v17  ;;  %v649_v26 = vpack.c.bf16 %v541_v22, %v541_v22  ;;  %v650_v27 = vpack.c.bf16 %v542_v24, %v542_v24 }
  0x69   : > { %688 = vst.msk [vmem:[%s928_s16 + $0x8c] sm:$0x1] %vm654_vm8, %v632_v30 }
  0x6a   : > { %689 = vst.msk [vmem:[%s928_s16 + $0x90] sm:$0xf] %vm651_vm7, %v633_v35 }
  0x6b   : > { %690 = vst.msk [vmem:[%s928_s16 + $0x94] sm:$0xf] %vm651_vm7, %v634_v39 }
  0x6c   : > { %691 = vst.msk [vmem:[%s928_s16 + $0x98] sm:$0x1] %vm654_vm8, %v635_v40 }
  0x6d   : > { %692 = vst.msk [vmem:[%s928_s16 + $0x9c] sm:$0xf] %vm651_vm7, %v636_v44 }
  0x6e   : > { %693 = vst.msk [vmem:[%s928_s16 + $0xa0] sm:$0xf] %vm651_vm7, %v637_v53 }
  0x6f   : > { %694 = vst.msk [vmem:[%s928_s16 + $0xa4] sm:$0x1] %vm654_vm8, %v638_v57 }
  0x70   : > { %695 = vst.msk [vmem:[%s928_s16 + $0xa8] sm:$0xf] %vm651_vm7, %v639_v61 }
  0x71   : > { %696 = vst.msk [vmem:[%s928_s16 + $0xac] sm:$0xf] %vm651_vm7, %v640_v3 }
  0x72   : > { %697 = vst.msk [vmem:[%s928_s16 + $0xb0] sm:$0x1] %vm654_vm8, %v641_v10 }
  0x73   : > { %698 = vst.msk [vmem:[%s928_s16 + $0xb4] sm:$0xf] %vm651_vm7, %v642_v12 }
  0x74   : > { %699 = vst.msk [vmem:[%s928_s16 + $0xb8] sm:$0xf] %vm651_vm7, %v643_v7 }
  0x75   : > { %700 = vst.msk [vmem:[%s928_s16 + $0xbc] sm:$0x1] %vm654_vm8, %v644_v16 }
  0x76   : > { %701 = vst.msk [vmem:[%s928_s16 + $0xc0] sm:$0xf] %vm651_vm7, %v645_v19 }
  0x77   : > { %702 = vst.msk [vmem:[%s928_s16 + $0xc4] sm:$0xf] %vm651_vm7, %v646_v21 }
  0x78   : > { %703 = vst.msk [vmem:[%s928_s16 + $0xc8] sm:$0x1] %vm654_vm8, %v647_v23 }
  0x79   : > { %704 = vst.msk [vmem:[%s928_s16 + $0xcc] sm:$0xf] %vm651_vm7, %v648_v25 }
  0x7a   : > { %705 = vst.msk [vmem:[%s928_s16 + $0xd0] sm:$0xf] %vm651_vm7, %v649_v26 }
  0x7b   : > { %706 = vst.msk [vmem:[%s928_s16 + $0xd4] sm:$0x1] %vm654_vm8, %v650_v27 }
  0x7c PF: > { %s12_s11 = sadd.s32 1, %s886_s11   ;;  %s1468_s9 = smov %s882_s10 }
  0x7d   : > { %p9_p5 = scmp.ge.s32.totalorder %s12_s11, 4   ;;  %s1469_s10 = smov %s1471_s12 }
  0x7f   :  { %11 = sbr.rel (!%p9_p5) target bundleno = 2 (0x2), region = 61 }

// kernel: decoder_forward.6
= control target key start
LH: loop header
LB: loop body
LE: loop exit
PB: predicated region body
PF: predicated region fallthrough
CT: control target
= control target key end

     0   :  { %s4654_s15 = smov 0   ;;  %s4656_s16 = smov 0   ;;  %s5712_s0 = inlined_call_operand.vmem [shape: bf16[2,18,18,128], index: 0, kind: input, shape index: {}]   ;;  %s5713_s1 = inlined_call_operand.vmem [shape: bf16[3,384,128], index: 1, kind: input, shape index: {}]   ;;  %s5714_s2 = inlined_call_operand.vmem [shape: f32[1,128], index: 2, kind: input, shape index: {}]   ;;  %s5715_s3 = inlined_call_operand.vmem [shape: bf16[2,16,16,128], index: 3, kind: output, shape index: {0}]   ;;  %s5716_s4 = inlined_call_operand.vmem [shape: f32[2,1,2,128], index: 4, kind: output, shape index: {1}]  }
   0x1   :  { %s4658_s17 = smov 0  }
   0x2 LB: > { %s27_s18 = sadd.s32 1, %s4623_s16  ;;  %p3602_p0 = scmp.ge.s32.totalorder %s4627_s17, 1  ;;  %s4627_s17 = sphi %s4658_s17, %s15_s17   ;;  %s4623_s16 = sphi %s4656_s16, %s5777_s16   ;;  %s4619_s15 = sphi %s4654_s15, %s5776_s15  }
   0x3   : > { %p29_p1 = scmp.ge.s32.totalorder %s27_s18, 2  ;;  %p181_p2 = scmp.lt.s32.totalorder %s4627_s17, 3 }
   0x5   : > { %s5779_s18 = smov (%p29_p1, %s27_s18), 0  ;;  %p182_p3 = pnand %p3602_p0, %p181_p2 }
   0x7   : > { %185 = sbr.rel (%p182_p3) target bundleno = 771 (0x303), region = 32 }
   0xc   : > { %v4153_v0 = vld [vmem:[%s5713_s1 + $0xf8] sm:$0xff]  ;;  %v4152_v1 = vld [vmem:[%s5713_s1 + $0xf0] sm:$0xff]  ;;  %v4151_v2 = vld [vmem:[%s5713_s1 + $0xe8] sm:$0xff]  ;;  %p219_p4 = scmp.lt.s32.totalorder %s4619_s15, 1  ;;  %vm454_vm0 = vsmask.f32 7424 }
   0xd   : > { %1549 = vmatpush.bf16.msra.mxu0 %v4153_v0  ;;  %4480 = vmatpush.bf16.msra.mxu1 %v4153_v0  ;;  %v4150_v3 = vld [vmem:[%s5713_s1 + $0xe0] sm:$0xff]  ;;  %v4149_v4 = vld [vmem:[%s5713_s1 + $0xd8] sm:$0xff]  ;;  %v4148_v5 = vld [vmem:[%s5713_s1 + $0xd0] sm:$0xff]  ;;  %vm711_vm1 = vcmask 1046528   ;;  %vm3457_vm2 = vcmask 1040384  }
   0xe   : > { %4481 = vmatpush.bf16.msra.mxu2 %v4153_v0  ;;  %4482 = vmatpush.bf16.msra.mxu3 %v4153_v0  ;;  %s5781_s15 = smov (!%p219_p4, %s4619_s15), 1  ;;  %v4147_v6 = vld [vmem:[%s5713_s1 + $0xc8] sm:$0xff]  ;;  %v4146_v15 = vld [vmem:[%s5713_s1 + $0xc0] sm:$0xff]  ;;  %v4169_v16 = vld [vmem:[%s5713_s1 + $0x178] sm:$0xff] }
   0xf   : > { %s4504_s29 = smul.u32 216, %s5781_s15  ;;  %v4129_v17 = vld [vmem:[%s5713_s1 + $0x38] sm:$0xff]  ;;  %v4168_v20 = vld [vmem:[%s5713_s1 + $0x170] sm:$0xff]  ;;  %v4167_v24 = vld [vmem:[%s5713_s1 + $0x168] sm:$0xff]  ;;  %s4121_s21 = sshll.u32 %s5781_s15, 7 }
  0x10   : > { %v4161_v18 = vld [vmem:[%s5713_s1 + $0x138] sm:$0xff]  ;;  %v4128_v21 = vld [vmem:[%s5713_s1 + $0x30] sm:$0xff]  ;;  %v4127_v25 = vld [vmem:[%s5713_s1 + $0x28] sm:$0xff]  ;;  %s5545_s24 = scalar_lea.vmem %s5715_s3, %s4121_s21  ;;  %s3606_s26 = sshll.u32 %s5781_s15, 1 }
  0x11   : > { %1550 = vmatpush.bf16.msra.mxu0 %v4152_v1  ;;  %4483 = vmatpush.bf16.msra.mxu1 %v4152_v1  ;;  %s4696_s8 = scalar_lea.vmem %s5712_s0, %s4504_s29  ;;  %v4137_v19 = vld [vmem:[%s5713_s1 + $0x78] sm:$0xff]  ;;  %v4160_v22 = vld [vmem:[%s5713_s1 + $0x130] sm:$0xff]  ;;  %v4159_v26 = vld [vmem:[%s5713_s1 + $0x128] sm:$0xff]  ;;  %s241_s29 = scalar_lea.vmem %s5716_s4, %s3606_s26 }
  0x12   : > { %4484 = vmatpush.bf16.msra.mxu2 %v4152_v1  ;;  %4485 = vmatpush.bf16.msra.mxu3 %v4152_v1  ;;  %v4702_v7 = vld [vmem:[%s4696_s8 + $0xc] sm:$0xff]   ;;  %v4708_v9 = vld [vmem:[%s4696_s8 + $0x3c] sm:$0xff]   ;;  %v4824_v46 = vld [vmem:[%s4696_s8 + $0x24] sm:$0xff]  }
  0x13   : > { %v4705_v8 = vld [vmem:[%s4696_s8 + $0xc] sm:$0xf0]  ;;  %v4711_v10 = vld [vmem:[%s4696_s8 + $0x3c] sm:$0xf0]  ;;  %v4135_v27 = vld [vmem:[%s5713_s1 + $0x68] sm:$0xff] }
  0x14   : > { %v4714_v11 = vld [vmem:[%s4696_s8 + $0x6c] sm:$0xff]   ;;  %v4720_v13 = vld [vmem:[%s4696_s8 + $0x9c] sm:$0xff]   ;;  %v4827_v47 = vld [vmem:[%s4696_s8 + $0x24] sm:$0xf0] }
  0x15   : > { %1551 = vmatpush.bf16.msra.mxu0 %v4151_v2  ;;  %4486 = vmatpush.bf16.msra.mxu1 %v4151_v2  ;;  %v4717_v12 = vld [vmem:[%s4696_s8 + $0x6c] sm:$0xf0]  ;;  %v4723_v14 = vld [vmem:[%s4696_s8 + $0x9c] sm:$0xf0]  ;;  %v4165_v32 = vld [vmem:[%s5713_s1 + $0x158] sm:$0xff] }
  0x16   : > { %4487 = vmatpush.bf16.msra.mxu2 %v4151_v2  ;;  %4488 = vmatpush.bf16.msra.mxu3 %v4151_v2  ;;  %v4136_v23 = vld [vmem:[%s5713_s1 + $0x70] sm:$0xff]  ;;  %v4166_v28 = vld [vmem:[%s5713_s1 + $0x160] sm:$0xff]  ;;  %v4125_v33 = vld [vmem:[%s5713_s1 + $0x18] sm:$0xff] }
  0x17   : > { %v4126_v29 = vld [vmem:[%s5713_s1 + $0x20] sm:$0xff]  ;;  %v4787_v34 = vld [vmem:[%s4696_s8 + $0x18] sm:$0xff]   ;;  %v4790_v35 = vld [vmem:[%s4696_s8 + $0x48] sm:$0xff]  }
  0x18   : > { %v4158_v30 = vld [vmem:[%s5713_s1 + $0x120] sm:$0xff]  ;;  %v4793_v36 = vld [vmem:[%s4696_s8 + $0x78] sm:$0xff]   ;;  %v4407_v37 = vld [vmem:[%s4696_s8 + $0xa8] sm:$0xff]  }
  0x19   : > { %1552 = vmatpush.bf16.msra.mxu0 %v4150_v3  ;;  %4489 = vmatpush.bf16.msra.mxu1 %v4150_v3  ;;  %v4134_v31 = vld [vmem:[%s5713_s1 + $0x60] sm:$0xff]  ;;  %v4157_v38 = vld [vmem:[%s5713_s1 + $0x118] sm:$0xff]  ;;  %v4164_v40 = vld [vmem:[%s5713_s1 + $0x150] sm:$0xff] }
  0x1a   : > { %4490 = vmatpush.bf16.msra.mxu2 %v4150_v3  ;;  %4491 = vmatpush.bf16.msra.mxu3 %v4150_v3  ;;  %v4133_v39 = vld [vmem:[%s5713_s1 + $0x58] sm:$0xff]  ;;  %v4124_v41 = vld [vmem:[%s5713_s1 + $0x10] sm:$0xff]  ;;  %v4163_v44 = vld [vmem:[%s5713_s1 + $0x148] sm:$0xff] }
  0x1b   : > { %v4156_v42 = vld [vmem:[%s5713_s1 + $0x110] sm:$0xff]  ;;  %v4123_v45 = vld [vmem:[%s5713_s1 + $0x8] sm:$0xff]  ;;  %v4833_v49 = vld [vmem:[%s4696_s8 + $0x54] sm:$0xf0] }
  0x1c   : > { %v4132_v43 = vld [vmem:[%s5713_s1 + $0x50] sm:$0xff]  ;;  %v4836_v50 = vld [vmem:[%s4696_s8 + $0x84] sm:$0xff]   ;;  %v4845_v53 = vld [vmem:[%s4696_s8 + $0xb4] sm:$0xf0] }
  0x1d   : > { %1553 = vmatpush.bf16.msra.mxu0 %v4149_v4  ;;  %4492 = vmatpush.bf16.msra.mxu1 %v4149_v4  ;;  %v4830_v48 = vld [vmem:[%s4696_s8 + $0x54] sm:$0xff]   ;;  %v4839_v51 = vld [vmem:[%s4696_s8 + $0x84] sm:$0xf0]  ;;  %v4162_v56 = vld [vmem:[%s5713_s1 + $0x140] sm:$0xff] }
  0x1e   : > { %4493 = vmatpush.bf16.msra.mxu2 %v4149_v4  ;;  %4494 = vmatpush.bf16.msra.mxu3 %v4149_v4  ;;  %v4842_v52 = vld [vmem:[%s4696_s8 + $0xb4] sm:$0xff]   ;;  %v4155_v54 = vld [vmem:[%s5713_s1 + $0x108] sm:$0xff]  ;;  %v4122_v57 = vld [vmem:[%s5713_s1] sm:$0xff] }
  0x1f   : > { %v4131_v55 = vld [vmem:[%s5713_s1 + $0x48] sm:$0xff]  ;;  %v4154_v58 = vld [vmem:[%s5713_s1 + $0x100] sm:$0xff]  ;;  %v4177_v60 = vld [vmem:[%s5713_s1 + $0x1b8] sm:$0xff] }
  0x20   : > { %v4130_v59 = vld [vmem:[%s5713_s1 + $0x40] sm:$0xff]  ;;  %v4185_v61 = vld [vmem:[%s5713_s1 + $0x1f8] sm:$0xff]  ;;  %v3639_v0 = vld [vmem:[%s4696_s8 + $0x14] sm:$0x1] }
  0x21   : > { %1554 = vmatpush.bf16.msra.mxu0 %v4148_v5  ;;  %4495 = vmatpush.bf16.msra.mxu1 %v4148_v5  ;;  %v4145_v62 = vld [vmem:[%s5713_s1 + $0xb8] sm:$0xff]  ;;  %v278_v1 = vld [vmem:[%s4696_s8 + $0x8] sm:$0x1]  ;;  %v1004_v2 = vunpack.c.l.b16 %v3639_v0  ;;  %v4884_v3 = vld [vmem:[%s4696_s8 + $0x30] sm:$0xff]  }
  0x22   : > { %4496 = vmatpush.bf16.msra.mxu2 %v4148_v5  ;;  %4497 = vmatpush.bf16.msra.mxu3 %v4148_v5  ;;  %v4193_v63 = vld [vmem:[%s5713_s1 + $0x238] sm:$0xff]  ;;  %v4887_v4 = vld [vmem:[%s4696_s8 + $0x60] sm:$0xff]   ;;  %v422_v5 = vunpack.c.l.b16 %v278_v1 }
  0x25   : > { %1555 = vmatpush.bf16.msra.mxu0 %v4147_v6  ;;  %4498 = vmatpush.bf16.msra.mxu1 %v4147_v6 }
  0x26   : > { %4499 = vmatpush.bf16.msra.mxu2 %v4147_v6  ;;  %4500 = vmatpush.bf16.msra.mxu3 %v4147_v6  ;;  %v4890_v6 = vld [vmem:[%s4696_s8 + $0x90] sm:$0xff]  }
  0x29   : > { %1556 = vmatpush.bf16.msra.mxu0 %v4146_v15  ;;  %4501 = vmatpush.bf16.msra.mxu1 %v4146_v15 }
  0x2a   : > { %4502 = vmatpush.bf16.msra.mxu2 %v4146_v15  ;;  %4503 = vmatpush.bf16.msra.mxu3 %v4146_v15  ;;  %v4408_v15 = vld [vmem:[%s4696_s8 + $0xc0] sm:$0xff]  }
  0x2c   : > { %1557 = vmatmul.bf16.vlgmr.msra.gmra.mxu0 %v4702_v7  ;;  %1577 = vmatmul.bf16.vlgmr.msra.gmra.mxu1 %v4708_v9 }
  0x2d   : > { %1597 = vmatmul.bf16.vlgmr.msra.gmra.mxu2 %v4714_v11  ;;  %1617 = vmatmul.bf16.vlgmr.msra.gmra.mxu3 %v4720_v13 }
  0x2e   : > { %1727 = vmatpush.bf16.msrb.mxu2 %v4169_v16  ;;  %1960 = vmatpush.bf16.msrb.mxu3 %v4129_v17  ;;  %v4195_v16 = vld [vmem:[%s4696_s8] sm:$0xff]   ;;  %v4534_v17 = vld [vmem:[%s4696_s8 + $0xc] sm:$0xe] }
  0x2f   : > { %1638 = vmatpush.bf16.msrb.mxu1 %v4161_v18  ;;  %2049 = vmatpush.bf16.msrb.mxu0 %v4137_v19  ;;  %v1039_v18 = vshll.u32 %v4702_v7, 16  ;;  %v1020_v19 = vpack.c.b16 %v1004_v2, %v1004_v2 }
  0x32   : > { %1728 = vmatpush.bf16.msrb.mxu2 %v4168_v20  ;;  %1961 = vmatpush.bf16.msrb.mxu3 %v4128_v21  ;;  %v458_v20 = vshll.u32 %v4195_v16, 16  ;;  %v4899_v21 = vpack.c.b16 %v422_v5, %v422_v5 }
  0x33   : > { %1639 = vmatpush.bf16.msrb.mxu1 %v4160_v22  ;;  %2050 = vmatpush.bf16.msrb.mxu0 %v4136_v23  ;;  %v1037_v22 = vshrl.u32 %v4702_v7, 16  ;;  %v1041_v23 = vrot.slane %v1039_v18, 1  ;;  %v1293_v7 = vrot.slane %v1020_v19, 1 }
  0x36   : > { %1729 = vmatpush.bf16.msrb.mxu2 %v4167_v24  ;;  %1962 = vmatpush.bf16.msrb.mxu3 %v4127_v25  ;;  %v1044_v24 = vshll.u32 %v1020_v19, 16  ;;  %v456_v25 = vshrl.u32 %v4195_v16, 16 }
  0x37   : > { %1640 = vmatpush.bf16.msrb.mxu1 %v4159_v26  ;;  %2051 = vmatpush.bf16.msrb.mxu0 %v4135_v27  ;;  %v460_v26 = vrot.slane %v458_v20, 1  ;;  %v463_v27 = vshll.u32 %v4899_v21, 16 }
  0x3a   : > { %1730 = vmatpush.bf16.msrb.mxu2 %v4166_v28  ;;  %1963 = vmatpush.bf16.msrb.mxu3 %v4126_v29  ;;  %v4535_v28 = vor.u32 %v4534_v17, %v4705_v8  ;;  %v248_v29 = vld [vmem:[%s4696_s8 + $0xc] sm:$0xff]  }
  0x3b   : > { %1641 = vmatpush.bf16.msrb.mxu1 %v4158_v30  ;;  %2052 = vmatpush.bf16.msrb.mxu0 %v4134_v31  ;;  %v4906_v30 = vld [vmem:[%s4696_s8 + $0xc] sm:$0xf0]  ;;  %v1042_v31 = vor.u32 %v1041_v23, %v1037_v22  ;;  %v468_v2 = vshrl.u32 %v248_v29, 16  ;;  %v3641_v22 = vld [vmem:[%s4696_s8 + $0x2c] sm:$0x1] }
  0x3c   : > { %1562 = vmatmul.bf16.gmra.mxu0 %v4787_v34  ;;  %1582 = vmatmul.bf16.gmra.mxu1 %v4790_v35 }
  0x3d   : > { %1602 = vmatmul.bf16.gmra.mxu2 %v4793_v36  ;;  %1622 = vmatmul.bf16.gmra.mxu3 %v4407_v37  ;;  %v465_v37 = vrot.slane %v463_v27, 1 }
  0x3e   : > { %1731 = vmatpush.bf16.msrb.mxu2 %v4165_v32  ;;  %1964 = vmatpush.bf16.msrb.mxu3 %v4125_v33  ;;  %v1046_v32 = vrot.slane %v1044_v24, 1  ;;  %v461_v33 = vor.u32 %v460_v26, %v456_v25  ;;  %v280_v25 = vld [vmem:[%s4696_s8 + $0x20] sm:$0x1]  ;;  %v1006_v26 = vunpack.c.l.b16 %v3641_v22 }
  0x3f   : > { %1642 = vmatpush.bf16.msrb.mxu1 %v4157_v38  ;;  %2053 = vmatpush.bf16.msrb.mxu0 %v4133_v39  ;;  %v1292_v38 = vrot.slane %v4535_v28, 1  ;;  %v3640_v39 = vld [vmem:[%s4696_s8 + $0x20] sm:$0x1] }
  0x42   : > { %1732 = vmatpush.bf16.msrb.mxu2 %v4164_v40  ;;  %1965 = vmatpush.bf16.msrb.mxu3 %v4124_v41  ;;  %v279_v40 = vld [vmem:[%s4696_s8 + $0x14] sm:$0x1]  ;;  %v1047_v41 = vsel %vm454_vm0, %v1042_v31, %v1046_v32  ;;  %v424_v31 = vunpack.c.l.b16 %v280_v25  ;;  %v4191_v25 = vld [vmem:[%s5713_s1 + $0x228] sm:$0xff] }
  0x43   : > { %1643 = vmatpush.bf16.msrb.mxu1 %v4156_v42  ;;  %2054 = vmatpush.bf16.msrb.mxu0 %v4132_v43  ;;  %v466_v42 = vsel %vm454_vm0, %v461_v33, %v465_v37  ;;  %v1005_v43 = vunpack.c.l.b16 %v3640_v39  ;;  %v423_v8 = vunpack.c.l.b16 %v279_v40  ;;  %v4537_v33 = vld [vmem:[%s4696_s8 + $0x24] sm:$0xe]  ;;  %v1022_v37 = vpack.c.b16 %v1006_v26, %v1006_v26 }
  0x44   : > { %v1061_v39 = vshrl.u32 %v4824_v46, 16 }
  0x46   : > { %1733 = vmatpush.bf16.msrb.mxu2 %v4163_v44  ;;  %1966 = vmatpush.bf16.msrb.mxu3 %v4123_v45  ;;  %v1294_v44 = vsel %vm711_vm1, %v1292_v38, %v1293_v7  ;;  %v1051_v45 = vshll.u32 %v4787_v34, 16  ;;  %v1063_v38 = vshll.u32 %v4824_v46, 16  ;;  %v4939_v7 = vpack.c.b16 %v424_v31, %v424_v31 }
  0x47   : > { %1644 = vmatpush.bf16.msrb.mxu1 %v4155_v54  ;;  %2055 = vmatpush.bf16.msrb.mxu0 %v4131_v55  ;;  %v1021_v54 = vpack.c.b16 %v1005_v43, %v1005_v43  ;;  %v4914_v55 = vpack.c.b16 %v423_v8, %v423_v8  ;;  %v4538_v43 = vor.u32 %v4537_v33, %v4827_v47  ;;  %v252_v8 = vld [vmem:[%s4696_s8 + $0x24] sm:$0xff]  }
  0x48   : > { %v1053_v0 = vrot.slane %v1051_v45, 1  ;;  %v1065_v40 = vrot.slane %v1063_v38, 1  ;;  %v3643_v33 = vld [vmem:[%s4696_s8 + $0x44] sm:$0x1] }
  0x49   : > { %v1056_v1 = vshll.u32 %v1021_v54, 16  ;;  %v1296_v24 = vrot.slane %v1021_v54, 1 }
  0x4a   : > { %1734 = vmatpush.bf16.msrb.mxu2 %v4162_v56  ;;  %1967 = vmatpush.bf16.msrb.mxu3 %v4122_v57  ;;  %v470_v56 = vshll.u32 %v248_v29, 16  ;;  %v4176_v57 = vld [vmem:[%s5713_s1 + $0x1b0] sm:$0xff]  ;;  %v1066_v45 = vor.u32 %v1065_v40, %v1061_v39  ;;  %v282_v39 = vld [vmem:[%s4696_s8 + $0x38] sm:$0x1]  ;;  %v1008_v40 = vunpack.c.l.b16 %v3643_v33 }
  0x4b   : > { %1645 = vmatpush.bf16.msrb.mxu1 %v4154_v58  ;;  %2056 = vmatpush.bf16.msrb.mxu0 %v4130_v59  ;;  %v4184_v58 = vld [vmem:[%s5713_s1 + $0x1f0] sm:$0xff]  ;;  %v1058_v18 = vrot.slane %v1056_v1, 1 }
  0x4c   : > { %1567 = vmatmul.bf16.gmra.mxu0 %v4824_v46  ;;  %1587 = vmatmul.bf16.gmra.mxu1 %v4830_v48  ;;  %v4144_v59 = vld [vmem:[%s5713_s1 + $0xb0] sm:$0xff]  ;;  %v472_v5 = vrot.slane %v470_v56, 1 }
  0x4d   : > { %1607 = vmatmul.bf16.gmra.mxu2 %v4836_v50  ;;  %1627 = vmatmul.bf16.gmra.mxu3 %v4842_v52 }
  0x4e   : > { %2952 = vmatpush.bf16.msra.mxu2 %v4177_v60  ;;  %3041 = vmatpush.bf16.msra.mxu3 %v4185_v61  ;;  %v4192_v60 = vld [vmem:[%s5713_s1 + $0x230] sm:$0xff]  ;;  %v4409_v61 = vld [vmem:[%s4696_s8 + $0x18] sm:$0xf0]  ;;  %v473_v19 = vor.u32 %v472_v5, %v468_v2  ;;  %v494_v2 = vshll.u32 %v252_v8, 16  ;;  %v4175_v5 = vld [vmem:[%s5713_s1 + $0x1a8] sm:$0xff] }
  0x4f   : > { %2138 = vmatpush.bf16.msra.mxu1 %v4145_v62  ;;  %3130 = vmatpush.bf16.msra.mxu0 %v4193_v63  ;;  %v4410_v62 = vld [vmem:[%s4696_s8 + $0x18] sm:$0xe]  ;;  %v1049_v63 = vshrl.u32 %v4787_v34, 16 }
  0x50   : > { %v496_v22 = vrot.slane %v494_v2, 1 }
  0x51   : > { %v1054_v17 = vor.u32 %v1053_v0, %v1049_v63  ;;  %v1075_v63 = vshll.u32 %v4884_v3, 16 }
  0x52   : > { %2953 = vmatpush.bf16.msra.mxu2 %v4176_v57  ;;  %3042 = vmatpush.bf16.msra.mxu3 %v4184_v58  ;;  %v1298_v57 = vrot.slane %v4538_v43, 1  ;;  %v1299_v58 = vrot.slane %v1022_v37, 1  ;;  %v426_v43 = vunpack.c.l.b16 %v282_v39 }
  0x53   : > { %2139 = vmatpush.bf16.msra.mxu1 %v4144_v59  ;;  %3131 = vmatpush.bf16.msra.mxu0 %v4192_v60  ;;  %v1059_v27 = vsel %vm454_vm0, %v1054_v17, %v1058_v18  ;;  %v3642_v59 = vld [vmem:[%s4696_s8 + $0x38] sm:$0x1]  ;;  %v1073_v18 = vshrl.u32 %v4884_v3, 16 }
  0x54   : > { %v1300_v47 = vsel %vm711_vm1, %v1298_v57, %v1299_v58  ;;  %v1087_v57 = vshll.u32 %v4708_v9, 16  ;;  %v4980_v58 = vpack.c.b16 %v426_v43, %v426_v43 }
  0x56   : > { %2954 = vmatpush.bf16.msra.mxu2 %v4175_v5  ;;  %5724 = vst [vmem:[#allocation2_spill] sm:$0xff] %v4980_v58 }
  0x57   : > { %3132 = vmatpush.bf16.msra.mxu0 %v4191_v25 }
  0x5c   : > { %1572 = vmatmul.bf16.gmra.mxu0 %v4884_v3  ;;  %1592 = vmatmul.bf16.gmra.mxu1 %v4887_v4 }
  0x5d   : > { %1612 = vmatmul.bf16.gmra.mxu2 %v4890_v6  ;;  %1632 = vmatmul.bf16.gmra.mxu3 %v4408_v15  ;;  %v475_v15 = vshll.u32 %v4914_v55, 16 }
  0x5f   : > { %v477_v20 = vrot.slane %v475_v15, 1  ;;  %v4183_v15 = vld [vmem:[%s5713_s1 + $0x1e8] sm:$0xff] }
  0x60   : > { %3043 = vmatpush.bf16.msra.mxu3 %v4183_v15 }
  0x61   : > { %v478_v28 = vsel %vm454_vm0, %v473_v19, %v477_v20  ;;  %v492_v20 = vshrl.u32 %v252_v8, 16 }
  0x63   : > { %v497_v31 = vor.u32 %v496_v22, %v492_v20  ;;  %v1099_v22 = vshll.u32 %v4790_v35, 16 }
  0x6c   : > { %1646 = vmatmul.bf16.vlgmr.msrb.gmra.mxu1 %v1047_v41  ;;  %2057 = vmatmul.bf16.vlgmr.msrb.gmra.mxu0 %v466_v42  ;;  %v1068_v41 = vshll.u32 %v1022_v37, 16  ;;  %v487_v42 = vshll.u32 %v4939_v7, 16 }
  0x6d   : > { %1735 = vmatmul.bf16.vlgmr.msrb.gmra.mxu2 %v1294_v44  ;;  %1968 = vmatmul.bf16.vlgmr.msrb.gmra.mxu3 %v4195_v16  ;;  %v4411_v16 = vor.u32 %v4410_v62, %v4409_v61  ;;  %v4946_v44 = vld [vmem:[%s4696_s8 + $0x24] sm:$0xf0]  ;;  %v1007_v61 = vunpack.c.l.b16 %v3642_v59  ;;  %v1085_v59 = vshrl.u32 %v4708_v9, 16 }
  0x6e   : > { %v1070_v54 = vrot.slane %v1068_v41, 1  ;;  %v489_v56 = vrot.slane %v487_v42, 1 }
  0x6f   : > { %v1295_v23 = vrot.slane %v4411_v16, 1  ;;  %v1023_v0 = vpack.c.b16 %v1007_v61, %v1007_v61  ;;  %v4412_v16 = vld [vmem:[%s4696_s8 + $0x30] sm:$0xf0] }
  0x70   : > { %v1071_v60 = vsel %vm454_vm0, %v1066_v45, %v1070_v54  ;;  %v490_v46 = vsel %vm454_vm0, %v1054_v17, %v489_v56  ;;  %v4413_v17 = vld [vmem:[%s4696_s8 + $0x30] sm:$0xe]  ;;  %v4540_v54 = vld [vmem:[%s4696_s8 + $0x3c] sm:$0xe]  ;;  %v1024_v56 = vpack.c.b16 %v1008_v40, %v1008_v40 }
  0x71   : > { %v1297_v32 = vsel %vm711_vm1, %v1295_v23, %v1296_v24  ;;  %v1080_v19 = vshll.u32 %v1023_v0, 16  ;;  %v4143_v24 = vld [vmem:[%s5713_s1 + $0xa8] sm:$0xff]  ;;  %v4414_v26 = vor.u32 %v4413_v17, %v4412_v16  ;;  %v1302_v38 = vrot.slane %v1023_v0, 1  ;;  %v283_v16 = vld [vmem:[%s4696_s8 + $0x44] sm:$0x1] }
  0x72   : > { %2140 = vmatpush.bf16.msra.mxu1 %v4143_v24  ;;  %v4541_v61 = vor.u32 %v4540_v54, %v4711_v10  ;;  %v1305_v15 = vrot.slane %v1024_v56, 1  ;;  %v4190_v54 = vld [vmem:[%s5713_s1 + $0x220] sm:$0xff] }
  0x73   : > { %v1301_v37 = vrot.slane %v4414_v26, 1  ;;  %v4174_v26 = vld [vmem:[%s5713_s1 + $0x1a0] sm:$0xff]  ;;  %3133 = vmatpush.bf16.msra.mxu0 %v4190_v54 }
  0x74   : > { %v1304_v5 = vrot.slane %v4541_v61, 1  ;;  %2955 = vmatpush.bf16.msra.mxu2 %v4174_v26 }
  0x75   : > { %v1303_v45 = vsel %vm711_vm1, %v1301_v37, %v1302_v38 }
  0x76   : > { %v1306_v20 = vsel %vm711_vm1, %v1304_v5, %v1305_v15 }
  0x7c   : > { %1651 = vmatmul.bf16.gmra.mxu1 %v1059_v27  ;;  %2062 = vmatmul.bf16.gmra.mxu0 %v478_v28  ;;  %v1082_v28 = vrot.slane %v1080_v19, 1  ;;  %v427_v19 = vunpack.c.l.b16 %v283_v16 }
  0x7d   : > { %1740 = vmatmul.bf16.gmra.mxu2 %v1297_v32  ;;  %1973 = vmatmul.bf16.gmra.mxu3 %v248_v29  ;;  %v281_v29 = vld [vmem:[%s4696_s8 + $0x2c] sm:$0x1] }
  0x7e   : > { %v425_v62 = vunpack.c.l.b16 %v281_v29  ;;  %v1089_v29 = vrot.slane %v1087_v57, 1  ;;  %v5002_v24 = vpack.c.b16 %v427_v19, %v427_v19 }
  0x80   : > { %v4955_v1 = vpack.c.b16 %v425_v62, %v425_v62  ;;  %v4986_v62 = vld [vmem:[%s4696_s8 + $0x3c] sm:$0xff]   ;;  %5726 = vst [vmem:[#allocation4_spill] sm:$0xff] %v5002_v24  ;;  %v523_v43 = vshll.u32 %v5002_v24, 16 }
  0x81   : > { %v518_v25 = vshll.u32 %v4986_v62, 16 }
  0x82   : > { %v499_v23 = vshll.u32 %v4955_v1, 16 }
  0x84   : > { %v501_v32 = vrot.slane %v499_v23, 1 }
  0x86   : > { %v502_v42 = vsel %vm454_vm0, %v497_v31, %v501_v32  ;;  %v4416_v31 = vld [vmem:[%s4696_s8 + $0x48] sm:$0xe]  ;;  %v1097_v32 = vshrl.u32 %v4790_v35, 16 }
  0x8c   : > { %1656 = vmatmul.bf16.gmra.mxu1 %v1071_v60  ;;  %2067 = vmatmul.bf16.gmra.mxu0 %v490_v46  ;;  %v1092_v60 = vshll.u32 %v1024_v56, 16  ;;  %v511_v46 = vshll.u32 %v4980_v58, 16 }
  0x8d   : > { %1745 = vmatmul.bf16.gmra.mxu2 %v1300_v47  ;;  %1978 = vmatmul.bf16.gmra.mxu3 %v4787_v34  ;;  %v1077_v34 = vrot.slane %v1075_v63, 1  ;;  %v4989_v47 = vld [vmem:[%s4696_s8 + $0x3c] sm:$0xf0]  ;;  %v1090_v63 = vor.u32 %v1089_v29, %v1085_v59 }
  0x8e   : > { %5725 = vst [vmem:[#allocation3_spill] sm:$0xff] %v4989_v47  ;;  %v1094_v0 = vrot.slane %v1092_v60, 1  ;;  %v513_v2 = vrot.slane %v511_v46, 1  ;;  %v525_v60 = vrot.slane %v523_v43, 1  ;;  %v3645_v46 = vld [vmem:[%s4696_s8 + $0x5c] sm:$0x1] }
  0x8f   : > { %v1078_v27 = vor.u32 %v1077_v34, %v1073_v18  ;;  %v1010_v15 = vunpack.c.l.b16 %v3645_v46  ;;  %v5063_v43 = vld [vmem:[%s4696_s8 + $0x54] sm:$0xf0] }
  0x90   : > { %v1095_v17 = vsel %vm454_vm0, %v1090_v63, %v1094_v0  ;;  %v284_v0 = vld [vmem:[%s4696_s8 + $0x50] sm:$0x1]  ;;  %5731 = vst [vmem:[#allocation9_spill] sm:$0xff] %v5063_v43  ;;  %v3647_v43 = vld [vmem:[%s4696_s8 + $0x74] sm:$0x1] }
  0x91   : > { %v1083_v41 = vsel %vm454_vm0, %v1078_v27, %v1082_v28  ;;  %v514_v10 = vsel %vm454_vm0, %v1078_v27, %v513_v2  ;;  %v4182_v27 = vld [vmem:[%s5713_s1 + $0x1e0] sm:$0xff]  ;;  %v4415_v28 = vld [vmem:[%s4696_s8 + $0x48] sm:$0xf0] }
  0x92   : > { %3044 = vmatpush.bf16.msra.mxu3 %v4182_v27  ;;  %v4417_v56 = vor.u32 %v4416_v31, %v4415_v28  ;;  %v1109_v28 = vshrl.u32 %v4830_v48, 16 }
  0x94   : > { %v1307_v61 = vrot.slane %v4417_v56, 1 }
  0x9c   : > { %1661 = vmatmul.bf16.gmra.mxu1 %v1083_v41  ;;  %2072 = vmatmul.bf16.gmra.mxu0 %v502_v42  ;;  %v516_v41 = vshrl.u32 %v4986_v62, 16  ;;  %v520_v42 = vrot.slane %v518_v25, 1 }
  0x9d   : > { %1750 = vmatmul.bf16.gmra.mxu2 %v1303_v45  ;;  %1983 = vmatmul.bf16.gmra.mxu3 %v252_v8  ;;  %v3644_v8 = vld [vmem:[%s4696_s8 + $0x50] sm:$0x1]  ;;  %v4142_v45 = vld [vmem:[%s5713_s1 + $0xa0] sm:$0xff] }
  0x9e   : > { %v1009_v34 = vunpack.c.l.b16 %v3644_v8  ;;  %2141 = vmatpush.bf16.msra.mxu1 %v4142_v45  ;;  %v521_v29 = vor.u32 %v520_v42, %v516_v41  ;;  %v5060_v42 = vld [vmem:[%s4696_s8 + $0x54] sm:$0xff]  }
  0xa0   : > { %v1025_v23 = vpack.c.b16 %v1009_v34, %v1009_v34  ;;  %v428_v34 = vunpack.c.l.b16 %v284_v0 }
  0xa2   : > { %v1104_v40 = vshll.u32 %v1025_v23, 16  ;;  %v1308_v63 = vrot.slane %v1025_v23, 1  ;;  %v1111_v23 = vshll.u32 %v4830_v48, 16  ;;  %v5046_v25 = vpack.c.b16 %v428_v34, %v428_v34  ;;  %v3646_v48 = vld [vmem:[%s4696_s8 + $0x68] sm:$0x1] }
  0xa4   : > { %v1106_v59 = vrot.slane %v1104_v40, 1  ;;  %v1309_v19 = vsel %vm711_vm1, %v1307_v61, %v1308_v63  ;;  %5729 = vst [vmem:[#allocation7_spill] sm:$0xff] %v5046_v25  ;;  %v1113_v31 = vrot.slane %v1111_v23, 1  ;;  %v535_v41 = vshll.u32 %v5046_v25, 16 }
  0xa5   : > { %v542_v23 = vshll.u32 %v5060_v42, 16 }
  0xa6   : > { %v1114_v45 = vor.u32 %v1113_v31, %v1109_v28  ;;  %v537_v56 = vrot.slane %v535_v41, 1  ;;  %v4181_v28 = vld [vmem:[%s5713_s1 + $0x1d8] sm:$0xff]  ;;  %v4418_v31 = vld [vmem:[%s4696_s8 + $0x60] sm:$0xf0]  ;;  %v1121_v41 = vshrl.u32 %v4887_v4, 16 }
  0xa7   : > { %3045 = vmatpush.bf16.msra.mxu3 %v4181_v28 }
  0xa9   : > { %v4994_v9 = vpop.f32.mrf.mxu0  ;;  %v4996_v18 = vpop.f32.mrf.mxu1 }
  0xac   : > { %1666 = vmatmul.bf16.gmra.mxu1 %v1095_v17  ;;  %2077 = vmatmul.bf16.gmra.mxu0 %v514_v10  ;;  %v526_v10 = vsel %vm454_vm0, %v521_v29, %v525_v60  ;;  %v285_v60 = vld [vmem:[%s4696_s8 + $0x5c] sm:$0x1] }
  0xad   : > { %1755 = vmatmul.bf16.gmra.mxu2 %v1306_v20  ;;  %1988 = vmatmul.bf16.gmra.mxu3 %v4884_v3  ;;  %v1101_v3 = vrot.slane %v1099_v22, 1  ;;  %v4543_v20 = vld [vmem:[%s4696_s8 + $0x54] sm:$0xe]  ;;  %v1026_v22 = vpack.c.b16 %v1010_v15, %v1010_v15 }
  0xaf   : > { %v1102_v57 = vor.u32 %v1101_v3, %v1097_v32  ;;  %v1116_v32 = vshll.u32 %v1026_v22, 16  ;;  %v1311_v29 = vrot.slane %v1026_v22, 1 }
  0xb0   : > { %v5014_v33 = vpop.f32.mrf.mxu2  ;;  %v5016_v37 = vpop.f32.mrf.mxu3 }
  0xb1   : > { %5727 = vst [vmem:[#allocation5_spill] sm:$0xff] %v5016_v37  ;;  %v5018_v38 = vpop.f32.mrf.mxu0  ;;  %v5020_v39 = vpop.f32.mrf.mxu1  ;;  %v1107_v17 = vsel %vm454_vm0, %v1102_v57, %v1106_v59  ;;  %v1118_v54 = vrot.slane %v1116_v32, 1  ;;  %v538_v15 = vsel %vm454_vm0, %v1102_v57, %v537_v56  ;;  %v4173_v57 = vld [vmem:[%s5713_s1 + $0x198] sm:$0xff]  ;;  %v4419_v32 = vld [vmem:[%s4696_s8 + $0x60] sm:$0xe] }
  0xb2   : > { %2956 = vmatpush.bf16.msra.mxu2 %v4173_v57 }
  0xb3   : > { %v1119_v63 = vsel %vm454_vm0, %v1114_v45, %v1118_v54 }
  0xb8   : > { %v5032_v2 = vpop.f32.mrf.mxu2  ;;  %v5034_v5 = vpop.f32.mrf.mxu3 }
  0xb9   : > { %5728 = vst [vmem:[#allocation6_spill] sm:$0xff] %v5034_v5  ;;  %v5036_v8 = vpop.f32.mrf.mxu0  ;;  %v5038_v16 = vpop.f32.mrf.mxu1 }
  0xbc   : > { %1671 = vmatmul.bf16.gmra.mxu1 %v1107_v17  ;;  %2082 = vmatmul.bf16.gmra.mxu0 %v526_v10  ;;  %v1011_v17 = vunpack.c.l.b16 %v3646_v48  ;;  %v429_v10 = vunpack.c.l.b16 %v285_v60  ;;  %v544_v48 = vrot.slane %v542_v23, 1 }
  0xbd   : > { %1760 = vmatmul.bf16.gmra.mxu2 %v1309_v19  ;;  %1993 = vmatmul.bf16.gmra.mxu3 %v4986_v62  ;;  %v4544_v62 = vor.u32 %v4543_v20, %v4833_v49  ;;  %v1123_v19 = vshll.u32 %v4887_v4, 16 }
  0xbe   : > { %v1027_v20 = vpack.c.b16 %v1011_v17, %v1011_v17  ;;  %v5080_v22 = vpack.c.b16 %v429_v10, %v429_v10  ;;  %v4189_v17 = vld [vmem:[%s5713_s1 + $0x218] sm:$0xff] }
  0xbf   : > { %v1310_v59 = vrot.slane %v4544_v62, 1  ;;  %3134 = vmatpush.bf16.msra.mxu0 %v4189_v17 }
  0xc0   : > { %v5048_v26 = vpop.f32.mrf.mxu2  ;;  %v5050_v27 = vpop.f32.mrf.mxu3  ;;  %5733 = vst [vmem:[#allocation11_spill] sm:$0xff] %v5080_v22  ;;  %v547_v60 = vshll.u32 %v5080_v22, 16  ;;  %v1314_v23 = vrot.slane %v1027_v20, 1  ;;  %v286_v22 = vld [vmem:[%s4696_s8 + $0x68] sm:$0x1] }
  0xc1   : > { %5730 = vst [vmem:[#allocation8_spill] sm:$0xff] %v5050_v27  ;;  %v5053_v3 = vpop.f32.mrf.mxu0  ;;  %v5055_v40 = vpop.f32.mrf.mxu1  ;;  %v1312_v34 = vsel %vm711_vm1, %v1310_v59, %v1311_v29  ;;  %v1128_v59 = vshll.u32 %v1027_v20, 16  ;;  %v540_v29 = vshrl.u32 %v5060_v42, 16  ;;  %v1135_v20 = vshll.u32 %v4714_v11, 16 }
  0xc2   : > { %v549_v57 = vrot.slane %v547_v60, 1  ;;  %v4546_v60 = vld [vmem:[%s4696_s8 + $0x6c] sm:$0xe] }
  0xc8   : > { %v5067_v46 = vpop.f32.mrf.mxu2  ;;  %v5069_v61 = vpop.f32.mrf.mxu3 }
  0xc9   : > { %5732 = vst [vmem:[#allocation10_spill] sm:$0xff] %v5069_v61  ;;  %v5072_v0 = vpop.f32.mrf.mxu0  ;;  %v5074_v49 = vpop.f32.mrf.mxu1 }
  0xcc   : > { %1676 = vmatmul.bf16.gmra.mxu1 %v1119_v63  ;;  %2087 = vmatmul.bf16.gmra.mxu0 %v538_v15  ;;  %v4420_v63 = vor.u32 %v4419_v32, %v4418_v31  ;;  %v4141_v15 = vld [vmem:[%s5713_s1 + $0x98] sm:$0xff] }
  0xcd   : > { %1765 = vmatmul.bf16.gmra.mxu2 %v1312_v34  ;;  %1998 = vmatmul.bf16.gmra.mxu3 %v4790_v35  ;;  %v1125_v35 = vrot.slane %v1123_v19, 1  ;;  %v1130_v34 = vrot.slane %v1128_v59, 1  ;;  %v545_v19 = vor.u32 %v544_v48, %v540_v29  ;;  %v1012_v59 = vunpack.c.l.b16 %v3647_v43 }
  0xce   : > { %2142 = vmatpush.bf16.msra.mxu1 %v4141_v15  ;;  %v1313_v28 = vrot.slane %v4420_v63, 1  ;;  %v430_v29 = vunpack.c.l.b16 %v286_v22  ;;  %v1133_v22 = vshrl.u32 %v4714_v11, 16 }
  0xcf   : > { %v1126_v10 = vor.u32 %v1125_v35, %v1121_v41  ;;  %v550_v35 = vsel %vm454_vm0, %v545_v19, %v549_v57  ;;  %v1028_v63 = vpack.c.b16 %v1012_v59, %v1012_v59 }
  0xd0   : > { %v5092_v62 = vpop.f32.mrf.mxu2  ;;  %v5094_v45 = vpop.f32.mrf.mxu3  ;;  %v1315_v48 = vsel %vm711_vm1, %v1313_v28, %v1314_v23  ;;  %v5124_v15 = vpack.c.b16 %v430_v29, %v430_v29 }
  0xd1   : > { %5734 = vst [vmem:[#allocation12_spill] sm:$0xff] %v5094_v45  ;;  %v5096_v54 = vpop.f32.mrf.mxu0  ;;  %v5098_v56 = vpop.f32.mrf.mxu1  ;;  %v1131_v41 = vsel %vm454_vm0, %v1126_v10, %v1130_v34  ;;  %v1137_v34 = vrot.slane %v1135_v20, 1  ;;  %v1140_v28 = vshll.u32 %v1028_v63, 16  ;;  %v1317_v11 = vrot.slane %v1028_v63, 1  ;;  %v287_v20 = vld [vmem:[%s4696_s8 + $0x74] sm:$0x1] }
  0xd2   : > { %5736 = vst [vmem:[#allocation14_spill] sm:$0xff] %v5124_v15  ;;  %v559_v23 = vshll.u32 %v5124_v15, 16  ;;  %v1147_v63 = vshll.u32 %v4793_v36, 16 }
  0xd3   : > { %v1138_v59 = vor.u32 %v1137_v34, %v1133_v22  ;;  %v1142_v29 = vrot.slane %v1140_v28, 1  ;;  %v431_v22 = vunpack.c.l.b16 %v287_v20 }
  0xd8   : > { %v5110_v31 = vpop.f32.mrf.mxu2  ;;  %v5112_v32 = vpop.f32.mrf.mxu3 }
  0xd9   : > { %5735 = vst [vmem:[#allocation13_spill] sm:$0xff] %v5112_v32  ;;  %v5114_v45 = vpop.f32.mrf.mxu0  ;;  %v5116_v61 = vpop.f32.mrf.mxu1 }
  0xdc   : > { %1681 = vmatmul.bf16.gmra.mxu1 %v1131_v41  ;;  %2092 = vmatmul.bf16.gmra.mxu0 %v550_v35  ;;  %v5138_v41 = vld [vmem:[%s4696_s8 + $0x6c] sm:$0xff]  }
  0xdd   : > { %1770 = vmatmul.bf16.gmra.mxu2 %v1315_v48  ;;  %2003 = vmatmul.bf16.gmra.mxu3 %v5060_v42  ;;  %v4547_v42 = vor.u32 %v4546_v60, %v4717_v12  ;;  %v5141_v35 = vld [vmem:[%s4696_s8 + $0x6c] sm:$0xf0]  ;;  %v561_v48 = vrot.slane %v559_v23, 1  ;;  %v1143_v12 = vsel %vm454_vm0, %v1138_v59, %v1142_v29  ;;  %v1149_v59 = vrot.slane %v1147_v63, 1 }
  0xde   : > { %5738 = vst [vmem:[#allocation16_spill] sm:$0xff] %v5141_v35 }
  0xdf   : > { %v1316_v32 = vrot.slane %v4547_v42, 1  ;;  %v562_v60 = vsel %vm454_vm0, %v1126_v10, %v561_v48  ;;  %v5156_v42 = vpack.c.b16 %v431_v22, %v431_v22  ;;  %v4172_v10 = vld [vmem:[%s5713_s1 + $0x190] sm:$0xff] }
  0xe0   : > { %v5126_v17 = vpop.f32.mrf.mxu2  ;;  %v5128_v43 = vpop.f32.mrf.mxu3  ;;  %2957 = vmatpush.bf16.msra.mxu2 %v4172_v10 }
  0xe1   : > { %5737 = vst [vmem:[#allocation15_spill] sm:$0xff] %v5128_v43  ;;  %v5131_v19 = vpop.f32.mrf.mxu0  ;;  %v5133_v57 = vpop.f32.mrf.mxu1  ;;  %v3648_v43 = vld [vmem:[%s4696_s8 + $0x80] sm:$0x1]  ;;  %v1318_v28 = vsel %vm711_vm1, %v1316_v32, %v1317_v11  ;;  %v4422_v32 = vld [vmem:[%s4696_s8 + $0x78] sm:$0xe] }
  0xe2   : > { %v1013_v5 = vunpack.c.l.b16 %v3648_v43  ;;  %v566_v43 = vshll.u32 %v5138_v41, 16  ;;  %5741 = vst [vmem:[#allocation19_spill] sm:$0xff] %v5156_v42 }
  0xe4   : > { %v1029_v23 = vpack.c.b16 %v1013_v5, %v1013_v5  ;;  %v1145_v5 = vshrl.u32 %v4793_v36, 16  ;;  %v568_v22 = vrot.slane %v566_v43, 1  ;;  %v4140_v36 = vld [vmem:[%s5713_s1 + $0x90] sm:$0xff]  ;;  %v3649_v43 = vld [vmem:[%s4696_s8 + $0x8c] sm:$0x1] }
  0xe5   : > { %2143 = vmatpush.bf16.msra.mxu1 %v4140_v36 }
  0xe6   : > { %v1152_v48 = vshll.u32 %v1029_v23, 16  ;;  %v1150_v63 = vor.u32 %v1149_v59, %v1145_v5 }
  0xe8   : > { %v5145_v25 = vpop.f32.mrf.mxu2  ;;  %v5147_v27 = vpop.f32.mrf.mxu3 }
  0xe9   : > { %5739 = vst [vmem:[#allocation17_spill] sm:$0xff] %v5145_v25  ;;  %v1647_v24 = vpop.f32.mrf.mxu1  ;;  %v2058_v15 = vpop.f32.mrf.mxu0 }
  0xea   : > { %5740 = vst [vmem:[#allocation18_spill] sm:$0xff] %v5147_v27  ;;  %v1648_v34 = vadd.f32 %v1647_v24, %v4994_v9  ;;  %v4180_v9 = vld [vmem:[%s5713_s1 + $0x1d0] sm:$0xff]  ;;  %v4421_v24 = vld [vmem:[%s4696_s8 + $0x78] sm:$0xf0] }
  0xeb   : > { %3046 = vmatpush.bf16.msra.mxu3 %v4180_v9  ;;  %v4423_v10 = vor.u32 %v4422_v32, %v4421_v24  ;;  %v1320_v24 = vrot.slane %v1029_v23, 1  ;;  %v288_v32 = vld [vmem:[%s4696_s8 + $0x80] sm:$0x1]  ;;  %v1159_v23 = vshll.u32 %v4836_v50, 16 }
  0xec   : > { %1686 = vmatmul.bf16.gmra.mxu1 %v1143_v12  ;;  %2097 = vmatmul.bf16.gmra.mxu0 %v562_v60  ;;  %v564_v60 = vshrl.u32 %v5138_v41, 16 }
  0xed   : > { %1775 = vmatmul.bf16.gmra.mxu2 %v1318_v28  ;;  %2008 = vmatmul.bf16.gmra.mxu3 %v4887_v4  ;;  %v571_v28 = vshll.u32 %v5156_v42, 16 }
  0xee   : > { %v569_v27 = vor.u32 %v568_v22, %v564_v60  ;;  %v432_v60 = vunpack.c.l.b16 %v288_v32 }
  0xef   : > { %v573_v47 = vrot.slane %v571_v28, 1 }
  0xf0   : > { %v1736_v4 = vpop.f32.mrf.mxu2  ;;  %v1969_v29 = vpop.f32.mrf.mxu3  ;;  %v5188_v36 = vpack.c.b16 %v432_v60, %v432_v60 }
  0xf1   : > { %v1737_v11 = vadd.f32 %v1736_v4, %v1648_v34  ;;  %v1649_v20 = vpop.f32.mrf.mxu1  ;;  %v2060_v12 = vpop.f32.mrf.mxu0  ;;  %v4188_v34 = vld [vmem:[%s5713_s1 + $0x210] sm:$0xff]  ;;  %v1154_v4 = vrot.slane %v1152_v48, 1  ;;  %v574_v59 = vsel %vm454_vm0, %v569_v27, %v573_v47  ;;  %v4374_v48 = vld [vmem:[%s4696_s8 + $0x78] sm:$0xff]   ;;  %v1161_v27 = vrot.slane %v1159_v23, 1 }
  0xf2   : > { %v1650_v35 = vadd.f32 %v1649_v20, %v5018_v38  ;;  %3135 = vmatpush.bf16.msra.mxu0 %v4188_v34  ;;  %v1319_v38 = vrot.slane %v4423_v10, 1  ;;  %v1014_v20 = vunpack.c.l.b16 %v3649_v43  ;;  %v4549_v10 = vld [vmem:[%s4696_s8 + $0x84] sm:$0xe]  ;;  %5742 = vst [vmem:[#allocation20_spill] sm:$0xff] %v5188_v36 }
  0xf3   : > { %v1970_v9 = vadd.f32 %v1969_v29, %v1737_v11  ;;  %v1155_v5 = vsel %vm454_vm0, %v1150_v63, %v1154_v4  ;;  %v576_v63 = vshrl.u32 %v4374_v48, 16 }
  0xf5   : > { %v5177_v42 = vadd.f32 %v2058_v15, %v1970_v9  ;;  %v1321_v15 = vsel %vm711_vm1, %v1319_v38, %v1320_v24  ;;  %v1030_v9 = vpack.c.b16 %v1014_v20, %v1014_v20 }
  0xf7   : > { %v1164_v34 = vshll.u32 %v1030_v9, 16  ;;  %v1323_v23 = vrot.slane %v1030_v9, 1  ;;  %v1171_v9 = vshll.u32 %v4890_v6, 16 }
  0xf8   : > { %v1738_v29 = vpop.f32.mrf.mxu2  ;;  %v1971_v11 = vpop.f32.mrf.mxu3 }
  0xf9   : > { %v1739_v37 = vadd.f32 %v1738_v29, %v1650_v35  ;;  %v1652_v25 = vpop.f32.mrf.mxu1  ;;  %v2063_v58 = vpop.f32.mrf.mxu0  ;;  %v578_v35 = vshll.u32 %v4374_v48, 16  ;;  %v5197_v29 = vld [vmem:[%s4696_s8 + $0x84] sm:$0xff]  }
  0xfa   : > { %v1653_v22 = vadd.f32 %v1652_v25, %v5036_v8  ;;  %v1157_v8 = vshrl.u32 %v4836_v50, 16  ;;  %v5200_v50 = vld [vmem:[%s4696_s8 + $0x84] sm:$0xf0] }
  0xfb   : > { %v1972_v28 = vadd.f32 %v1971_v11, %v1739_v37  ;;  %v580_v4 = vrot.slane %v578_v35, 1  ;;  %v289_v35 = vld [vmem:[%s4696_s8 + $0x8c] sm:$0x1] }
  0xfc   : > { %1691 = vmatmul.bf16.gmra.mxu1 %v1155_v5  ;;  %2102 = vmatmul.bf16.gmra.mxu0 %v574_v59  ;;  %v1162_v20 = vor.u32 %v1161_v27, %v1157_v8  ;;  %v1166_v5 = vrot.slane %v1164_v34, 1  ;;  %v433_v8 = vunpack.c.l.b16 %v289_v35 }
  0xfd   : > { %1780 = vmatmul.bf16.gmra.mxu2 %v1321_v15  ;;  %2013 = vmatmul.bf16.gmra.mxu3 %v5138_v41  ;;  %v5190_v47 = vadd.f32 %v2060_v12, %v1972_v28  ;;  %v583_v41 = vshll.u32 %v5188_v36, 16  ;;  %v4550_v12 = vor.u32 %v4549_v10, %v4839_v51  ;;  %v581_v59 = vor.u32 %v580_v4, %v576_v63  ;;  %v3650_v15 = vld [vmem:[%s4696_s8 + $0x98] sm:$0x1] }
  0xfe   : > { %v1015_v51 = vunpack.c.l.b16 %v3650_v15  ;;  %v590_v4 = vshll.u32 %v5197_v29, 16 }
  0xff   : > { %5743 = vst [vmem:[#allocation21_spill] sm:$0xff] %v5190_v47  ;;  %v585_v60 = vrot.slane %v583_v41, 1  ;;  %v1322_v28 = vrot.slane %v4550_v12, 1  ;;  %v4171_v41 = vld [vmem:[%s5713_s1 + $0x188] sm:$0xff]  ;;  %v4425_v12 = vld [vmem:[%s4696_s8 + $0x90] sm:$0xe] }
 0x100   : > { %v1741_v25 = vpop.f32.mrf.mxu2  ;;  %v1974_v37 = vpop.f32.mrf.mxu3  ;;  %v1031_v63 = vpack.c.b16 %v1015_v51, %v1015_v51  ;;  %2958 = vmatpush.bf16.msra.mxu2 %v4171_v41  ;;  %v592_v35 = vrot.slane %v590_v4, 1  ;;  %v290_v4 = vld [vmem:[%s4696_s8 + $0x98] sm:$0x1] }
 0x101   : > { %v1742_v43 = vadd.f32 %v1741_v25, %v1653_v22  ;;  %v1654_v38 = vpop.f32.mrf.mxu1  ;;  %v2065_v24 = vpop.f32.mrf.mxu0 }
 0x102   : > { %v1655_v32 = vadd.f32 %v1654_v38, %v5053_v3  ;;  %v1167_v3 = vsel %vm454_vm0, %v1162_v20, %v1166_v5 }
 0x103   : > { %v1975_v11 = vadd.f32 %v1974_v37, %v1742_v43  ;;  %v586_v37 = vsel %vm454_vm0, %v581_v59, %v585_v60  ;;  %v5212_v43 = vpack.c.b16 %v433_v8, %v433_v8  ;;  %v1176_v59 = vshll.u32 %v1031_v63, 16 }
 0x105   : > { %v5203_v22 = vadd.f32 %v2063_v58, %v1975_v11  ;;  %v1324_v58 = vsel %vm711_vm1, %v1322_v28, %v1323_v23  ;;  %v1173_v11 = vrot.slane %v1171_v9, 1  ;;  %v588_v23 = vshrl.u32 %v5197_v29, 16 }
 0x106   : > { %v1326_v9 = vrot.slane %v1031_v63, 1  ;;  %v1183_v63 = vshll.u32 %v4720_v13, 16 }
 0x107   : > { %v593_v8 = vor.u32 %v592_v35, %v588_v23  ;;  %v4552_v35 = vld [vmem:[%s4696_s8 + $0x9c] sm:$0xe] }
 0x108   : > { %v1743_v25 = vpop.f32.mrf.mxu2  ;;  %v1976_v36 = vpop.f32.mrf.mxu3 }
 0x109   : > { %v1744_v10 = vadd.f32 %v1743_v25, %v1655_v32  ;;  %v1657_v38 = vpop.f32.mrf.mxu1  ;;  %v2068_v47 = vpop.f32.mrf.mxu0  ;;  %v4424_v32 = vld [vmem:[%s4696_s8 + $0x90] sm:$0xf0] }
 0x10a   : > { %v1658_v27 = vadd.f32 %v1657_v38, %v5072_v0  ;;  %v4179_v0 = vld [vmem:[%s5713_s1 + $0x1c8] sm:$0xff] }
 0x10b   : > { %v1977_v34 = vadd.f32 %v1976_v36, %v1744_v10  ;;  %3047 = vmatpush.bf16.msra.mxu3 %v4179_v0  ;;  %v4187_v10 = vld [vmem:[%s5713_s1 + $0x208] sm:$0xff] }
 0x10c   : > { %1696 = vmatmul.bf16.gmra.mxu1 %v1167_v3  ;;  %2107 = vmatmul.bf16.gmra.mxu0 %v586_v37  ;;  %v4426_v3 = vor.u32 %v4425_v12, %v4424_v32  ;;  %v1178_v37 = vrot.slane %v1176_v59, 1  ;;  %v4375_v59 = vld [vmem:[%s4696_s8 + $0x90] sm:$0xff]  }
 0x10d   : > { %1785 = vmatmul.bf16.gmra.mxu2 %v1324_v58  ;;  %2018 = vmatmul.bf16.gmra.mxu3 %v4374_v48  ;;  %v5220_v36 = vadd.f32 %v2065_v24, %v1977_v34  ;;  %v1169_v48 = vshrl.u32 %v4890_v6, 16  ;;  %v595_v24 = vshll.u32 %v5212_v43, 16  ;;  %v4139_v6 = vld [vmem:[%s5713_s1 + $0x88] sm:$0xff]  ;;  %v3651_v58 = vld [vmem:[%s4696_s8 + $0xa4] sm:$0x1] }
 0x10e   : > { %2144 = vmatpush.bf16.msra.mxu1 %v4139_v6  ;;  %3136 = vmatpush.bf16.msra.mxu0 %v4187_v10  ;;  %v1016_v32 = vunpack.c.l.b16 %v3651_v58 }
 0x10f   : > { %v1174_v38 = vor.u32 %v1173_v11, %v1169_v48 }
 0x110   : > { %v1746_v20 = vpop.f32.mrf.mxu2  ;;  %v1979_v5 = vpop.f32.mrf.mxu3 }
 0x111   : > { %v1747_v60 = vadd.f32 %v1746_v20, %v1658_v27  ;;  %v1659_v15 = vpop.f32.mrf.mxu1  ;;  %v2070_v28 = vpop.f32.mrf.mxu0  ;;  %v597_v27 = vrot.slane %v595_v24, 1  ;;  %v1179_v48 = vsel %vm454_vm0, %v1174_v38, %v1178_v37  ;;  %v1032_v24 = vpack.c.b16 %v1016_v32, %v1016_v32 }
 0x112   : > { %v1660_v25 = vadd.f32 %v1659_v15, %v5096_v54  ;;  %v1325_v54 = vrot.slane %v4426_v3, 1  ;;  %v1185_v38 = vrot.slane %v1183_v63, 1 }
 0x113   : > { %v1980_v51 = vadd.f32 %v1979_v5, %v1747_v60  ;;  %v598_v11 = vsel %vm454_vm0, %v593_v8, %v597_v27  ;;  %v434_v60 = vunpack.c.l.b16 %v290_v4  ;;  %v1188_v37 = vshll.u32 %v1032_v24, 16 }
 0x114   : > { %v600_v8 = vshrl.u32 %v4375_v59, 16 }
 0x115   : > { %v5235_v34 = vadd.f32 %v2068_v47, %v1980_v51  ;;  %v1327_v47 = vsel %vm711_vm1, %v1325_v54, %v1326_v9  ;;  %v5246_v3 = vpack.c.b16 %v434_v60, %v434_v60 }
 0x118   : > { %v1748_v41 = vpop.f32.mrf.mxu2  ;;  %v1981_v0 = vpop.f32.mrf.mxu3 }
 0x119   : > { %v1749_v12 = vadd.f32 %v1748_v41, %v1660_v25  ;;  %v1662_v20 = vpop.f32.mrf.mxu1  ;;  %v2073_v5 = vpop.f32.mrf.mxu0  ;;  %v602_v25 = vshll.u32 %v4375_v59, 16  ;;  %v5255_v41 = vld [vmem:[%s4696_s8 + $0x9c] sm:$0xff]  }
 0x11a   : > { %v1663_v15 = vadd.f32 %v1662_v20, %v5114_v45  ;;  %v1181_v45 = vshrl.u32 %v4720_v13, 16  ;;  %v5258_v13 = vld [vmem:[%s4696_s8 + $0x9c] sm:$0xf0] }
 0x11b   : > { %v1982_v23 = vadd.f32 %v1981_v0, %v1749_v12  ;;  %v604_v27 = vrot.slane %v602_v25, 1  ;;  %v1190_v12 = vrot.slane %v1188_v37, 1  ;;  %v4530_v37 = vld [vmem:[%s4696_s8 + $0xa8] sm:$0xff]  }
 0x11c   : > { %1701 = vmatmul.bf16.gmra.mxu1 %v1179_v48  ;;  %2112 = vmatmul.bf16.gmra.mxu0 %v598_v11  ;;  %v1186_v32 = vor.u32 %v1185_v38, %v1181_v45  ;;  %v3652_v11 = vld [vmem:[%s4696_s8 + $0xb0] sm:$0x1] }
 0x11d   : > { %1790 = vmatmul.bf16.gmra.mxu2 %v1327_v47  ;;  %2023 = vmatmul.bf16.gmra.mxu3 %v5197_v29  ;;  %v5248_v51 = vadd.f32 %v2070_v28, %v1982_v23  ;;  %v607_v29 = vshll.u32 %v5246_v3, 16  ;;  %v4553_v28 = vor.u32 %v4552_v35, %v4723_v14  ;;  %v605_v20 = vor.u32 %v604_v27, %v600_v8  ;;  %v291_v23 = vld [vmem:[%s4696_s8 + $0xa4] sm:$0x1] }
 0x11e   : > { %v1329_v47 = vrot.slane %v1032_v24, 1  ;;  %v1191_v14 = vsel %vm454_vm0, %v1186_v32, %v1190_v12  ;;  %v1017_v35 = vunpack.c.l.b16 %v3652_v11  ;;  %v1195_v8 = vshll.u32 %v4530_v37, 16  ;;  %v4427_v32 = vld [vmem:[%s4696_s8 + $0xa8] sm:$0xf0]  ;;  %v4428_v12 = vld [vmem:[%s4696_s8 + $0xa8] sm:$0xe] }
 0x11f   : > { %v609_v48 = vrot.slane %v607_v29, 1  ;;  %v614_v27 = vshll.u32 %v5255_v41, 16  ;;  %v4170_v29 = vld [vmem:[%s5713_s1 + $0x180] sm:$0xff] }
 0x120   : > { %v1751_v6 = vpop.f32.mrf.mxu2  ;;  %v1984_v10 = vpop.f32.mrf.mxu3  ;;  %v1033_v24 = vpack.c.b16 %v1017_v35, %v1017_v35  ;;  %2959 = vmatpush.bf16.msra.mxu2 %v4170_v29 }
 0x121   : > { %v1752_v58 = vadd.f32 %v1751_v6, %v1663_v15  ;;  %v1664_v54 = vpop.f32.mrf.mxu1  ;;  %v2075_v9 = vpop.f32.mrf.mxu0  ;;  %v1328_v15 = vrot.slane %v4553_v28, 1  ;;  %v610_v45 = vsel %vm454_vm0, %v605_v20, %v609_v48  ;;  %v1197_v20 = vrot.slane %v1195_v8, 1 }
 0x122   : > { %v1665_v4 = vadd.f32 %v1664_v54, %v5131_v19  ;;  %v1332_v29 = vrot.slane %v1033_v24, 1 }
 0x123   : > { %v1985_v0 = vadd.f32 %v1984_v10, %v1752_v58  ;;  %v435_v10 = vunpack.c.l.b16 %v291_v23  ;;  %v1330_v38 = vsel %vm711_vm1, %v1328_v15, %v1329_v47  ;;  %v1200_v15 = vshll.u32 %v1033_v24, 16 }
 0x124   : > { %v1207_v24 = vshll.u32 %v4842_v52, 16 }
 0x125   : > { %v5261_v60 = vadd.f32 %v2073_v5, %v1985_v0  ;;  %v5269_v58 = vpack.c.b16 %v435_v10, %v435_v10  ;;  %v1202_v10 = vrot.slane %v1200_v15, 1 }
 0x128   : > { %v1753_v63 = vpop.f32.mrf.mxu2  ;;  %v1986_v19 = vpop.f32.mrf.mxu3 }
 0x129   : > { %v1754_v25 = vadd.f32 %v1753_v63, %v1665_v4  ;;  %v1667_v6 = vpop.f32.mrf.mxu1  ;;  %v2078_v54 = vpop.f32.mrf.mxu0  ;;  %v4178_v4 = vld [vmem:[%s5713_s1 + $0x1c0] sm:$0xff] }
 0x12a   : > { %v1668_v0 = vadd.f32 %v1667_v6, %v4996_v18  ;;  %3048 = vmatpush.bf16.msra.mxu3 %v4178_v4  ;;  %v4429_v18 = vor.u32 %v4428_v12, %v4427_v32  ;;  %v4186_v6 = vld [vmem:[%s5713_s1 + $0x200] sm:$0xff]  ;;  %v292_v4 = vld [vmem:[%s4696_s8 + $0xb0] sm:$0x1] }
 0x12b   : > { %v1987_v5 = vadd.f32 %v1986_v19, %v1754_v25  ;;  %v612_v19 = vshrl.u32 %v5255_v41, 16  ;;  %v4138_v25 = vld [vmem:[%s5713_s1 + $0x80] sm:$0xff]  ;;  %3137 = vmatpush.bf16.msra.mxu0 %v4186_v6 }
 0x12c   : > { %1706 = vmatmul.bf16.gmra.mxu1 %v1191_v14  ;;  %2117 = vmatmul.bf16.gmra.mxu0 %v610_v45  ;;  %v616_v14 = vrot.slane %v614_v27, 1  ;;  %v1331_v27 = vrot.slane %v4429_v18, 1  ;;  %v4555_v18 = vld [vmem:[%s4696_s8 + $0xb4] sm:$0xe] }
 0x12d   : > { %1795 = vmatmul.bf16.gmra.mxu2 %v1330_v38  ;;  %2028 = vmatmul.bf16.gmra.mxu3 %v4375_v59  ;;  %v5277_v28 = vadd.f32 %v2075_v9, %v1987_v5  ;;  %v1193_v59 = vshrl.u32 %v4530_v37, 16  ;;  %v619_v9 = vshll.u32 %v5269_v58, 16  ;;  %v3653_v37 = vld [vmem:[%s4696_s8 + $0xbc] sm:$0x1] }
 0x12e   : > { %v617_v38 = vor.u32 %v616_v14, %v612_v19  ;;  %2145 = vmatpush.bf16.msra.mxu1 %v4138_v25  ;;  %v4376_v19 = vld [vmem:[%s4696_s8 + $0xa8] sm:$0xff]   ;;  %v436_v14 = vunpack.c.l.b16 %v292_v4 }
 0x12f   : > { %v1198_v45 = vor.u32 %v1197_v20, %v1193_v59  ;;  %v621_v5 = vrot.slane %v619_v9, 1 }
 0x130   : > { %v1756_v48 = vpop.f32.mrf.mxu2  ;;  %v1989_v11 = vpop.f32.mrf.mxu3 }
 0x131   : > { %v1757_v47 = vadd.f32 %v1756_v48, %v1668_v0  ;;  %v1669_v23 = vpop.f32.mrf.mxu1  ;;  %v2080_v63 = vpop.f32.mrf.mxu0  ;;  %v1018_v48 = vunpack.c.l.b16 %v3653_v37  ;;  %v1203_v15 = vsel %vm454_vm0, %v1198_v45, %v1202_v10  ;;  %v1205_v45 = vshrl.u32 %v4842_v52, 16 }
 0x132   : > { %v1670_v0 = vadd.f32 %v1669_v23, %v5020_v39  ;;  %v626_v23 = vshll.u32 %v4376_v19, 16 }
 0x133   : > { %v1990_v35 = vadd.f32 %v1989_v11, %v1757_v47  ;;  %v622_v47 = vsel %vm454_vm0, %v617_v38, %v621_v5  ;;  %v1034_v39 = vpack.c.b16 %v1018_v48, %v1018_v48  ;;  %v1209_v5 = vrot.slane %v1207_v24, 1  ;;  %v293_v24 = vld [vmem:[%s4696_s8 + $0xbc] sm:$0x1] }
 0x135   : > { %v5291_v8 = vadd.f32 %v2078_v54, %v1990_v35  ;;  %v1333_v54 = vsel %vm711_vm1, %v1331_v27, %v1332_v29  ;;  %v5302_v35 = vpack.c.b16 %v436_v14, %v436_v14  ;;  %v1212_v37 = vshll.u32 %v1034_v39, 16 }
 0x136   : > { %v624_v27 = vshrl.u32 %v4376_v19, 16  ;;  %v628_v29 = vrot.slane %v626_v23, 1  ;;  %v1210_v48 = vor.u32 %v1209_v5, %v1205_v45 }
 0x138   : > { %v1758_v32 = vpop.f32.mrf.mxu2  ;;  %v1991_v12 = vpop.f32.mrf.mxu3 }
 0x139   : > { %v1759_v11 = vadd.f32 %v1758_v32, %v1670_v0  ;;  %v1672_v59 = vpop.f32.mrf.mxu1  ;;  %v2083_v20 = vpop.f32.mrf.mxu0  ;;  %v631_v32 = vshll.u32 %v5302_v35, 16 }
 0x13a   : > { %v1673_v6 = vadd.f32 %v1672_v59, %v5038_v16  ;;  %v5314_v16 = vld [vmem:[%s4696_s8 + $0xb4] sm:$0xf0]  ;;  %v629_v59 = vor.u32 %v628_v29, %v624_v27 }
 0x13b   : > { %v1992_v9 = vadd.f32 %v1991_v12, %v1759_v11  ;;  %v5311_v12 = vld [vmem:[%s4696_s8 + $0xb4] sm:$0xff]   ;;  %5744 = vst [vmem:[#allocation22_spill] sm:$0xff] %v5314_v16  ;;  %v1214_v11 = vrot.slane %v1212_v37, 1 }
 0x13c   : > { %1711 = vmatmul.bf16.gmra.mxu1 %v1203_v15  ;;  %2122 = vmatmul.bf16.gmra.mxu0 %v622_v47  ;;  %v633_v15 = vrot.slane %v631_v32, 1  ;;  %v3654_v47 = vld [vmem:[%s4696_s8 + $0xc8] sm:$0x1] }
 0x13d   : > { %1800 = vmatmul.bf16.gmra.mxu2 %v1333_v54  ;;  %2033 = vmatmul.bf16.gmra.mxu3 %v5255_v41  ;;  %v5304_v25 = vadd.f32 %v2080_v63, %v1992_v9  ;;  %v4556_v63 = vor.u32 %v4555_v18, %v4845_v53  ;;  %v1335_v9 = vrot.slane %v1034_v39, 1  ;;  %v1215_v18 = vsel %vm454_vm0, %v1210_v48, %v1214_v11  ;;  %v4531_v39 = vld [vmem:[%s4696_s8 + $0xc0] sm:$0xff]  }
 0x13e   : > { %v634_v5 = vsel %vm454_vm0, %v629_v59, %v633_v15  ;;  %v1219_v29 = vshll.u32 %v4531_v39, 16  ;;  %v4431_v48 = vld [vmem:[%s4696_s8 + $0xc0] sm:$0xe]  ;;  %v1217_v11 = vshrl.u32 %v4531_v39, 16  ;;  %v3943_v39 = vld [vmem:[%s4696_s8 + $0x20] sm:$0x1] }
 0x13f   : > { %v1334_v54 = vrot.slane %v4556_v63, 1 }
 0x140   : > { %v1761_v10 = vpop.f32.mrf.mxu2  ;;  %v1994_v38 = vpop.f32.mrf.mxu3  ;;  %v1221_v59 = vrot.slane %v1219_v29, 1 }
 0x141   : > { %v1762_v4 = vadd.f32 %v1761_v10, %v1673_v6  ;;  %v1674_v41 = vpop.f32.mrf.mxu1  ;;  %v2085_v0 = vpop.f32.mrf.mxu0  ;;  %v1019_v10 = vunpack.c.l.b16 %v3654_v47  ;;  %v1336_v37 = vsel %vm711_vm1, %v1334_v54, %v1335_v9 }
 0x142   : > { %v1675_v23 = vadd.f32 %v1674_v41, %v5055_v40 }
 0x143   : > { %v1995_v52 = vadd.f32 %v1994_v38, %v1762_v4  ;;  %v1035_v40 = vpack.c.b16 %v1019_v10, %v1019_v10  ;;  %v638_v4 = vshll.u32 %v5311_v12, 16 }
 0x145   : > { %v5317_v14 = vadd.f32 %v2083_v20, %v1995_v52  ;;  %v437_v20 = vunpack.c.l.b16 %v293_v24  ;;  %v4430_v52 = vld [vmem:[%s4696_s8 + $0xc0] sm:$0xf0]  ;;  %v1224_v47 = vshll.u32 %v1035_v40, 16 }
 0x147   : > { %v5326_v41 = vpack.c.b16 %v437_v20, %v437_v20 }
 0x148   : > { %v1763_v6 = vpop.f32.mrf.mxu2  ;;  %v1996_v53 = vpop.f32.mrf.mxu3 }
 0x149   : > { %v1764_v16 = vadd.f32 %v1763_v6, %v1675_v23  ;;  %v1677_v38 = vpop.f32.mrf.mxu1  ;;  %v2088_v45 = vpop.f32.mrf.mxu0  ;;  %v640_v23 = vrot.slane %v638_v4, 1  ;;  %v643_v6 = vshll.u32 %v5326_v41, 16 }
 0x14a   : > { %v1678_v63 = vadd.f32 %v1677_v38, %v5074_v49  ;;  %v1226_v49 = vrot.slane %v1224_v47, 1  ;;  %v4378_v47 = vld [vmem:[%s4696_s8] sm:$0xe] }
 0x14b   : > { %v1997_v27 = vadd.f32 %v1996_v53, %v1764_v16  ;;  %v645_v38 = vrot.slane %v643_v6, 1  ;;  %v4442_v6 = vld [vmem:[%s4696_s8 + $0x18] sm:$0xe] }
 0x14c   : > { %1716 = vmatmul.bf16.gmra.mxu1 %v1215_v18  ;;  %2127 = vmatmul.bf16.gmra.mxu0 %v634_v5  ;;  %v1222_v18 = vor.u32 %v1221_v59, %v1217_v11  ;;  %v2407_v59 = vunpack.c.l.b16 %v3943_v39 }
 0x14d   : > { %1805 = vmatmul.bf16.gmra.mxu2 %v1336_v37  ;;  %2038 = vmatmul.bf16.gmra.mxu3 %v4376_v19  ;;  %v5328_v32 = vadd.f32 %v2085_v0, %v1997_v27  ;;  %v636_v19 = vshrl.u32 %v5311_v12, 16  ;;  %v4432_v0 = vor.u32 %v4431_v48, %v4430_v52  ;;  %v1338_v37 = vrot.slane %v1035_v40, 1 }
 0x14e   : > { %v1227_v48 = vsel %vm454_vm0, %v1222_v18, %v1226_v49 }
 0x14f   : > { %v641_v10 = vor.u32 %v640_v23, %v636_v19  ;;  %v1337_v20 = vrot.slane %v4432_v0, 1  ;;  %v2423_v19 = vpack.c.b16 %v2407_v59, %v2407_v59  ;;  %v4441_v23 = vld [vmem:[%s4696_s8 + $0x18] sm:$0xf0] }
 0x150   : > { %v1766_v16 = vpop.f32.mrf.mxu2  ;;  %v1999_v15 = vpop.f32.mrf.mxu3 }
 0x151   : > { %v1767_v54 = vadd.f32 %v1766_v16, %v1678_v63  ;;  %v1679_v9 = vpop.f32.mrf.mxu1  ;;  %v2090_v24 = vpop.f32.mrf.mxu0  ;;  %v646_v11 = vsel %vm454_vm0, %v641_v10, %v645_v38 }
 0x152   : > { %v1680_v27 = vadd.f32 %v1679_v9, %v5098_v56  ;;  %v4377_v56 = vld [vmem:[%s4696_s8] sm:$0xf0] }
 0x153   : > { %v2000_v53 = vadd.f32 %v1999_v15, %v1767_v54  ;;  %v4433_v15 = vld [vmem:[%s4696_s8 + $0x18] sm:$0xff]   ;;  %v4379_v49 = vor.u32 %v4378_v47, %v4377_v56  ;;  %v3944_v56 = vld [vmem:[%s4696_s8 + $0x2c] sm:$0x1] }
 0x154   : > { %v2442_v9 = vshll.u32 %v4433_v15, 16 }
 0x155   : > { %v5335_v5 = vadd.f32 %v2088_v45, %v2000_v53  ;;  %v1339_v45 = vsel %vm711_vm1, %v1337_v20, %v1338_v37  ;;  %v2440_v37 = vshrl.u32 %v4433_v15, 16 }
 0x158   : > { %v1768_v29 = vpop.f32.mrf.mxu2  ;;  %v2001_v4 = vpop.f32.mrf.mxu3 }
 0x159   : > { %v1769_v63 = vadd.f32 %v1768_v29, %v1680_v27  ;;  %v1682_v16 = vpop.f32.mrf.mxu1  ;;  %v2093_v52 = vpop.f32.mrf.mxu0  ;;  %v2444_v27 = vrot.slane %v2442_v9, 1  ;;  %v5352_v29 = vld [vmem:[%s4696_s8 + $0x24] sm:$0xff]  }
 0x15a   : > { %v1683_v0 = vadd.f32 %v1682_v16, %v5116_v61  ;;  %v2696_v16 = vrot.slane %v2423_v19, 1 }
 0x15b   : > { %v2002_v40 = vadd.f32 %v2001_v4, %v1769_v63  ;;  %v4560_v4 = vld [vmem:[%s4696_s8 + $0x24] sm:$0xf0]  ;;  %v712_v63 = vrot.slane %v4379_v49, 1  ;;  %v2408_v49 = vunpack.c.l.b16 %v3944_v56  ;;  %v716_v56 = vrot.slane %v4914_v55, 1 }
 0x15c   : > { %1721 = vmatmul.bf16.gmra.mxu1 %v1227_v48  ;;  %2132 = vmatmul.bf16.gmra.mxu0 %v646_v11  ;;  %v713_v48 = vrot.slane %v4899_v21, 1  ;;  %v4558_v21 = vld [vmem:[%s4696_s8 + $0xc] sm:$0xe] }
 0x15d   : > { %1810 = vmatmul.bf16.gmra.mxu2 %v1339_v45  ;;  %2043 = vmatmul.bf16.gmra.mxu3 %v5311_v12  ;;  %v5346_v54 = vadd.f32 %v2090_v24, %v2002_v40  ;;  %v4443_v12 = vor.u32 %v4442_v6, %v4441_v23  ;;  %v2447_v24 = vshll.u32 %v2423_v19, 16  ;;  %v2445_v45 = vor.u32 %v2444_v27, %v2440_v37 }
 0x15f   : > { %v2695_v61 = vrot.slane %v4443_v12, 1  ;;  %v2449_v59 = vrot.slane %v2447_v24, 1  ;;  %v2424_v12 = vpack.c.b16 %v2408_v49, %v2408_v49 }
 0x160   : > { %v1771_v53 = vpop.f32.mrf.mxu2  ;;  %v2004_v18 = vpop.f32.mrf.mxu3 }
 0x161   : > { %v1772_v10 = vadd.f32 %v1771_v53, %v1683_v0  ;;  %v1684_v38 = vpop.f32.mrf.mxu1  ;;  %v2095_v20 = vpop.f32.mrf.mxu0  ;;  %v714_v53 = vsel %vm711_vm1, %v712_v63, %v713_v48  ;;  %v2450_v19 = vsel %vm454_vm0, %v2445_v45, %v2449_v59  ;;  %v2452_v45 = vshrl.u32 %v5352_v29, 16 }
 0x162   : > { %v1685_v40 = vadd.f32 %v1684_v38, %v5133_v57  ;;  %v2454_v38 = vshll.u32 %v5352_v29, 16  ;;  %v2459_v59 = vshll.u32 %v2424_v12, 16 }
 0x163   : > { %v2005_v39 = vadd.f32 %v2004_v18, %v1772_v10  ;;  %v2697_v18 = vsel %vm711_vm1, %v2695_v61, %v2696_v16 }
 0x165   : > { %v5356_v11 = vadd.f32 %v2093_v52, %v2005_v39  ;;  %v4561_v52 = vld [vmem:[%s4696_s8 + $0x24] sm:$0xe]  ;;  %v4559_v39 = vor.u32 %v4558_v21, %v4906_v30  ;;  %v2461_v30 = vrot.slane %v2459_v59, 1 }
 0x166   : > { %v4562_v16 = vor.u32 %v4561_v52, %v4560_v4 }
 0x168   : > { %v1773_v47 = vpop.f32.mrf.mxu2  ;;  %v2006_v9 = vpop.f32.mrf.mxu3 }
 0x169   : > { %v1774_v23 = vadd.f32 %v1773_v47, %v1685_v40  ;;  %v1687_v6 = vpop.f32.mrf.mxu1  ;;  %v2098_v0 = vpop.f32.mrf.mxu0  ;;  %v715_v40 = vrot.slane %v4559_v39, 1  ;;  %v2698_v47 = vrot.slane %v4562_v16, 1 }
 0x16a   : > { %v1688_v37 = vadd.f32 %v1687_v6, %v5014_v33 }
 0x16b   : > { %v2007_v10 = vadd.f32 %v2006_v9, %v1774_v23  ;;  %v2699_v9 = vrot.slane %v2424_v12, 1  ;;  %v717_v55 = vsel %vm711_vm1, %v715_v40, %v716_v56  ;;  %v4434_v12 = vld [vmem:[%s4696_s8 + $0x30] sm:$0xff]  }
 0x16c   : > { %2146 = vmatmul.bf16.vlgmr.msra.gmra.mxu1 %v714_v53  ;;  %3138 = vmatmul.bf16.vlgmr.msra.gmra.mxu0 %v2697_v18  ;;  %v3945_v53 = vld [vmem:[%s4696_s8 + $0x38] sm:$0x1] }
 0x16d   : > { %2960 = vmatmul.bf16.vlgmr.msra.gmra.mxu2 %v4433_v15  ;;  %3049 = vmatmul.bf16.vlgmr.msra.gmra.mxu3 %v2450_v19  ;;  %v5365_v57 = vadd.f32 %v2095_v20, %v2007_v10  ;;  %v2456_v15 = vrot.slane %v2454_v38, 1  ;;  %v2700_v52 = vsel %vm711_vm1, %v2698_v47, %v2699_v9  ;;  %v2409_v10 = vunpack.c.l.b16 %v3945_v53 }
 0x16e   : > { %v2464_v47 = vshrl.u32 %v4434_v12, 16 }
 0x16f   : > { %v2457_v23 = vor.u32 %v2456_v15, %v2452_v45  ;;  %v2425_v39 = vpack.c.b16 %v2409_v10, %v2409_v10 }
 0x170   : > { %v1776_v27 = vpop.f32.mrf.mxu2  ;;  %v2009_v24 = vpop.f32.mrf.mxu3 }
 0x171   : > { %v1777_v63 = vadd.f32 %v1776_v27, %v1688_v37  ;;  %v1689_v48 = vpop.f32.mrf.mxu1  ;;  %v2100_v61 = vpop.f32.mrf.mxu0  ;;  %v4381_v37 = vld [vmem:[%s4696_s8 + $0x18] sm:$0xe] }
 0x172   : > { %v1690_v6 = vadd.f32 %v1689_v48, %v5032_v2  ;;  %v4380_v2 = vld [vmem:[%s4696_s8 + $0x18] sm:$0xf0]  ;;  %v4445_v48 = vld [vmem:[%s4696_s8 + $0x30] sm:$0xe] }
 0x173   : > { %v2010_v20 = vadd.f32 %v2009_v24, %v1777_v63  ;;  %v2466_v24 = vshll.u32 %v4434_v12, 16  ;;  %v4444_v63 = vld [vmem:[%s4696_s8 + $0x30] sm:$0xf0]  ;;  %v4382_v59 = vor.u32 %v4381_v37, %v4380_v2 }
 0x175   : > { %v5372_v33 = vadd.f32 %v2098_v0, %v2010_v20  ;;  %v2462_v0 = vsel %vm454_vm0, %v2457_v23, %v2461_v30  ;;  %v2468_v9 = vrot.slane %v2466_v24, 1  ;;  %v5389_v30 = vld [vmem:[%s4696_s8 + $0x3c] sm:$0xff]   ;;  %v718_v53 = vrot.slane %v4382_v59, 1 }
 0x178   : > { %v1778_v4 = vpop.f32.mrf.mxu2  ;;  %v2011_v18 = vpop.f32.mrf.mxu3 }
 0x179   : > { %v1779_v21 = vadd.f32 %v1778_v4, %v1690_v6  ;;  %v1692_v19 = vpop.f32.mrf.mxu1  ;;  %v2103_v49 = vpop.f32.mrf.mxu0  ;;  %v4566_v6 = vld [vmem:[%s4696_s8 + $0x3c] sm:$0xf0]  ;;  %v719_v4 = vrot.slane %v4939_v7, 1  ;;  %v4564_v7 = vld [vmem:[%s4696_s8 + $0x24] sm:$0xe] }
 0x17a   : > { %v1693_v16 = vadd.f32 %v1692_v19, %v5048_v26  ;;  %v2469_v19 = vor.u32 %v2468_v9, %v2464_v47  ;;  %v4565_v47 = vor.u32 %v4564_v7, %v4946_v44 }
 0x17b   : > { %v2012_v38 = vadd.f32 %v2011_v18, %v1779_v21  ;;  %v2702_v18 = vrot.slane %v2425_v39, 1 }
 0x17c   : > { %2151 = vmatmul.bf16.gmra.mxu1 %v717_v55  ;;  %3143 = vmatmul.bf16.gmra.mxu0 %v2700_v52 }
 0x17d   : > { %2965 = vmatmul.bf16.gmra.mxu2 %v5352_v29  ;;  %3054 = vmatmul.bf16.gmra.mxu3 %v2462_v0  ;;  %v5383_v27 = vadd.f32 %v2100_v61, %v2012_v38  ;;  %v4446_v29 = vor.u32 %v4445_v48, %v4444_v63  ;;  %v2471_v61 = vshll.u32 %v2425_v39, 16  ;;  %v3946_v0 = vld [vmem:[%s4696_s8 + $0x44] sm:$0x1]  ;;  %v720_v63 = vsel %vm711_vm1, %v718_v53, %v719_v4 }
 0x17e   : > { %v2476_v4 = vshrl.u32 %v5389_v30, 16 }
 0x17f   : > { %v2701_v26 = vrot.slane %v4446_v29, 1  ;;  %v2473_v55 = vrot.slane %v2471_v61, 1 }
 0x180   : > { %v1781_v45 = vpop.f32.mrf.mxu2  ;;  %v2014_v15 = vpop.f32.mrf.mxu3 }
 0x181   : > { %v1782_v20 = vadd.f32 %v1781_v45, %v1693_v16  ;;  %v1694_v40 = vpop.f32.mrf.mxu1  ;;  %v2105_v56 = vpop.f32.mrf.mxu0  ;;  %v2703_v48 = vsel %vm711_vm1, %v2701_v26, %v2702_v18  ;;  %v2474_v39 = vsel %vm454_vm0, %v2469_v19, %v2473_v55  ;;  %v2410_v16 = vunpack.c.l.b16 %v3946_v0 }
 0x182   : > { %v1695_v52 = vadd.f32 %v1694_v40, %v5067_v46  ;;  %v721_v18 = vrot.slane %v4565_v47, 1  ;;  %v722_v19 = vrot.slane %v4955_v1, 1 }
 0x183   : > { %v2015_v23 = vadd.f32 %v2014_v15, %v1782_v20  ;;  %v2478_v15 = vshll.u32 %v5389_v30, 16  ;;  %v2426_v59 = vpack.c.b16 %v2410_v16, %v2410_v16 }
 0x184   : > { %v723_v1 = vsel %vm711_vm1, %v721_v18, %v722_v19 }
 0x185   : > { %v5393_v21 = vadd.f32 %v2103_v49, %v2015_v23  ;;  %v4567_v49 = vld [vmem:[%s4696_s8 + $0x3c] sm:$0xe]  ;;  %v2483_v26 = vshll.u32 %v2426_v59, 16 }
 0x186   : > { %v4568_v53 = vor.u32 %v4567_v49, %v4566_v6  ;;  %v4435_v49 = vld [vmem:[%s4696_s8 + $0x48] sm:$0xff]  }
 0x187   : > { %v2485_v44 = vrot.slane %v2483_v26, 1 }
 0x188   : > { %v1783_v10 = vpop.f32.mrf.mxu2  ;;  %v2016_v38 = vpop.f32.mrf.mxu3  ;;  %v2704_v55 = vrot.slane %v4568_v53, 1 }
 0x189   : > { %v1784_v2 = vadd.f32 %v1783_v10, %v1695_v52  ;;  %v1697_v37 = vpop.f32.mrf.mxu1  ;;  %v2108_v24 = vpop.f32.mrf.mxu0  ;;  %v2705_v52 = vrot.slane %v2426_v59, 1  ;;  %v2490_v59 = vshll.u32 %v4435_v49, 16 }
 0x18a   : > { %v1698_v20 = vadd.f32 %v1697_v37, %v5092_v62 }
 0x18b   : > { %v2017_v45 = vadd.f32 %v2016_v38, %v1784_v2  ;;  %v3947_v38 = vld [vmem:[%s4696_s8 + $0x50] sm:$0x1]  ;;  %v2706_v7 = vsel %vm711_vm1, %v2704_v55, %v2705_v52  ;;  %v2492_v18 = vrot.slane %v2490_v59, 1  ;;  %v5426_v55 = vld [vmem:[%s4696_s8 + $0x54] sm:$0xff]  }
 0x18c   : > { %2156 = vmatmul.bf16.gmra.mxu1 %v720_v63  ;;  %3148 = vmatmul.bf16.gmra.mxu0 %v2703_v48  ;;  %v4572_v52 = vld [vmem:[%s4696_s8 + $0x54] sm:$0xf0] }
 0x18d   : > { %2970 = vmatmul.bf16.gmra.mxu2 %v4434_v12  ;;  %3059 = vmatmul.bf16.gmra.mxu3 %v2474_v39  ;;  %v5402_v46 = vadd.f32 %v2105_v56, %v2017_v45  ;;  %v2480_v12 = vrot.slane %v2478_v15, 1  ;;  %v2411_v39 = vunpack.c.l.b16 %v3947_v38  ;;  %v4384_v45 = vld [vmem:[%s4696_s8 + $0x30] sm:$0xe] }
 0x18f   : > { %v2481_v0 = vor.u32 %v2480_v12, %v2476_v4 }
 0x190   : > { %v1786_v40 = vpop.f32.mrf.mxu2  ;;  %v2019_v29 = vpop.f32.mrf.mxu3 }
 0x191   : > { %v1787_v9 = vadd.f32 %v1786_v40, %v1698_v20  ;;  %v1699_v61 = vpop.f32.mrf.mxu1  ;;  %v2110_v23 = vpop.f32.mrf.mxu0  ;;  %v2427_v20 = vpack.c.b16 %v2411_v39, %v2411_v39  ;;  %v4447_v40 = vld [vmem:[%s4696_s8 + $0x48] sm:$0xf0] }
 0x192   : > { %v1700_v10 = vadd.f32 %v1699_v61, %v5110_v31  ;;  %v4383_v31 = vld [vmem:[%s4696_s8 + $0x30] sm:$0xf0] }
 0x193   : > { %v2020_v56 = vadd.f32 %v2019_v29, %v1787_v9  ;;  %v4448_v29 = vld [vmem:[%s4696_s8 + $0x48] sm:$0xe]  ;;  %v4385_v53 = vor.u32 %v4384_v45, %v4383_v31  ;;  %v2708_v38 = vrot.slane %v2427_v20, 1 }
 0x195   : > { %v5409_v62 = vadd.f32 %v2108_v24, %v2020_v56  ;;  %v2486_v24 = vsel %vm454_vm0, %v2481_v0, %v2485_v44  ;;  %v2488_v56 = vshrl.u32 %v4435_v49, 16  ;;  %v724_v0 = vrot.slane %v4385_v53, 1  ;;  %v5745_v44 = vld [vmem:[#allocation2_spill] sm:$0xff] }
 0x196   : > { %v2502_v53 = vshll.u32 %v5426_v55, 16 }
 0x198   : > { %v1788_v6 = vpop.f32.mrf.mxu2  ;;  %v2021_v2 = vpop.f32.mrf.mxu3 }
 0x199   : > { %v1789_v37 = vadd.f32 %v1788_v6, %v1700_v10  ;;  %v1702_v63 = vpop.f32.mrf.mxu1  ;;  %v2113_v48 = vpop.f32.mrf.mxu0  ;;  %v725_v10 = vrot.slane %v5745_v44, 1 }
 0x19a   : > { %v1703_v47 = vadd.f32 %v1702_v63, %v5126_v17  ;;  %v5746_v63 = vld [vmem:[#allocation17_spill] sm:$0xff] }
 0x19b   : > { %v2022_v16 = vadd.f32 %v2021_v2, %v1789_v37  ;;  %v2493_v2 = vor.u32 %v2492_v18, %v2488_v56  ;;  %v726_v59 = vsel %vm711_vm1, %v724_v0, %v725_v10 }
 0x19c   : > { %2161 = vmatmul.bf16.gmra.mxu1 %v723_v1  ;;  %3153 = vmatmul.bf16.gmra.mxu0 %v2706_v7  ;;  %v3948_v7 = vld [vmem:[%s4696_s8 + $0x5c] sm:$0x1] }
 0x19d   : > { %2975 = vmatmul.bf16.gmra.mxu2 %v5389_v30  ;;  %3064 = vmatmul.bf16.gmra.mxu3 %v2486_v24  ;;  %v5420_v15 = vadd.f32 %v2110_v23, %v2022_v16  ;;  %v4449_v30 = vor.u32 %v4448_v29, %v4447_v40  ;;  %v2495_v23 = vshll.u32 %v2427_v20, 16  ;;  %v4570_v29 = vld [vmem:[%s4696_s8 + $0x3c] sm:$0xe] }
 0x19f   : > { %v2707_v17 = vrot.slane %v4449_v30, 1  ;;  %v2497_v37 = vrot.slane %v2495_v23, 1  ;;  %v5748_v23 = vld [vmem:[#allocation3_spill] sm:$0xff] }
 0x1a0   : > { %v1791_v9 = vpop.f32.mrf.mxu2  ;;  %v2024_v61 = vpop.f32.mrf.mxu3 }
 0x1a1   : > { %v1792_v4 = vadd.f32 %v1791_v9, %v1703_v47  ;;  %v1704_v12 = vpop.f32.mrf.mxu1  ;;  %v2115_v26 = vpop.f32.mrf.mxu0  ;;  %v2709_v40 = vsel %vm711_vm1, %v2707_v17, %v2708_v38  ;;  %v2498_v20 = vsel %vm454_vm0, %v2493_v2, %v2497_v37  ;;  %v2412_v47 = vunpack.c.l.b16 %v3948_v7 }
 0x1a2   : > { %v1705_v1 = vadd.f32 %v1704_v12, %v5746_v63  ;;  %v5747_v12 = vld [vmem:[#allocation5_spill] sm:$0xff]  ;;  %v2500_v38 = vshrl.u32 %v5426_v55, 16  ;;  %v5749_v63 = vld [vmem:[#allocation4_spill] sm:$0xff] }
 0x1a3   : > { %v2025_v19 = vadd.f32 %v2024_v61, %v1792_v4  ;;  %v2428_v4 = vpack.c.b16 %v2412_v47, %v2412_v47 }
 0x1a5   : > { %v5430_v6 = vadd.f32 %v2113_v48, %v2025_v19  ;;  %v4573_v48 = vld [vmem:[%s4696_s8 + $0x54] sm:$0xe]  ;;  %v4571_v19 = vor.u32 %v4570_v29, %v5748_v23  ;;  %v2507_v2 = vshll.u32 %v2428_v4, 16  ;;  %v3949_v29 = vld [vmem:[%s4696_s8 + $0x68] sm:$0x1] }
 0x1a6   : > { %v4574_v17 = vor.u32 %v4573_v48, %v4572_v52  ;;  %v4387_v23 = vld [vmem:[%s4696_s8 + $0x48] sm:$0xe] }
 0x1a7   : > { %v727_v37 = vrot.slane %v4571_v19, 1 }
 0x1a8   : > { %v1793_v24 = vpop.f32.mrf.mxu2  ;;  %v2026_v39 = vpop.f32.mrf.mxu3  ;;  %v2710_v7 = vrot.slane %v4574_v17, 1  ;;  %v4450_v17 = vld [vmem:[%s4696_s8 + $0x60] sm:$0xf0] }
 0x1a9   : > { %v1794_v16 = vadd.f32 %v1793_v24, %v1705_v1  ;;  %v1707_v31 = vpop.f32.mrf.mxu1  ;;  %v2118_v45 = vpop.f32.mrf.mxu0  ;;  %v728_v1 = vrot.slane %v5749_v63, 1  ;;  %v2711_v24 = vrot.slane %v2428_v4, 1 }
 0x1aa   : > { %v1708_v30 = vadd.f32 %v1707_v31, %v5747_v12  ;;  %v2509_v31 = vrot.slane %v2507_v2, 1  ;;  %v2413_v12 = vunpack.c.l.b16 %v3949_v29  ;;  %v4578_v29 = vld [vmem:[%s4696_s8 + $0x6c] sm:$0xf0] }
 0x1ab   : > { %v2027_v9 = vadd.f32 %v2026_v39, %v1794_v16  ;;  %v2712_v4 = vsel %vm711_vm1, %v2710_v7, %v2711_v24 }
 0x1ac   : > { %2166 = vmatmul.bf16.gmra.mxu1 %v726_v59  ;;  %3158 = vmatmul.bf16.gmra.mxu0 %v2709_v40  ;;  %v5750_v59 = vld [vmem:[#allocation6_spill] sm:$0xff] }
 0x1ad   : > { %2980 = vmatmul.bf16.gmra.mxu2 %v4435_v49  ;;  %3069 = vmatmul.bf16.gmra.mxu3 %v2498_v20  ;;  %v5439_v61 = vadd.f32 %v2115_v26, %v2027_v9  ;;  %v2504_v49 = vrot.slane %v2502_v53, 1  ;;  %v729_v53 = vsel %vm711_vm1, %v727_v37, %v728_v1 }
 0x1af   : > { %v2505_v16 = vor.u32 %v2504_v49, %v2500_v38  ;;  %v4451_v38 = vld [vmem:[%s4696_s8 + $0x60] sm:$0xe]  ;;  %v5751_v49 = vld [vmem:[#allocation8_spill] sm:$0xff] }
 0x1b0   : > { %v1796_v56 = vpop.f32.mrf.mxu2  ;;  %v2029_v18 = vpop.f32.mrf.mxu3 }
 0x1b1   : > { %v1797_v0 = vadd.f32 %v1796_v56, %v1708_v30  ;;  %v1709_v44 = vpop.f32.mrf.mxu1  ;;  %v2120_v10 = vpop.f32.mrf.mxu0  ;;  %v4436_v56 = vld [vmem:[%s4696_s8 + $0x60] sm:$0xff]  }
 0x1b2   : > { %v1710_v40 = vadd.f32 %v1709_v44, %v5750_v59  ;;  %v2429_v44 = vpack.c.b16 %v2413_v12, %v2413_v12 }
 0x1b3   : > { %v2030_v26 = vadd.f32 %v2029_v18, %v1797_v0  ;;  %v4386_v18 = vld [vmem:[%s4696_s8 + $0x48] sm:$0xf0]  ;;  %v2514_v0 = vshll.u32 %v4436_v56, 16 }
 0x1b4   : > { %v4388_v63 = vor.u32 %v4387_v23, %v4386_v18  ;;  %v3950_v23 = vld [vmem:[%s4696_s8 + $0x74] sm:$0x1] }
 0x1b5   : > { %v5446_v39 = vadd.f32 %v2118_v45, %v2030_v26  ;;  %v2510_v45 = vsel %vm454_vm0, %v2505_v16, %v2509_v31  ;;  %v2512_v16 = vshrl.u32 %v4436_v56, 16  ;;  %v2516_v31 = vrot.slane %v2514_v0, 1 }
 0x1b8   : > { %v1798_v52 = vpop.f32.mrf.mxu2  ;;  %v2031_v20 = vpop.f32.mrf.mxu3 }
 0x1b9   : > { %v1799_v47 = vadd.f32 %v1798_v52, %v1710_v40  ;;  %v1712_v48 = vpop.f32.mrf.mxu1  ;;  %v2123_v9 = vpop.f32.mrf.mxu0  ;;  %v5463_v40 = vld [vmem:[%s4696_s8 + $0x6c] sm:$0xff]   ;;  %v730_v52 = vrot.slane %v4388_v63, 1  ;;  %v4576_v63 = vld [vmem:[%s4696_s8 + $0x54] sm:$0xe] }
 0x1ba   : > { %v1713_v2 = vadd.f32 %v1712_v48, %v5751_v49 }
 0x1bb   : > { %v2032_v30 = vadd.f32 %v2031_v20, %v1799_v47  ;;  %v5752_v20 = vld [vmem:[#allocation7_spill] sm:$0xff] }
 0x1bc   : > { %2171 = vmatmul.bf16.gmra.mxu1 %v729_v53  ;;  %3163 = vmatmul.bf16.gmra.mxu0 %v2712_v4  ;;  %v731_v47 = vrot.slane %v5752_v20, 1  ;;  %v2714_v53 = vrot.slane %v2429_v44, 1 }
 0x1bd   : > { %2985 = vmatmul.bf16.gmra.mxu2 %v5426_v55  ;;  %3074 = vmatmul.bf16.gmra.mxu3 %v2510_v45  ;;  %v5457_v19 = vadd.f32 %v2120_v10, %v2032_v30  ;;  %v4452_v55 = vor.u32 %v4451_v38, %v4450_v17  ;;  %v2519_v10 = vshll.u32 %v2429_v44, 16  ;;  %v2517_v45 = vor.u32 %v2516_v31, %v2512_v16  ;;  %v5753_v30 = vld [vmem:[#allocation10_spill] sm:$0xff] }
 0x1be   : > { %v2526_v16 = vshll.u32 %v5463_v40, 16 }
 0x1bf   : > { %v2713_v48 = vrot.slane %v4452_v55, 1  ;;  %v2521_v12 = vrot.slane %v2519_v10, 1  ;;  %v5755_v10 = vld [vmem:[#allocation12_spill] sm:$0xff] }
 0x1c0   : > { %v1801_v26 = vpop.f32.mrf.mxu2  ;;  %v2034_v37 = vpop.f32.mrf.mxu3 }
 0x1c1   : > { %v1802_v1 = vadd.f32 %v1801_v26, %v1713_v2  ;;  %v1714_v7 = vpop.f32.mrf.mxu1  ;;  %v2125_v24 = vpop.f32.mrf.mxu0  ;;  %v732_v26 = vsel %vm711_vm1, %v730_v52, %v731_v47  ;;  %v2522_v44 = vsel %vm454_vm0, %v2517_v45, %v2521_v12  ;;  %v5756_v47 = vld [vmem:[#allocation9_spill] sm:$0xff] }
 0x1c2   : > { %v1715_v18 = vadd.f32 %v1714_v7, %v5753_v30 }
 0x1c3   : > { %v2035_v59 = vadd.f32 %v2034_v37, %v1802_v1  ;;  %v2715_v37 = vsel %vm711_vm1, %v2713_v48, %v2714_v53  ;;  %v2414_v1 = vunpack.c.l.b16 %v3950_v23  ;;  %v4577_v48 = vor.u32 %v4576_v63, %v5756_v47 }
 0x1c5   : > { %v5467_v4 = vadd.f32 %v2123_v9, %v2035_v59  ;;  %v4579_v9 = vld [vmem:[%s4696_s8 + $0x6c] sm:$0xe]  ;;  %v2430_v31 = vpack.c.b16 %v2414_v1, %v2414_v1  ;;  %v5759_v1 = vld [vmem:[#allocation13_spill] sm:$0xff] }
 0x1c6   : > { %v4580_v30 = vor.u32 %v4579_v9, %v4578_v29 }
 0x1c7   : > { %v2531_v23 = vshll.u32 %v2430_v31, 16 }
 0x1c8   : > { %v1803_v0 = vpop.f32.mrf.mxu2  ;;  %v2036_v17 = vpop.f32.mrf.mxu3 }
 0x1c9   : > { %v1804_v38 = vadd.f32 %v1803_v0, %v1715_v18  ;;  %v1717_v49 = vpop.f32.mrf.mxu1  ;;  %v2128_v2 = vpop.f32.mrf.mxu0  ;;  %v2524_v18 = vshrl.u32 %v5463_v40, 16  ;;  %v733_v0 = vrot.slane %v4577_v48, 1  ;;  %v2533_v63 = vrot.slane %v2531_v23, 1 }
 0x1ca   : > { %v1718_v59 = vadd.f32 %v1717_v49, %v5755_v10  ;;  %v3951_v10 = vld [vmem:[%s4696_s8 + $0x80] sm:$0x1] }
 0x1cb   : > { %v2037_v55 = vadd.f32 %v2036_v17, %v1804_v38  ;;  %v5757_v17 = vld [vmem:[#allocation11_spill] sm:$0xff]  ;;  %v2415_v47 = vunpack.c.l.b16 %v3951_v10 }
 0x1cc   : > { %2176 = vmatmul.bf16.gmra.mxu1 %v732_v26  ;;  %3168 = vmatmul.bf16.gmra.mxu0 %v2715_v37  ;;  %v734_v38 = vrot.slane %v5757_v17, 1  ;;  %v2716_v26 = vrot.slane %v4580_v30, 1  ;;  %v2717_v37 = vrot.slane %v2430_v31, 1  ;;  %v4390_v30 = vld [vmem:[%s4696_s8 + $0x60] sm:$0xe]  ;;  %v5761_v17 = vld [vmem:[#allocation15_spill] sm:$0xff] }
 0x1cd   : > { %2990 = vmatmul.bf16.gmra.mxu2 %v4436_v56  ;;  %3079 = vmatmul.bf16.gmra.mxu3 %v2522_v44  ;;  %v5476_v7 = vadd.f32 %v2125_v24, %v2037_v55  ;;  %v2528_v56 = vrot.slane %v2526_v16, 1  ;;  %v2431_v23 = vpack.c.b16 %v2415_v47, %v2415_v47 }
 0x1ce   : > { %v2718_v31 = vsel %vm711_vm1, %v2716_v26, %v2717_v37 }
 0x1cf   : > { %5754 = vst [vmem:[#allocation2_spill] sm:$0xff] %v5476_v7  ;;  %v2529_v44 = vor.u32 %v2528_v56, %v2524_v18 }
 0x1d0   : > { %v1806_v52 = vpop.f32.mrf.mxu2  ;;  %v2039_v20 = vpop.f32.mrf.mxu3 }
 0x1d1   : > { %v1807_v53 = vadd.f32 %v1806_v52, %v1718_v59  ;;  %v1719_v45 = vpop.f32.mrf.mxu1  ;;  %v2130_v12 = vpop.f32.mrf.mxu0 }
 0x1d2   : > { %v1720_v55 = vadd.f32 %v1719_v45, %v5759_v1  ;;  %v4389_v45 = vld [vmem:[%s4696_s8 + $0x60] sm:$0xf0] }
 0x1d3   : > { %v2040_v24 = vadd.f32 %v2039_v20, %v1807_v53  ;;  %v735_v20 = vsel %vm711_vm1, %v733_v0, %v734_v38  ;;  %v4437_v53 = vld [vmem:[%s4696_s8 + $0x78] sm:$0xff]  }
 0x1d4   : > { %v2538_v56 = vshll.u32 %v4437_v53, 16  ;;  %v4454_v0 = vld [vmem:[%s4696_s8 + $0x78] sm:$0xe]  ;;  %v2536_v10 = vshrl.u32 %v4437_v53, 16 }
 0x1d5   : > { %v5483_v49 = vadd.f32 %v2128_v2, %v2040_v24  ;;  %v2534_v2 = vsel %vm454_vm0, %v2529_v44, %v2533_v63  ;;  %v4453_v24 = vld [vmem:[%s4696_s8 + $0x78] sm:$0xf0]  ;;  %v4391_v44 = vor.u32 %v4390_v30, %v4389_v45 }
 0x1d7   : > { %5758 = vst [vmem:[#allocation17_spill] sm:$0xff] %v5483_v49 }
 0x1d8   : > { %v1808_v29 = vpop.f32.mrf.mxu2  ;;  %v2041_v9 = vpop.f32.mrf.mxu3 }
 0x1d9   : > { %v1809_v16 = vadd.f32 %v1808_v29, %v1720_v55  ;;  %v1722_v59 = vpop.f32.mrf.mxu1  ;;  %v2133_v52 = vpop.f32.mrf.mxu0  ;;  %v2540_v29 = vrot.slane %v2538_v56, 1 }
 0x1da   : > { %v1723_v38 = vadd.f32 %v1722_v59, %v5761_v17 }
 0x1db   : > { %v2042_v48 = vadd.f32 %v2041_v9, %v1809_v16  ;;  %v5500_v16 = vld [vmem:[%s4696_s8 + $0x84] sm:$0xff]   ;;  %v2541_v30 = vor.u32 %v2540_v29, %v2536_v10 }
 0x1dc   : > { %2181 = vmatmul.bf16.gmra.mxu1 %v735_v20  ;;  %3173 = vmatmul.bf16.gmra.mxu0 %v2718_v31  ;;  %v4584_v20 = vld [vmem:[%s4696_s8 + $0x84] sm:$0xf0]  ;;  %v736_v31 = vrot.slane %v4391_v44, 1  ;;  %v2550_v10 = vshll.u32 %v5500_v16, 16 }
 0x1dd   : > { %2995 = vmatmul.bf16.gmra.mxu2 %v5463_v40  ;;  %3084 = vmatmul.bf16.gmra.mxu3 %v2534_v2  ;;  %v5494_v18 = vadd.f32 %v2130_v12, %v2042_v48  ;;  %v4455_v40 = vor.u32 %v4454_v0, %v4453_v24  ;;  %v2543_v12 = vshll.u32 %v2431_v23, 16  ;;  %v5762_v2 = vld [vmem:[#allocation14_spill] sm:$0xff]  ;;  %v2720_v48 = vrot.slane %v2431_v23, 1  ;;  %v3952_v0 = vld [vmem:[%s4696_s8 + $0x8c] sm:$0x1] }
 0x1de   : > { %v737_v47 = vrot.slane %v5762_v2, 1  ;;  %v4582_v23 = vld [vmem:[%s4696_s8 + $0x6c] sm:$0xe]  ;;  %v2416_v49 = vunpack.c.l.b16 %v3952_v0  ;;  %v2552_v0 = vrot.slane %v2550_v10, 1 }
 0x1df   : > { %5760 = vst [vmem:[#allocation5_spill] sm:$0xff] %v5494_v18  ;;  %v2719_v59 = vrot.slane %v4455_v40, 1  ;;  %v2545_v17 = vrot.slane %v2543_v12, 1 }
 0x1e0   : > { %v1811_v26 = vpop.f32.mrf.mxu2  ;;  %v2044_v37 = vpop.f32.mrf.mxu3  ;;  %v738_v44 = vsel %vm711_vm1, %v736_v31, %v737_v47  ;;  %v2432_v29 = vpack.c.b16 %v2416_v49, %v2416_v49 }
 0x1e1   : > { %v1812_v63 = vadd.f32 %v1811_v26, %v1723_v38  ;;  %v1724_v1 = vpop.f32.mrf.mxu1  ;;  %v2135_v55 = vpop.f32.mrf.mxu0  ;;  %v5764_v38 = vld [vmem:[#allocation18_spill] sm:$0xff]  ;;  %v2721_v2 = vsel %vm711_vm1, %v2719_v59, %v2720_v48  ;;  %v2546_v40 = vsel %vm454_vm0, %v2541_v30, %v2545_v17  ;;  %v5766_v48 = vld [vmem:[#allocation16_spill] sm:$0xff] }
 0x1e2   : > { %v1725_v24 = vadd.f32 %v1724_v1, %v5764_v38  ;;  %v4583_v30 = vor.u32 %v4582_v23, %v5766_v48 }
 0x1e3   : > { %v2045_v9 = vadd.f32 %v2044_v37, %v1812_v63 }
 0x1e5   : > { %v5504_v45 = vadd.f32 %v2133_v52, %v2045_v9  ;;  %v4585_v52 = vld [vmem:[%s4696_s8 + $0x84] sm:$0xe] }
 0x1e6   : > { %v4586_v17 = vor.u32 %v4585_v52, %v4584_v20  ;;  %v5524_v20 = vld [vmem:[%s5714_s2] ss:$0 sm:$0xff] }
 0x1e7   : > { %5763 = vst [vmem:[#allocation3_spill] sm:$0xff] %v5504_v45 }
 0x1e8   : > { %v1813_v56 = vpop.f32.mrf.mxu2  ;;  %v2046_v26 = vpop.f32.mrf.mxu3 }
 0x1e9   : > { %v1814_v37 = vadd.f32 %v1813_v56, %v1725_v24  ;;  %v2147_v63 = vpop.f32.mrf.mxu1  ;;  %v3139_v18 = vpop.f32.mrf.mxu0  ;;  %v2548_v24 = vshrl.u32 %v5500_v16, 16  ;;  %v2555_v56 = vshll.u32 %v2432_v29, 16 }
 0x1ea   : > { %v2148_v49 = vadd.f32 %v2147_v63, %v5177_v42 }
 0x1eb   : > { %v2047_v9 = vadd.f32 %v2046_v26, %v1814_v37  ;;  %v739_v26 = vrot.slane %v4583_v30, 1  ;;  %v5768_v30 = vld [vmem:[#allocation21_spill] sm:$0xff] }
 0x1ec   : > { %2186 = vmatmul.bf16.gmra.mxu1 %v738_v44  ;;  %3178 = vmatmul.bf16.gmra.mxu0 %v2721_v2  ;;  %v2722_v44 = vrot.slane %v4586_v17, 1  ;;  %v2723_v2 = vrot.slane %v2432_v29, 1 }
 0x1ed   : > { %3000 = vmatmul.bf16.gmra.mxu2 %v4437_v53  ;;  %3089 = vmatmul.bf16.gmra.mxu3 %v2546_v40  ;;  %v5513_v1 = vadd.f32 %v2135_v55, %v2047_v9  ;;  %v5767_v55 = vld [vmem:[#allocation19_spill] sm:$0xff]  ;;  %v2553_v40 = vor.u32 %v2552_v0, %v2548_v24  ;;  %v2557_v9 = vrot.slane %v2555_v56, 1  ;;  %v5531_v0 = vld [vmem:[%s4696_s8 + $0x90] sm:$0xff]  }
 0x1ee   : > { %v740_v37 = vrot.slane %v5767_v55, 1  ;;  %v2724_v63 = vsel %vm711_vm1, %v2722_v44, %v2723_v2  ;;  %v4457_v44 = vld [vmem:[%s4696_s8 + $0x90] sm:$0xe]  ;;  %v2562_v2 = vshll.u32 %v5531_v0, 16 }
 0x1ef   : > { %5765 = vst [vmem:[#allocation4_spill] sm:$0xff] %v5513_v1  ;;  %v2558_v29 = vsel %vm454_vm0, %v2553_v40, %v2557_v9  ;;  %v5551_v1 = vld [vmem:[%s4696_s8 + $0x9c] sm:$0xff]  }
 0x1f0   : > { %v2961_v12 = vpop.f32.mrf.mxu2  ;;  %v3050_v38 = vpop.f32.mrf.mxu3  ;;  %v741_v42 = vsel %vm711_vm1, %v739_v26, %v740_v37  ;;  %v4393_v26 = vld [vmem:[%s4696_s8 + $0x78] sm:$0xe]  ;;  %v4456_v37 = vld [vmem:[%s4696_s8 + $0x90] sm:$0xf0] }
 0x1f1   : > { %v3051_v31 = vadd.f32 %v3050_v38, %v2961_v12  ;;  %v2149_v47 = vpop.f32.mrf.mxu1  ;;  %v3141_v59 = vpop.f32.mrf.mxu0  ;;  %v3953_v12 = vld [vmem:[%s4696_s8 + $0x98] sm:$0x1] }
 0x1f2   : > { %v2417_v48 = vunpack.c.l.b16 %v3953_v12  ;;  %v2150_v17 = vadd.f32 %v2149_v47, %v5768_v30  ;;  %v4458_v12 = vor.u32 %v4457_v44, %v4456_v37  ;;  %v5769_v37 = vld [vmem:[#allocation20_spill] sm:$0xff] }
 0x1f3   : > { %v3140_v53 = vadd.f32 %v3139_v18, %v3051_v31 }
 0x1f5   : > { %v3219_v38 = vadd.f32 %v3140_v53, %v2148_v49  ;;  %v4392_v53 = vld [vmem:[%s4696_s8 + $0x78] sm:$0xf0]  ;;  %v2433_v49 = vpack.c.b16 %v2417_v48, %v2417_v48  ;;  %v2564_v48 = vrot.slane %v2562_v2, 1 }
 0x1f7   : > { %v3255_v56 = vadd.f32 %v5524_v20, %v3219_v38  ;;  %v2567_v30 = vshll.u32 %v2433_v49, 16 }
 0x1f8   : > { %v2963_v23 = vpop.f32.mrf.mxu2  ;;  %v3052_v18 = vpop.f32.mrf.mxu3 }
 0x1f9   : > { %v3053_v52 = vadd.f32 %v3052_v18, %v2963_v23  ;;  %v2152_v10 = vpop.f32.mrf.mxu1  ;;  %v3144_v31 = vpop.f32.mrf.mxu0  ;;  %v2569_v2 = vrot.slane %v2567_v30, 1 }
 0x1fb   : > { %v3142_v24 = vadd.f32 %v3141_v59, %v3053_v52  ;;  %v3388_v59 = vmul.f32 %v3255_v56, %v3255_v56 }
 0x1fc   : > { %2191 = vmatmul.bf16.gmra.mxu1 %v741_v42  ;;  %3183 = vmatmul.bf16.gmra.mxu0 %v2724_v63 }
 0x1fd   : > { %v3220_v55 = vadd.f32 %v3142_v24, %v2150_v17  ;;  %3005 = vmatmul.bf16.gmra.mxu2 %v5500_v16  ;;  %3094 = vmatmul.bf16.gmra.mxu3 %v2558_v29  ;;  %v4394_v16 = vor.u32 %v4393_v26, %v4392_v53  ;;  %v2560_v29 = vshrl.u32 %v5531_v0, 16  ;;  %v2153_v24 = vadd.f32 %v2152_v10, %v5203_v22  ;;  %v4590_v53 = vld [vmem:[%s4696_s8 + $0x9c] sm:$0xf0] }
 0x1ff   : > { %v3256_v47 = vadd.f32 %v5524_v20, %v3220_v55  ;;  %v742_v26 = vrot.slane %v4394_v16, 1 }
 0x200   : > { %v2966_v40 = vpop.f32.mrf.mxu2  ;;  %v3055_v9 = vpop.f32.mrf.mxu3 }
 0x201   : > { %v4293_v38 = vpack.c.bf16 %v3256_v47, %v3255_v56  ;;  %v3351_v23 = vadd.f32 %v3256_v47, %v3255_v56  ;;  %v3389_v18 = vmul.f32 %v3256_v47, %v3256_v47  ;;  %v3056_v52 = vadd.f32 %v3055_v9, %v2966_v40  ;;  %v2154_v42 = vpop.f32.mrf.mxu1  ;;  %v3146_v63 = vpop.f32.mrf.mxu0 }
 0x202   : > { %v743_v56 = vrot.slane %v5769_v37, 1  ;;  %v2725_v47 = vrot.slane %v4458_v12, 1  ;;  %v2726_v40 = vrot.slane %v2433_v49, 1  ;;  %v2565_v9 = vor.u32 %v2564_v48, %v2560_v29  ;;  %v4591_v12 = vld [vmem:[%s4696_s8 + $0x9c] sm:$0xe] }
 0x203   : > { %4294 = vst [vmem:[%s5545_s24] sm:$0xff] %v4293_v38   ;;  %v3420_v17 = vadd.f32 %v3389_v18, %v3388_v59  ;;  %v3145_v55 = vadd.f32 %v3144_v31, %v3056_v52  ;;  %v3954_v38 = vld [vmem:[%s4696_s8 + $0xa4] sm:$0x1]  ;;  %v2155_v30 = vadd.f32 %v2154_v42, %v5220_v36 }
 0x204   : > { %v744_v22 = vsel %vm711_vm1, %v742_v26, %v743_v56  ;;  %v2570_v49 = vsel %vm454_vm0, %v2565_v9, %v2569_v2  ;;  %v2418_v29 = vunpack.c.l.b16 %v3954_v38 }
 0x205   : > { %v3221_v44 = vadd.f32 %v3145_v55, %v2153_v24  ;;  %v2727_v24 = vsel %vm711_vm1, %v2725_v47, %v2726_v40  ;;  %v4588_v55 = vld [vmem:[%s4696_s8 + $0x84] sm:$0xe] }
 0x206   : > { %v2434_v26 = vpack.c.b16 %v2418_v29, %v2418_v29  ;;  %v4589_v9 = vor.u32 %v4588_v55, %v5200_v50  ;;  %v746_v50 = vrot.slane %v5212_v43, 1 }
 0x207   : > { %v3257_v45 = vadd.f32 %v5524_v20, %v3221_v44 }
 0x208   : > { %v2968_v59 = vpop.f32.mrf.mxu2  ;;  %v3057_v18 = vpop.f32.mrf.mxu3 }
 0x209   : > { %v3352_v10 = vadd.f32 %v3351_v23, %v3257_v45  ;;  %v3390_v31 = vmul.f32 %v3257_v45, %v3257_v45  ;;  %v3058_v52 = vadd.f32 %v3057_v18, %v2968_v59  ;;  %v2157_v16 = vpop.f32.mrf.mxu1  ;;  %v3149_v7 = vpop.f32.mrf.mxu0  ;;  %v2574_v23 = vshll.u32 %v5551_v1, 16 }
 0x20b   : > { %v3421_v48 = vadd.f32 %v3420_v17, %v3390_v31  ;;  %v3147_v37 = vadd.f32 %v3146_v63, %v3058_v52  ;;  %v4592_v17 = vor.u32 %v4591_v12, %v4590_v53  ;;  %v2576_v18 = vrot.slane %v2574_v23, 1 }
 0x20c   : > { %2196 = vmatmul.bf16.gmra.mxu1 %v744_v22  ;;  %3188 = vmatmul.bf16.gmra.mxu0 %v2727_v24  ;;  %v2579_v22 = vshll.u32 %v2434_v26, 16  ;;  %v2158_v52 = vadd.f32 %v2157_v16, %v5235_v34 }
 0x20d   : > { %v3222_v44 = vadd.f32 %v3147_v37, %v2155_v30  ;;  %3010 = vmatmul.bf16.gmra.mxu2 %v5531_v0  ;;  %3099 = vmatmul.bf16.gmra.mxu3 %v2570_v49  ;;  %v2572_v0 = vshrl.u32 %v5551_v1, 16  ;;  %v745_v49 = vrot.slane %v4589_v9, 1  ;;  %v3955_v30 = vld [vmem:[%s4696_s8 + $0xb0] sm:$0x1] }
 0x20e   : > { %v2581_v12 = vrot.slane %v2579_v22, 1 }
 0x20f   : > { %v3258_v56 = vadd.f32 %v5524_v20, %v3222_v44  ;;  %v2577_v55 = vor.u32 %v2576_v18, %v2572_v0  ;;  %v4459_v0 = vld [vmem:[%s4696_s8 + $0xa8] sm:$0xf0]  ;;  %v4460_v18 = vld [vmem:[%s4696_s8 + $0xa8] sm:$0xe] }
 0x210   : > { %v2971_v47 = vpop.f32.mrf.mxu2  ;;  %v3060_v40 = vpop.f32.mrf.mxu3 }
 0x211   : > { %v4298_v2 = vpack.c.bf16 %v3258_v56, %v3257_v45  ;;  %v3353_v36 = vadd.f32 %v3352_v10, %v3258_v56  ;;  %v3391_v42 = vmul.f32 %v3258_v56, %v3258_v56  ;;  %v3061_v63 = vadd.f32 %v3060_v40, %v2971_v47  ;;  %v2159_v38 = vpop.f32.mrf.mxu1  ;;  %v3151_v59 = vpop.f32.mrf.mxu0 }
 0x212   : > { %v2728_v45 = vrot.slane %v4592_v17, 1  ;;  %v2729_v10 = vrot.slane %v2434_v26, 1  ;;  %v2582_v56 = vsel %vm454_vm0, %v2577_v55, %v2581_v12  ;;  %v2419_v47 = vunpack.c.l.b16 %v3955_v30 }
 0x213   : > { %4465 = vst [vmem:[%s5545_s24 + $0x8] sm:$0xff] %v4298_v2   ;;  %v3422_v31 = vadd.f32 %v3421_v48, %v3391_v42  ;;  %v3150_v24 = vadd.f32 %v3149_v7, %v3061_v63  ;;  %v747_v48 = vsel %vm711_vm1, %v745_v49, %v746_v50  ;;  %v2160_v9 = vadd.f32 %v2159_v38, %v5248_v51  ;;  %v4439_v2 = vld [vmem:[%s4696_s8 + $0xa8] sm:$0xff]   ;;  %v4396_v63 = vld [vmem:[%s4696_s8 + $0x90] sm:$0xe] }
 0x214   : > { %v2730_v26 = vsel %vm711_vm1, %v2728_v45, %v2729_v10  ;;  %v2586_v22 = vshll.u32 %v4439_v2, 16  ;;  %v4461_v38 = vor.u32 %v4460_v18, %v4459_v0  ;;  %v2584_v55 = vshrl.u32 %v4439_v2, 16 }
 0x215   : > { %v3223_v53 = vadd.f32 %v3150_v24, %v2158_v52  ;;  %v2435_v52 = vpack.c.b16 %v2419_v47, %v2419_v47 }
 0x216   : > { %v2588_v12 = vrot.slane %v2586_v22, 1 }
 0x217   : > { %v3259_v29 = vadd.f32 %v5524_v20, %v3223_v53  ;;  %v2591_v30 = vshll.u32 %v2435_v52, 16  ;;  %v2732_v47 = vrot.slane %v2435_v52, 1 }
 0x218   : > { %v2973_v37 = vpop.f32.mrf.mxu2  ;;  %v3062_v44 = vpop.f32.mrf.mxu3 }
 0x219   : > { %v3354_v23 = vadd.f32 %v3353_v36, %v3259_v29  ;;  %v3392_v34 = vmul.f32 %v3259_v29, %v3259_v29  ;;  %v3063_v7 = vadd.f32 %v3062_v44, %v2973_v37  ;;  %v2162_v16 = vpop.f32.mrf.mxu1  ;;  %v3154_v43 = vpop.f32.mrf.mxu0  ;;  %v4395_v36 = vld [vmem:[%s4696_s8 + $0x90] sm:$0xf0] }
 0x21a   : > { %v4397_v51 = vor.u32 %v4396_v63, %v4395_v36  ;;  %v2163_v44 = vadd.f32 %v2162_v16, %v5261_v60 }
 0x21b   : > { %v3423_v40 = vadd.f32 %v3422_v31, %v3392_v34  ;;  %v3152_v17 = vadd.f32 %v3151_v59, %v3063_v7  ;;  %v5587_v34 = vld [vmem:[%s4696_s8 + $0xb4] sm:$0xff]  }
 0x21c   : > { %2201 = vmatmul.bf16.gmra.mxu1 %v747_v48  ;;  %3193 = vmatmul.bf16.gmra.mxu0 %v2730_v26  ;;  %v4596_v7 = vld [vmem:[%s4696_s8 + $0xb4] sm:$0xf0]  ;;  %v748_v26 = vrot.slane %v4397_v51, 1 }
 0x21d   : > { %v3224_v42 = vadd.f32 %v3152_v17, %v2160_v9  ;;  %3015 = vmatmul.bf16.gmra.mxu2 %v5551_v1  ;;  %3104 = vmatmul.bf16.gmra.mxu3 %v2582_v56  ;;  %v2731_v56 = vrot.slane %v4461_v38, 1  ;;  %v2589_v9 = vor.u32 %v2588_v12, %v2584_v55  ;;  %v2593_v17 = vrot.slane %v2591_v30, 1 }
 0x21f   : > { %v3260_v24 = vadd.f32 %v5524_v20, %v3224_v42  ;;  %v3956_v42 = vld [vmem:[%s4696_s8 + $0xbc] sm:$0x1]  ;;  %v2594_v52 = vsel %vm454_vm0, %v2589_v9, %v2593_v17 }
 0x220   : > { %v2976_v31 = vpop.f32.mrf.mxu2  ;;  %v3065_v49 = vpop.f32.mrf.mxu3 }
 0x221   : > { %v4303_v59 = vpack.c.bf16 %v3260_v24, %v3259_v29  ;;  %v3355_v50 = vadd.f32 %v3354_v23, %v3260_v24  ;;  %v3393_v53 = vmul.f32 %v3260_v24, %v3260_v24  ;;  %v3066_v45 = vadd.f32 %v3065_v49, %v2976_v31  ;;  %v2164_v1 = vpop.f32.mrf.mxu1  ;;  %v3156_v10 = vpop.f32.mrf.mxu0  ;;  %v4594_v24 = vld [vmem:[%s4696_s8 + $0x9c] sm:$0xe]  ;;  %v4597_v31 = vld [vmem:[%s4696_s8 + $0xb4] sm:$0xe] }
 0x222   : > { %v749_v29 = vrot.slane %v5246_v3, 1  ;;  %v2733_v3 = vsel %vm711_vm1, %v2731_v56, %v2732_v47  ;;  %v2420_v49 = vunpack.c.l.b16 %v3956_v42  ;;  %v2165_v38 = vadd.f32 %v2164_v1, %v5277_v28 }
 0x223   : > { %4466 = vst [vmem:[%s5545_s24 + $0x10] sm:$0xff] %v4303_v59   ;;  %v3424_v37 = vadd.f32 %v3423_v40, %v3393_v53  ;;  %v3155_v48 = vadd.f32 %v3154_v43, %v3066_v45 }
 0x224   : > { %v750_v60 = vsel %vm711_vm1, %v748_v26, %v749_v29  ;;  %v2436_v45 = vpack.c.b16 %v2420_v49, %v2420_v49 }
 0x225   : > { %v3225_v23 = vadd.f32 %v3155_v48, %v2163_v44  ;;  %v4595_v44 = vor.u32 %v4594_v24, %v5258_v13  ;;  %v4598_v48 = vor.u32 %v4597_v31, %v4596_v7  ;;  %v752_v13 = vrot.slane %v5269_v58, 1 }
 0x226   : > { %v2603_v56 = vshll.u32 %v2436_v45, 16 }
 0x227   : > { %v3261_v36 = vadd.f32 %v5524_v20, %v3225_v23  ;;  %v751_v42 = vrot.slane %v4595_v44, 1  ;;  %v4463_v44 = vld [vmem:[%s4696_s8 + $0xc0] sm:$0xe] }
 0x228   : > { %v2978_v40 = vpop.f32.mrf.mxu2  ;;  %v3067_v63 = vpop.f32.mrf.mxu3 }
 0x229   : > { %v3356_v16 = vadd.f32 %v3355_v50, %v3261_v36  ;;  %v3394_v43 = vmul.f32 %v3261_v36, %v3261_v36  ;;  %v3068_v0 = vadd.f32 %v3067_v63, %v2978_v40  ;;  %v2167_v18 = vpop.f32.mrf.mxu1  ;;  %v3159_v22 = vpop.f32.mrf.mxu0  ;;  %v2598_v50 = vshll.u32 %v5587_v34, 16 }
 0x22a   : > { %v2168_v9 = vadd.f32 %v2167_v18, %v5291_v8  ;;  %v2735_v40 = vrot.slane %v2436_v45, 1  ;;  %v753_v24 = vsel %vm711_vm1, %v751_v42, %v752_v13  ;;  %v4398_v45 = vld [vmem:[%s4696_s8 + $0xa8] sm:$0xf0] }
 0x22b   : > { %v3425_v51 = vadd.f32 %v3424_v37, %v3394_v43  ;;  %v3157_v59 = vadd.f32 %v3156_v10, %v3068_v0  ;;  %v2600_v23 = vrot.slane %v2598_v50, 1  ;;  %v3957_v43 = vld [vmem:[%s4696_s8 + $0xc8] sm:$0x1]  ;;  %v4440_v50 = vld [vmem:[%s4696_s8 + $0xc0] sm:$0xff]  }
 0x22c   : > { %2206 = vmatmul.bf16.gmra.mxu1 %v750_v60  ;;  %3198 = vmatmul.bf16.gmra.mxu0 %v2733_v3  ;;  %v2605_v60 = vrot.slane %v2603_v56, 1 }
 0x22d   : > { %v3226_v53 = vadd.f32 %v3157_v59, %v2165_v38  ;;  %3020 = vmatmul.bf16.gmra.mxu2 %v4439_v2  ;;  %3109 = vmatmul.bf16.gmra.mxu3 %v2594_v52  ;;  %v2596_v2 = vshrl.u32 %v5587_v34, 16 }
 0x22f   : > { %v3262_v55 = vadd.f32 %v5524_v20, %v3226_v53  ;;  %v2601_v63 = vor.u32 %v2600_v23, %v2596_v2 }
 0x230   : > { %v2981_v12 = vpop.f32.mrf.mxu2  ;;  %v3070_v30 = vpop.f32.mrf.mxu3 }
 0x231   : > { %v4308_v37 = vpack.c.bf16 %v3262_v55, %v3261_v36  ;;  %v3357_v26 = vadd.f32 %v3356_v16, %v3262_v55  ;;  %v3395_v28 = vmul.f32 %v3262_v55, %v3262_v55  ;;  %v3071_v1 = vadd.f32 %v3070_v30, %v2981_v12  ;;  %v2169_v10 = vpop.f32.mrf.mxu1  ;;  %v3161_v29 = vpop.f32.mrf.mxu0  ;;  %v4399_v12 = vld [vmem:[%s4696_s8 + $0xa8] sm:$0xe]  ;;  %v4462_v30 = vld [vmem:[%s4696_s8 + $0xc0] sm:$0xf0] }
 0x232   : > { %v2734_v36 = vrot.slane %v4598_v48, 1  ;;  %v2606_v49 = vsel %vm454_vm0, %v2601_v63, %v2605_v60  ;;  %v2170_v59 = vadd.f32 %v2169_v10, %v5304_v25  ;;  %v2610_v48 = vshll.u32 %v4440_v50, 16  ;;  %v4602_v63 = vld [vmem:[%s4696_s8 + $0xcc] sm:$0xf0] }
 0x233   : > { %4467 = vst [vmem:[%s5545_s24 + $0x18] sm:$0xff] %v4308_v37   ;;  %v3426_v47 = vadd.f32 %v3425_v51, %v3395_v28  ;;  %v3160_v17 = vadd.f32 %v3159_v22, %v3071_v1  ;;  %v2421_v51 = vunpack.c.l.b16 %v3957_v43  ;;  %v4400_v25 = vor.u32 %v4399_v12, %v4398_v45  ;;  %v4603_v45 = vld [vmem:[%s4696_s8 + $0xcc] sm:$0xe] }
 0x234   : > { %v2736_v52 = vsel %vm711_vm1, %v2734_v36, %v2735_v40  ;;  %v4464_v10 = vor.u32 %v4463_v44, %v4462_v30  ;;  %v5622_v40 = vld [vmem:[%s4696_s8 + $0xcc] sm:$0xff]  }
 0x235   : > { %v3227_v7 = vadd.f32 %v3160_v17, %v2168_v9  ;;  %v2437_v37 = vpack.c.b16 %v2421_v51, %v2421_v51  ;;  %v2608_v9 = vshrl.u32 %v4440_v50, 16  ;;  %v2612_v17 = vrot.slane %v2610_v48, 1 }
 0x236   : > { %v754_v60 = vrot.slane %v4400_v25, 1 }
 0x237   : > { %v3263_v16 = vadd.f32 %v5524_v20, %v3227_v7  ;;  %v2615_v42 = vshll.u32 %v2437_v37, 16 }
 0x238   : > { %v2983_v0 = vpop.f32.mrf.mxu2  ;;  %v3072_v3 = vpop.f32.mrf.mxu3 }
 0x239   : > { %v3358_v31 = vadd.f32 %v3357_v26, %v3263_v16  ;;  %v3396_v8 = vmul.f32 %v3263_v16, %v3263_v16  ;;  %v3073_v18 = vadd.f32 %v3072_v3, %v2983_v0  ;;  %v2172_v22 = vpop.f32.mrf.mxu1  ;;  %v3164_v58 = vpop.f32.mrf.mxu0  ;;  %v2737_v0 = vrot.slane %v4464_v10, 1 }
 0x23a   : > { %v2173_v7 = vadd.f32 %v2172_v22, %v5317_v14  ;;  %v2738_v3 = vrot.slane %v2437_v37, 1 }
 0x23b   : > { %v3427_v38 = vadd.f32 %v3426_v47, %v3396_v8  ;;  %v3162_v53 = vadd.f32 %v3161_v29, %v3073_v18  ;;  %v3958_v18 = vld [vmem:[%s4696_s8 + $0xd4] sm:$0x1] }
 0x23c   : > { %2211 = vmatmul.bf16.gmra.mxu1 %v753_v24  ;;  %3203 = vmatmul.bf16.gmra.mxu0 %v2736_v52  ;;  %v2613_v24 = vor.u32 %v2612_v17, %v2608_v9  ;;  %v2422_v12 = vunpack.c.l.b16 %v3958_v18 }
 0x23d   : > { %v3228_v55 = vadd.f32 %v3162_v53, %v2170_v59  ;;  %3025 = vmatmul.bf16.gmra.mxu2 %v5587_v34  ;;  %3114 = vmatmul.bf16.gmra.mxu3 %v2606_v49  ;;  %v4600_v53 = vld [vmem:[%s4696_s8 + $0xb4] sm:$0xe] }
 0x23f   : > { %v3264_v26 = vadd.f32 %v5524_v20, %v3228_v55 }
 0x240   : > { %v2986_v28 = vpop.f32.mrf.mxu2  ;;  %v3075_v1 = vpop.f32.mrf.mxu3 }
 0x241   : > { %v4313_v29 = vpack.c.bf16 %v3264_v26, %v3263_v16  ;;  %v3359_v2 = vadd.f32 %v3358_v31, %v3264_v26  ;;  %v3397_v23 = vmul.f32 %v3264_v26, %v3264_v26  ;;  %v3076_v56 = vadd.f32 %v3075_v1, %v2986_v28  ;;  %v2174_v34 = vpop.f32.mrf.mxu1  ;;  %v3166_v47 = vpop.f32.mrf.mxu0 }
 0x242   : > { %v755_v16 = vrot.slane %v5302_v35, 1  ;;  %v2617_v31 = vrot.slane %v2615_v42, 1  ;;  %v2739_v35 = vsel %vm711_vm1, %v2737_v0, %v2738_v3  ;;  %v2175_v44 = vadd.f32 %v2174_v34, %v5328_v32 }
 0x243   : > { %4468 = vst [vmem:[%s5545_s24 + $0x20] sm:$0xff] %v4313_v29   ;;  %v3428_v13 = vadd.f32 %v3427_v38, %v3397_v23  ;;  %v3165_v36 = vadd.f32 %v3164_v58, %v3076_v56  ;;  %v2622_v26 = vshll.u32 %v5622_v40, 16  ;;  %v2438_v28 = vpack.c.b16 %v2422_v12, %v2422_v12  ;;  %v5770_v29 = vld [vmem:[#allocation22_spill] sm:$0xff] }
 0x244   : > { %v756_v14 = vsel %vm711_vm1, %v754_v60, %v755_v16  ;;  %v2618_v55 = vsel %vm454_vm0, %v2613_v24, %v2617_v31  ;;  %v4604_v23 = vor.u32 %v4603_v45, %v4602_v63 }
 0x245   : > { %v3229_v43 = vadd.f32 %v3165_v36, %v2173_v7  ;;  %v2624_v42 = vrot.slane %v2622_v26, 1  ;;  %v2741_v3 = vrot.slane %v2438_v28, 1 }
 0x246   : > { %v2740_v63 = vrot.slane %v4604_v23, 1 }
 0x247   : > { %v3265_v8 = vadd.f32 %v5524_v20, %v3229_v43  ;;  %v758_v43 = vrot.slane %v5326_v41, 1 }
 0x248   : > { %v2988_v52 = vpop.f32.mrf.mxu2  ;;  %v3077_v49 = vpop.f32.mrf.mxu3 }
 0x249   : > { %v3360_v22 = vadd.f32 %v3359_v2, %v3265_v8  ;;  %v3398_v58 = vmul.f32 %v3265_v8, %v3265_v8  ;;  %v3078_v51 = vadd.f32 %v3077_v49, %v2988_v52  ;;  %v2177_v38 = vpop.f32.mrf.mxu1  ;;  %v3169_v59 = vpop.f32.mrf.mxu0  ;;  %v4601_v2 = vor.u32 %v4600_v53, %v5770_v29 }
 0x24a   : > { %v2178_v36 = vadd.f32 %v2177_v38, %v5335_v5  ;;  %v2742_v38 = vsel %vm711_vm1, %v2740_v63, %v2741_v3 }
 0x24b   : > { %v3429_v30 = vadd.f32 %v3428_v13, %v3398_v58  ;;  %v3167_v48 = vadd.f32 %v3166_v47, %v3078_v51  ;;  %v2627_v13 = vshll.u32 %v2438_v28, 16  ;;  %v757_v16 = vrot.slane %v4601_v2, 1 }
 0x24c   : > { %2216 = vmatmul.bf16.gmra.mxu1 %v756_v14  ;;  %3208 = vmatmul.bf16.gmra.mxu0 %v2739_v35 }
 0x24d   : > { %v3230_v37 = vadd.f32 %v3167_v48, %v2175_v44  ;;  %3030 = vmatmul.bf16.gmra.mxu2 %v4440_v50  ;;  %3119 = vmatmul.bf16.gmra.mxu3 %v2618_v55  ;;  %v2620_v50 = vshrl.u32 %v5622_v40, 16  ;;  %v2629_v31 = vrot.slane %v2627_v13, 1  ;;  %v759_v49 = vsel %vm711_vm1, %v757_v16, %v758_v43 }
 0x24f   : > { %v3266_v1 = vadd.f32 %v5524_v20, %v3230_v37  ;;  %v2625_v24 = vor.u32 %v2624_v42, %v2620_v50 }
 0x250   : > { %v2991_v25 = vpop.f32.mrf.mxu2  ;;  %v3080_v10 = vpop.f32.mrf.mxu3 }
 0x251   : > { %v4318_v56 = vpack.c.bf16 %v3266_v1, %v3265_v8  ;;  %v3361_v9 = vadd.f32 %v3360_v22, %v3266_v1  ;;  %v3399_v32 = vmul.f32 %v3266_v1, %v3266_v1  ;;  %v3081_v34 = vadd.f32 %v3080_v10, %v2991_v25  ;;  %v2179_v47 = vpop.f32.mrf.mxu1  ;;  %v3171_v17 = vpop.f32.mrf.mxu0 }
 0x252   : > { %v2630_v41 = vsel %vm454_vm0, %v2625_v24, %v2629_v31  ;;  %v2180_v35 = vadd.f32 %v2179_v47, %v5346_v54 }
 0x253   : > { %4469 = vst [vmem:[%s5545_s24 + $0x28] sm:$0xff] %v4318_v56   ;;  %v3430_v7 = vadd.f32 %v3429_v30, %v3399_v32  ;;  %v3170_v60 = vadd.f32 %v3169_v59, %v3081_v34 }
 0x255   : > { %v3231_v0 = vadd.f32 %v3170_v60, %v2178_v36 }
 0x257   : > { %v3267_v8 = vadd.f32 %v5524_v20, %v3231_v0 }
 0x258   : > { %v2993_v18 = vpop.f32.mrf.mxu2  ;;  %v3082_v52 = vpop.f32.mrf.mxu3 }
 0x259   : > { %v3362_v14 = vadd.f32 %v3361_v9, %v3267_v8  ;;  %v3400_v22 = vmul.f32 %v3267_v8, %v3267_v8  ;;  %v3083_v58 = vadd.f32 %v3082_v52, %v2993_v18  ;;  %v2182_v51 = vpop.f32.mrf.mxu1  ;;  %v3174_v5 = vpop.f32.mrf.mxu0 }
 0x25a   : > { %v2183_v25 = vadd.f32 %v2182_v51, %v5356_v11 }
 0x25b   : > { %v3431_v59 = vadd.f32 %v3430_v7, %v3400_v22  ;;  %v3172_v53 = vadd.f32 %v3171_v17, %v3083_v58 }
 0x25c   : > { %2221 = vmatmul.bf16.gmra.mxu1 %v759_v49  ;;  %3213 = vmatmul.bf16.gmra.mxu0 %v2742_v38 }
 0x25d   : > { %v3232_v45 = vadd.f32 %v3172_v53, %v2180_v35  ;;  %3035 = vmatmul.bf16.gmra.mxu2 %v5622_v40  ;;  %3124 = vmatmul.bf16.gmra.mxu3 %v2630_v41 }
 0x25f   : > { %v3268_v55 = vadd.f32 %v5524_v20, %v3232_v45 }
 0x260   : > { %v2996_v12 = vpop.f32.mrf.mxu2  ;;  %v3085_v30 = vpop.f32.mrf.mxu3 }
 0x261   : > { %v4323_v44 = vpack.c.bf16 %v3268_v55, %v3267_v8  ;;  %v3363_v48 = vadd.f32 %v3362_v14, %v3268_v55  ;;  %v3401_v37 = vmul.f32 %v3268_v55, %v3268_v55  ;;  %v3086_v26 = vadd.f32 %v3085_v30, %v2996_v12  ;;  %v2184_v28 = vpop.f32.mrf.mxu1  ;;  %v3176_v1 = vpop.f32.mrf.mxu0 }
 0x262   : > { %v2185_v50 = vadd.f32 %v2184_v28, %v5365_v57 }
 0x263   : > { %4470 = vst [vmem:[%s5545_s24 + $0x30] sm:$0xff] %v4323_v44   ;;  %v3432_v54 = vadd.f32 %v3431_v59, %v3401_v37  ;;  %v3175_v10 = vadd.f32 %v3174_v5, %v3086_v26 }
 0x265   : > { %v3233_v29 = vadd.f32 %v3175_v10, %v2183_v25 }
 0x267   : > { %v3269_v2 = vadd.f32 %v5524_v20, %v3233_v29 }
 0x268   : > { %v2998_v40 = vpop.f32.mrf.mxu2  ;;  %v3087_v23 = vpop.f32.mrf.mxu3 }
 0x269   : > { %v3364_v56 = vadd.f32 %v3363_v48, %v3269_v2  ;;  %v3402_v9 = vmul.f32 %v3269_v2, %v3269_v2  ;;  %v3088_v32 = vadd.f32 %v3087_v23, %v2998_v40  ;;  %v2187_v34 = vpop.f32.mrf.mxu1  ;;  %v3179_v47 = vpop.f32.mrf.mxu0 }
 0x26a   : > { %v2188_v31 = vadd.f32 %v2187_v34, %v5372_v33 }
 0x26b   : > { %v3433_v17 = vadd.f32 %v3432_v54, %v3402_v9  ;;  %v3177_v42 = vadd.f32 %v3176_v1, %v3088_v32 }
 0x26d   : > { %v3234_v13 = vadd.f32 %v3177_v42, %v2185_v50 }
 0x26f   : > { %v3270_v7 = vadd.f32 %v5524_v20, %v3234_v13 }
 0x270   : > { %v3001_v11 = vpop.f32.mrf.mxu2  ;;  %v3090_v36 = vpop.f32.mrf.mxu3 }
 0x271   : > { %v4328_v60 = vpack.c.bf16 %v3270_v7, %v3269_v2  ;;  %v3365_v16 = vadd.f32 %v3364_v56, %v3270_v7  ;;  %v3403_v43 = vmul.f32 %v3270_v7, %v3270_v7  ;;  %v3091_v0 = vadd.f32 %v3090_v36, %v3001_v11  ;;  %v2189_v63 = vpop.f32.mrf.mxu1  ;;  %v3181_v3 = vpop.f32.mrf.mxu0 }
 0x272   : > { %v2190_v41 = vadd.f32 %v2189_v63, %v5383_v27 }
 0x273   : > { %4471 = vst [vmem:[%s5545_s24 + $0x38] sm:$0xff] %v4328_v60   ;;  %v3434_v24 = vadd.f32 %v3433_v17, %v3403_v43  ;;  %v3180_v8 = vadd.f32 %v3179_v47, %v3091_v0 }
 0x275   : > { %v3235_v18 = vadd.f32 %v3180_v8, %v2188_v31 }
 0x277   : > { %v3271_v57 = vadd.f32 %v5524_v20, %v3235_v18 }
 0x278   : > { %v3003_v52 = vpop.f32.mrf.mxu2  ;;  %v3092_v49 = vpop.f32.mrf.mxu3 }
 0x279   : > { %v3366_v14 = vadd.f32 %v3365_v16, %v3271_v57  ;;  %v3404_v22 = vmul.f32 %v3271_v57, %v3271_v57  ;;  %v3093_v58 = vadd.f32 %v3092_v49, %v3003_v52  ;;  %v2192_v51 = vpop.f32.mrf.mxu1  ;;  %v3184_v5 = vpop.f32.mrf.mxu0 }
 0x27a   : > { %v2193_v28 = vadd.f32 %v2192_v51, %v5393_v21 }
 0x27b   : > { %v3435_v38 = vadd.f32 %v3434_v24, %v3404_v22  ;;  %v3182_v59 = vadd.f32 %v3181_v3, %v3093_v58 }
 0x27d   : > { %v3236_v35 = vadd.f32 %v3182_v59, %v2190_v41 }
 0x27f   : > { %v3272_v53 = vadd.f32 %v5524_v20, %v3236_v35 }
 0x280   : > { %v3006_v33 = vpop.f32.mrf.mxu2  ;;  %v3095_v45 = vpop.f32.mrf.mxu3 }
 0x281   : > { %v4333_v55 = vpack.c.bf16 %v3272_v53, %v3271_v57  ;;  %v3367_v12 = vadd.f32 %v3366_v14, %v3272_v53  ;;  %v3405_v30 = vmul.f32 %v3272_v53, %v3272_v53  ;;  %v3096_v44 = vadd.f32 %v3095_v45, %v3006_v33  ;;  %v2194_v48 = vpop.f32.mrf.mxu1  ;;  %v3186_v37 = vpop.f32.mrf.mxu0 }
 0x282   : > { %v2195_v32 = vadd.f32 %v2194_v48, %v5402_v46 }
 0x283   : > { %4472 = vst [vmem:[%s5545_s24 + $0x40] sm:$0xff] %v4333_v55   ;;  %v3436_v26 = vadd.f32 %v3435_v38, %v3405_v30  ;;  %v3185_v1 = vadd.f32 %v3184_v5, %v3096_v44 }
 0x285   : > { %v3237_v54 = vadd.f32 %v3185_v1, %v2193_v28 }
 0x287   : > { %v3273_v27 = vadd.f32 %v5524_v20, %v3237_v54 }
 0x288   : > { %v3008_v25 = vpop.f32.mrf.mxu2  ;;  %v3097_v10 = vpop.f32.mrf.mxu3 }
 0x289   : > { %v3368_v29 = vadd.f32 %v3367_v12, %v3273_v27  ;;  %v3406_v2 = vmul.f32 %v3273_v27, %v3273_v27  ;;  %v3098_v40 = vadd.f32 %v3097_v10, %v3008_v25  ;;  %v2197_v23 = vpop.f32.mrf.mxu1  ;;  %v3189_v56 = vpop.f32.mrf.mxu0 }
 0x28a   : > { %v2198_v43 = vadd.f32 %v2197_v23, %v5409_v62 }
 0x28b   : > { %v3437_v9 = vadd.f32 %v3436_v26, %v3406_v2  ;;  %v3187_v34 = vadd.f32 %v3186_v37, %v3098_v40 }
 0x28d   : > { %v3238_v47 = vadd.f32 %v3187_v34, %v2195_v32 }
 0x28f   : > { %v3274_v17 = vadd.f32 %v5524_v20, %v3238_v47 }
 0x290   : > { %v3011_v21 = vpop.f32.mrf.mxu2  ;;  %v3100_v50 = vpop.f32.mrf.mxu3 }
 0x291   : > { %v4338_v42 = vpack.c.bf16 %v3274_v17, %v3273_v27  ;;  %v3369_v13 = vadd.f32 %v3368_v29, %v3274_v17  ;;  %v3407_v7 = vmul.f32 %v3274_v17, %v3274_v17  ;;  %v3101_v11 = vadd.f32 %v3100_v50, %v3011_v21  ;;  %v2199_v36 = vpop.f32.mrf.mxu1  ;;  %v3191_v60 = vpop.f32.mrf.mxu0 }
 0x292   : > { %v2200_v14 = vadd.f32 %v2199_v36, %v5420_v15 }
 0x293   : > { %4473 = vst [vmem:[%s5545_s24 + $0x48] sm:$0xff] %v4338_v42   ;;  %v3438_v16 = vadd.f32 %v3437_v9, %v3407_v7  ;;  %v3190_v0 = vadd.f32 %v3189_v56, %v3101_v11 }
 0x295   : > { %v3239_v63 = vadd.f32 %v3190_v0, %v2198_v43 }
 0x297   : > { %v3275_v46 = vadd.f32 %v5524_v20, %v3239_v63 }
 0x298   : > { %v3013_v3 = vpop.f32.mrf.mxu2  ;;  %v3102_v24 = vpop.f32.mrf.mxu3 }
 0x299   : > { %v3370_v31 = vadd.f32 %v3369_v13, %v3275_v46  ;;  %v3408_v8 = vmul.f32 %v3275_v46, %v3275_v46  ;;  %v3103_v18 = vadd.f32 %v3102_v24, %v3013_v3  ;;  %v2202_v57 = vpop.f32.mrf.mxu1  ;;  %v3194_v52 = vpop.f32.mrf.mxu0 }
 0x29a   : > { %v2203_v55 = vadd.f32 %v2202_v57, %v5430_v6 }
 0x29b   : > { %v3439_v49 = vadd.f32 %v3438_v16, %v3408_v8  ;;  %v3192_v22 = vadd.f32 %v3191_v60, %v3103_v18 }
 0x29d   : > { %v3240_v58 = vadd.f32 %v3192_v22, %v2200_v14 }
 0x29f   : > { %v3276_v51 = vadd.f32 %v5524_v20, %v3240_v58 }
 0x2a0   : > { %v3016_v62 = vpop.f32.mrf.mxu2  ;;  %v3105_v5 = vpop.f32.mrf.mxu3 }
 0x2a1   : > { %v4343_v38 = vpack.c.bf16 %v3276_v51, %v3275_v46  ;;  %v3371_v41 = vadd.f32 %v3370_v31, %v3276_v51  ;;  %v3409_v59 = vmul.f32 %v3276_v51, %v3276_v51  ;;  %v3106_v35 = vadd.f32 %v3105_v5, %v3016_v62  ;;  %v2204_v53 = vpop.f32.mrf.mxu1  ;;  %v3196_v33 = vpop.f32.mrf.mxu0 }
 0x2a2   : > { %v2205_v25 = vadd.f32 %v2204_v53, %v5439_v61 }
 0x2a3   : > { %4474 = vst [vmem:[%s5545_s24 + $0x50] sm:$0xff] %v4343_v38   ;;  %v3440_v45 = vadd.f32 %v3439_v49, %v3409_v59  ;;  %v3195_v12 = vadd.f32 %v3194_v52, %v3106_v35 }
 0x2a5   : > { %v3241_v30 = vadd.f32 %v3195_v12, %v2203_v55 }
 0x2a7   : > { %v3277_v15 = vadd.f32 %v5524_v20, %v3241_v30 }
 0x2a8   : > { %v3018_v44 = vpop.f32.mrf.mxu2  ;;  %v3107_v48 = vpop.f32.mrf.mxu3 }
 0x2a9   : > { %v3372_v37 = vadd.f32 %v3371_v41, %v3277_v15  ;;  %v3410_v26 = vmul.f32 %v3277_v15, %v3277_v15  ;;  %v3108_v28 = vadd.f32 %v3107_v48, %v3018_v44  ;;  %v2207_v1 = vpop.f32.mrf.mxu1  ;;  %v3199_v54 = vpop.f32.mrf.mxu0 }
 0x2aa   : > { %v2208_v21 = vadd.f32 %v2207_v1, %v5446_v39 }
 0x2ab   : > { %v3441_v27 = vadd.f32 %v3440_v45, %v3410_v26  ;;  %v3197_v10 = vadd.f32 %v3196_v33, %v3108_v28  ;;  %v5771_v45 = vld [vmem:[#allocation2_spill] sm:$0xff] }
 0x2ad   : > { %v3242_v29 = vadd.f32 %v3197_v10, %v2205_v25 }
 0x2af   : > { %v3278_v2 = vadd.f32 %v5524_v20, %v3242_v29 }
 0x2b0   : > { %v3021_v6 = vpop.f32.mrf.mxu2  ;;  %v3110_v40 = vpop.f32.mrf.mxu3 }
 0x2b1   : > { %v4348_v23 = vpack.c.bf16 %v3278_v2, %v3277_v15  ;;  %v3373_v56 = vadd.f32 %v3372_v37, %v3278_v2  ;;  %v3411_v9 = vmul.f32 %v3278_v2, %v3278_v2  ;;  %v3111_v32 = vadd.f32 %v3110_v40, %v3021_v6  ;;  %v2209_v34 = vpop.f32.mrf.mxu1  ;;  %v3201_v47 = vpop.f32.mrf.mxu0 }
 0x2b2   : > { %v2210_v63 = vadd.f32 %v2209_v34, %v5457_v19  ;;  %v5683_v19 = vld [vmem:[%s5714_s2] ss:$0 sm:$0xff] }
 0x2b3   : > { %4475 = vst [vmem:[%s5545_s24 + $0x58] sm:$0xff] %v4348_v23   ;;  %v3442_v17 = vadd.f32 %v3441_v27, %v3411_v9  ;;  %v3200_v50 = vadd.f32 %v3199_v54, %v3111_v32  ;;  %v5772_v27 = vld [vmem:[#allocation17_spill] sm:$0xff] }
 0x2b5   : > { %v3243_v42 = vadd.f32 %v3200_v50, %v2208_v21 }
 0x2b7   : > { %v3279_v61 = vadd.f32 %v5524_v20, %v3243_v42 }
 0x2b8   : > { %v3023_v13 = vpop.f32.mrf.mxu2  ;;  %v3112_v7 = vpop.f32.mrf.mxu3 }
 0x2b9   : > { %v3374_v11 = vadd.f32 %v3373_v56, %v3279_v61  ;;  %v3412_v36 = vmul.f32 %v3279_v61, %v3279_v61  ;;  %v3113_v60 = vadd.f32 %v3112_v7, %v3023_v13  ;;  %v2212_v16 = vpop.f32.mrf.mxu1  ;;  %v3204_v43 = vpop.f32.mrf.mxu0 }
 0x2ba   : > { %v2213_v58 = vadd.f32 %v2212_v16, %v5467_v4 }
 0x2bb   : > { %v3443_v0 = vadd.f32 %v3442_v17, %v3412_v36  ;;  %v3202_v46 = vadd.f32 %v3201_v47, %v3113_v60  ;;  %v5773_v17 = vld [vmem:[#allocation5_spill] sm:$0xff] }
 0x2bd   : > { %v3244_v3 = vadd.f32 %v3202_v46, %v2210_v63  ;;  %v5774_v46 = vld [vmem:[#allocation3_spill] sm:$0xff] }
 0x2bf   : > { %v3280_v24 = vadd.f32 %v5524_v20, %v3244_v3 }
 0x2c0   : > { %v3026_v39 = vpop.f32.mrf.mxu2  ;;  %v3115_v31 = vpop.f32.mrf.mxu3 }
 0x2c1   : > { %v4353_v8 = vpack.c.bf16 %v3280_v24, %v3279_v61  ;;  %v3375_v18 = vadd.f32 %v3374_v11, %v3280_v24  ;;  %v3413_v57 = vmul.f32 %v3280_v24, %v3280_v24  ;;  %v3116_v52 = vadd.f32 %v3115_v31, %v3026_v39  ;;  %v2214_v49 = vpop.f32.mrf.mxu1  ;;  %v3206_v14 = vpop.f32.mrf.mxu0 }
 0x2c2   : > { %v2215_v55 = vadd.f32 %v2214_v49, %v5771_v45 }
 0x2c3   : > { %4476 = vst [vmem:[%s5545_s24 + $0x60] sm:$0xff] %v4353_v8   ;;  %v3444_v22 = vadd.f32 %v3443_v0, %v3413_v57  ;;  %v3205_v51 = vadd.f32 %v3204_v43, %v3116_v52 }
 0x2c5   : > { %v3245_v62 = vadd.f32 %v3205_v51, %v2213_v58  ;;  %v5775_v51 = vld [vmem:[#allocation4_spill] sm:$0xff] }
 0x2c7   : > { %v3281_v20 = vadd.f32 %v5683_v19, %v3245_v62 }
 0x2c8   : > { %v3028_v5 = vpop.f32.mrf.mxu2  ;;  %v3117_v38 = vpop.f32.mrf.mxu3 }
 0x2c9   : > { %v3376_v41 = vadd.f32 %v3375_v18, %v3281_v20  ;;  %v3414_v59 = vmul.f32 %v3281_v20, %v3281_v20  ;;  %v3118_v35 = vadd.f32 %v3117_v38, %v3028_v5  ;;  %v2217_v53 = vpop.f32.mrf.mxu1  ;;  %v3209_v12 = vpop.f32.mrf.mxu0 }
 0x2ca   : > { %v2218_v25 = vadd.f32 %v2217_v53, %v5772_v27 }
 0x2cb   : > { %v3445_v33 = vadd.f32 %v3444_v22, %v3414_v59  ;;  %v3207_v4 = vadd.f32 %v3206_v14, %v3118_v35 }
 0x2cd   : > { %v3246_v30 = vadd.f32 %v3207_v4, %v2215_v55 }
 0x2cf   : > { %v3282_v15 = vadd.f32 %v5683_v19, %v3246_v30 }
 0x2d0   : > { %v3031_v44 = vpop.f32.mrf.mxu2  ;;  %v3120_v48 = vpop.f32.mrf.mxu3 }
 0x2d1   : > { %v4358_v37 = vpack.c.bf16 %v3282_v15, %v3281_v20  ;;  %v3377_v26 = vadd.f32 %v3376_v41, %v3282_v15  ;;  %v3415_v28 = vmul.f32 %v3282_v15, %v3282_v15  ;;  %v3121_v1 = vadd.f32 %v3120_v48, %v3031_v44  ;;  %v2219_v29 = vpop.f32.mrf.mxu1  ;;  %v3211_v6 = vpop.f32.mrf.mxu0 }
 0x2d2   : > { %v2220_v21 = vadd.f32 %v2219_v29, %v5773_v17 }
 0x2d3   : > { %4477 = vst [vmem:[%s5545_s24 + $0x68] sm:$0xff] %v4358_v37   ;;  %v3446_v54 = vadd.f32 %v3445_v33, %v3415_v28  ;;  %v3210_v10 = vadd.f32 %v3209_v12, %v3121_v1 }
 0x2d5   : > { %v3247_v2 = vadd.f32 %v3210_v10, %v2218_v25 }
 0x2d7   : > { %v3283_v40 = vadd.f32 %v5683_v19, %v3247_v2 }
 0x2d8   : > { %v3033_v23 = vpop.f32.mrf.mxu2  ;;  %v3122_v56 = vpop.f32.mrf.mxu3 }
 0x2d9   : > { %v3378_v9 = vadd.f32 %v3377_v26, %v3283_v40  ;;  %v3416_v32 = vmul.f32 %v3283_v40, %v3283_v40  ;;  %v3123_v34 = vadd.f32 %v3122_v56, %v3033_v23  ;;  %v2222_v61 = vpop.f32.mrf.mxu1  ;;  %v3214_v7 = vpop.f32.mrf.mxu0 }
 0x2da   : > { %v2223_v3 = vadd.f32 %v2222_v61, %v5774_v46 }
 0x2db   : > { %v3447_v47 = vadd.f32 %v3446_v54, %v3416_v32  ;;  %v3212_v50 = vadd.f32 %v3211_v6, %v3123_v34 }
 0x2dd   : > { %v3248_v42 = vadd.f32 %v3212_v50, %v2220_v21 }
 0x2df   : > { %v3284_v13 = vadd.f32 %v5683_v19, %v3248_v42 }
 0x2e0   : > { %v3036_v11 = vpop.f32.mrf.mxu2  ;;  %v3125_v36 = vpop.f32.mrf.mxu3 }
 0x2e1   : > { %v4363_v60 = vpack.c.bf16 %v3284_v13, %v3283_v40  ;;  %v3379_v16 = vadd.f32 %v3378_v9, %v3284_v13  ;;  %v3417_v43 = vmul.f32 %v3284_v13, %v3284_v13  ;;  %v3126_v0 = vadd.f32 %v3125_v36, %v3036_v11  ;;  %v2224_v8 = vpop.f32.mrf.mxu1  ;;  %v3216_v22 = vpop.f32.mrf.mxu0 }
 0x2e2   : > { %v2225_v62 = vadd.f32 %v2224_v8, %v5775_v51 }
 0x2e3   : > { %4478 = vst [vmem:[%s5545_s24 + $0x70] sm:$0xff] %v4363_v60   ;;  %v3448_v63 = vadd.f32 %v3447_v47, %v3417_v43  ;;  %v3215_v24 = vadd.f32 %v3214_v7, %v3126_v0 }
 0x2e5   : > { %v3249_v39 = vadd.f32 %v3215_v24, %v2223_v3 }
 0x2e7   : > { %v3285_v31 = vadd.f32 %v5683_v19, %v3249_v39 }
 0x2e8   : > { %v3038_v18 = vpop.f32.mrf.mxu2  ;;  %v3127_v57 = vpop.f32.mrf.mxu3 }
 0x2e9   : > { %v3380_v52 = vadd.f32 %v3379_v16, %v3285_v31  ;;  %v3418_v49 = vmul.f32 %v3285_v31, %v3285_v31  ;;  %v3128_v14 = vadd.f32 %v3127_v57, %v3038_v18 }
 0x2eb   : > { %v3449_v58 = vadd.f32 %v3448_v63, %v3418_v49  ;;  %v3217_v20 = vadd.f32 %v3216_v22, %v3128_v14 }
 0x2ed   : > { %v3250_v5 = vadd.f32 %v3217_v20, %v2225_v62 }
 0x2ef   : > { %v3286_v38 = vadd.f32 %v5683_v19, %v3250_v5 }
 0x2f1   : > { %v4368_v41 = vpack.c.bf16 %v3286_v38, %v3285_v31  ;;  %v3381_v59 = vadd.f32 %v3380_v52, %v3286_v38  ;;  %v3419_v35 = vmul.f32 %v3286_v38, %v3286_v38 }
 0x2f3   : > { %4479 = vst [vmem:[%s5545_s24 + $0x78] sm:$0xff] %v4368_v41   ;;  %v3382_v53 = vrot.slane %v3381_v59, 4  ;;  %v3450_v33 = vadd.f32 %v3449_v58, %v3419_v35 }
 0x2f5   : > { %v3383_v45 = vadd.f32 %v3382_v53, %v3381_v59  ;;  %v3451_v55 = vrot.slane %v3450_v33, 4 }
 0x2f7   : > { %v3384_v4 = vrot.slane %v3383_v45, 2  ;;  %v3452_v12 = vadd.f32 %v3451_v55, %v3450_v33 }
 0x2f9   : > { %v3385_v30 = vadd.f32 %v3384_v4, %v3383_v45  ;;  %v3453_v15 = vrot.slane %v3452_v12, 2 }
 0x2fb   : > { %v3386_v44 = vrot.slane %v3385_v30, 1  ;;  %v3454_v48 = vadd.f32 %v3453_v15, %v3452_v12 }
 0x2fd   : > { %v3455_v37 = vrot.slane %v3454_v48, 1  ;;  %v3387_v19 = vadd.f32 %v3386_v44, %v3385_v30 }
 0x2ff   : > { %v3456_v26 = vadd.f32 %v3455_v37, %v3454_v48 }
 0x301   : > { %v3458_v28 = vsel %vm3457_vm2, %v3387_v19, %v3456_v26 }
 0x302   : > { %3459 = vst [vmem:[%s241_s29] sm:$0x3] %v3458_v28 }
 0x303 PF: > { %s15_s17 = sadd.s32 1, %s4627_s17   ;;  %s5776_s15 = smov %s4623_s16 }
 0x304   : > { %p12_p5 = scmp.ge.s32.totalorder %s15_s17, 4   ;;  %s5777_s16 = smov %s5779_s18 }
 0x306   :  { %14 = sbr.rel (!%p12_p5) target bundleno = 2 (0x2), region = 79 }

</bundles_post_ra>
